<compile_context>
chip_gen: v7x
topology: tpu7x:2x2x1
jax: 0.10.0
libtpu: 0.0.40
codegen_flags: <defaults>
</compile_context>

<pallas_src>
import functools

import jax
import jax.numpy as jnp
from jax.experimental import pallas as pl
from jax.experimental.pallas import tpu as pltpu


def _rup(x, m):
    return (x + m - 1) // m * m


# ----------------------------------------------------------------------------
# Chip-generation query (trace time).  v7x ~ 64 MiB VMEM & 2 TensorCores;
# v5e/v6e ~ 128 MiB VMEM & 1 TensorCore.
# ----------------------------------------------------------------------------
def _query_vmem_capacity():
    try:
        cap = int(pltpu.get_tpu_info().vmem_capacity_bytes)
        if cap > 0:
            return cap
    except Exception:
        pass
    return 128 << 20


_VMEM_CAP = _query_vmem_capacity()
_SMALL_VMEM_CHIP = _VMEM_CAP <= (80 << 20)          # v7x-like part
_VMEM_LIMIT_CAP = (48 << 20) if _SMALL_VMEM_CHIP else (100 << 20)
_DIRECT_CONV_BUDGET = min(12 << 20, _VMEM_LIMIT_CAP // 3)


# ----------------------------------------------------------------------------
# Pallas kernels
# ----------------------------------------------------------------------------
def _mm_kernel(a_ref, b_ref, s_ref, t_ref, o_ref, acc_ref, *, relu):
    """Tiled bf16 matmul, f32 accumulate, fused (y*scale + shift) [+ relu]."""
    @pl.when(pl.program_id(2) == 0)
    def _():
        acc_ref[...] = jnp.zeros_like(acc_ref)

    acc_ref[...] += jnp.dot(a_ref[...], b_ref[...],
                            preferred_element_type=jnp.float32)

    @pl.when(pl.program_id(2) == pl.num_programs(2) - 1)
    def _():
        y = acc_ref[...] * s_ref[...] + t_ref[...]
        if relu:
            y = jnp.maximum(y, 0.0)
        o_ref[...] = y.astype(o_ref.dtype)


def _mm_res_kernel(a_ref, b_ref, s_ref, t_ref, r_ref, o_ref, acc_ref, *, relu):
    """Same as _mm_kernel plus a fused residual add before the ReLU."""
    @pl.when(pl.program_id(2) == 0)
    def _():
        acc_ref[...] = jnp.zeros_like(acc_ref)

    acc_ref[...] += jnp.dot(a_ref[...], b_ref[...],
                            preferred_element_type=jnp.float32)

    @pl.when(pl.program_id(2) == pl.num_programs(2) - 1)
    def _():
        y = acc_ref[...] * s_ref[...] + t_ref[...] + r_ref[...].astype(jnp.float32)
        if relu:
            y = jnp.maximum(y, 0.0)
        o_ref[...] = y.astype(o_ref.dtype)


def _conv_kxk_kernel(xph_ref, w_ref, s_ref, t_ref, o_ref, *, stride, Ho, Wo, relu):
    """Direct KHxKW conv (+BN +ReLU) for one batch element, no im2col buffer.

    xph_ref: (stride*stride, Hs, Ws, Cin) phase-decomposed padded activation,
             fully resident in VMEM.  Tap (kh, kw) reads a *contiguous* static
             window of phase (kh % stride, kw % stride).
    w_ref:   (KH, KW, Cin, TN) weight slab for the current Cout tile.
    o_ref:   (1, Ho*Wo, TN).
    """
    KH, KW, cin, _ = w_ref.shape
    acc = jnp.zeros((Ho * Wo, o_ref.shape[-1]), jnp.float32)
    for kh in range(KH):
        rh, ah = kh % stride, kh // stride
        for kw in range(KW):
            rw, aw = kw % stride, kw // stride
            slab = xph_ref[rh * stride + rw]              # (Hs, Ws, Cin)
            win = slab[ah:ah + Ho, aw:aw + Wo, :]         # static contiguous
            acc = acc + jnp.dot(win.reshape(Ho * Wo, cin), w_ref[kh, kw],
                                preferred_element_type=jnp.float32)
    y = acc * s_ref[...] + t_ref[...]
    if relu:
        y = jnp.maximum(y, 0.0)
    o_ref[0] = y.astype(o_ref.dtype)


# ----------------------------------------------------------------------------
# Pallas wrapper: fused matmul + BN (+residual) epilogue
# ----------------------------------------------------------------------------
def matmul_scale_bias(a, b, scale, shift, residual=None, relu=True,
                      out_dtype=jnp.bfloat16, keep_n_pad=False):
    """out = relu?( (a @ b) * scale + shift [+ residual] ) in one Pallas kernel.

    a:(M,K)  b:(K,N)  scale/shift:(N,)  residual:(M,N) optional.
    MXU operands are bf16; accumulation and epilogue math are f32.
    keep_n_pad=True returns the lane-padded N (extra columns are exact zeros).
    """
    M, K = a.shape
    Kb, N = b.shape
    assert K == Kb

    # ---- tile selection: avoid pad copies, keep epilogue tile <= 256x256 ----
    if M >= 256 and M % 256 == 0:
        TM = 256
    elif M % 128 == 0:
        TM = 128
    elif M <= 256:
        TM = M                                   # full-dim block: legal, no pad
    else:
        TM = 128
    Mp = _rup(M, TM)

    Np = _rup(N, 128)
    TN = 256 if Np % 256 == 0 else 128

    if K <= 2048:
        TK, Kp = K, K                            # full-dim K block: no pad, 1 step
    else:
        Kp = _rup(K, 128)
        TK = 128
        for cand in range(2048, 127, -128):      # largest 128-multiple divisor
            if Kp % cand == 0:
                TK = cand
                break

    # v7x only (2 TensorCores): ensure >= 2 parallel blocks; split N before M.
    if _SMALL_VMEM_CHIP and (Mp // TM) * (Np // TN) == 1:
        if TN == 256:
            TN = 128
        elif TM % 16 == 0 and TM >= 32:
            TM //= 2
            Mp = _rup(M, TM)

    # ---- cast to bf16, pad only when actually needed -------------------------
    a = a.astype(jnp.bfloat16)
    b = b.astype(jnp.bfloat16)
    if (Mp, Kp) != (M, K):
        a = jnp.pad(a, ((0, Mp - M), (0, Kp - K)))
    if (Kp, Np) != (K, N):
        b = jnp.pad(b, ((0, Kp - K), (0, Np - N)))
    s = scale.astype(jnp.float32).reshape(1, N)
    t = shift.astype(jnp.float32).reshape(1, N)
    if Np != N:
        s = jnp.pad(s, ((0, 0), (0, Np - N)))
        t = jnp.pad(t, ((0, 0), (0, Np - N)))

    in_specs = [
        pl.BlockSpec((TM, TK), lambda i, j, k: (i, k)),
        pl.BlockSpec((TK, TN), lambda i, j, k: (k, j)),
        pl.BlockSpec((1, TN), lambda i, j, k: (0, j)),
        pl.BlockSpec((1, TN), lambda i, j, k: (0, j)),
    ]
    args = [a, b, s, t]
    res_bytes = 0
    if residual is not None:
        r = residual.astype(jnp.bfloat16)
        if (Mp, Np) != r.shape:
            r = jnp.pad(r, ((0, Mp - r.shape[0]), (0, Np - r.shape[1])))
        in_specs.append(pl.BlockSpec((TM, TN), lambda i, j, k: (i, j)))
        args.append(r)
        kernel = functools.partial(_mm_res_kernel, relu=relu)
        res_bytes = TM * TN * 2
    else:
        kernel = functools.partial(_mm_kernel, relu=relu)

    out_isz = jnp.dtype(out_dtype).itemsize
    vmem_bytes = (2 * (TM * _rup(TK, 128) * 2 + _rup(TK, 8) * TN * 2
                       + 2 * TN * 4 + res_bytes)
                  + 2 * TM * TN * out_isz + TM * TN * 4)
    vmem_limit = int(min(_VMEM_LIMIT_CAP, max(2 * vmem_bytes, 16 << 20)))

    out = pl.pallas_call(
        kernel,
        out_shape=jax.ShapeDtypeStruct((Mp, Np), out_dtype),
        grid_spec=pltpu.PrefetchScalarGridSpec(
            num_scalar_prefetch=0,
            grid=(Mp // TM, Np // TN, Kp // TK),
            in_specs=in_specs,
            out_specs=pl.BlockSpec((TM, TN), lambda i, j, k: (i, j)),
            scratch_shapes=[pltpu.VMEM((TM, TN), jnp.float32)],
        ),
        compiler_params=pltpu.CompilerParams(
            dimension_semantics=("parallel", "parallel", "arbitrary"),
            vmem_limit_bytes=vmem_limit,
        ),
    )(*args)
    if Mp != M:
        out = out[:M]
    if (not keep_n_pad) and Np != N:
        out = out[:, :N]
    return out


# ----------------------------------------------------------------------------
# Direct (no-im2col) KHxKW conv + BN + ReLU
# ----------------------------------------------------------------------------
def _conv_kxk_direct(x, w, scale, shift, *, stride, padding, relu, out_dtype,
                     keep_channel_pad):
    N, H, W, C = x.shape
    KH, KW, _, Cout = w.shape
    Ho = (H + 2 * padding - KH) // stride + 1
    Wo = (W + 2 * padding - KW) // stride + 1
    Hp, Wp = H + 2 * padding, W + 2 * padding
    Hs, Ws = -(-Hp // stride), -(-Wp // stride)

    # zero-pad (conv padding + make spatial dims multiples of stride)
    xp = jnp.pad(x, ((0, 0),
                     (padding, padding + Hs * stride - Hp),
                     (padding, padding + Ws * stride - Wp),
                     (0, 0)))
    if stride == 1:
        xph = xp                                            # (N, Hs, Ws, C)
    else:
        phases = [xp[:, r::stride, q::stride, :]
                  for r in range(stride) for q in range(stride)]
        xph = jnp.stack(phases, axis=1).reshape(N * stride * stride, Hs, Ws, C)

    Npad = _rup(Cout, 128)
    TN = 256 if Npad % 256 == 0 else 128
    wq = w.astype(jnp.bfloat16)
    s = scale.astype(jnp.float32).reshape(1, Cout)
    t = shift.astype(jnp.float32).reshape(1, Cout)
    if Npad != Cout:
        wq = jnp.pad(wq, ((0, 0), (0, 0), (0, 0), (0, Npad - Cout)))
        s = jnp.pad(s, ((0, 0), (0, Npad - Cout)))
        t = jnp.pad(t, ((0, 0), (0, Npad - Cout)))

    out_isz = jnp.dtype(out_dtype).itemsize
    est = (stride * stride * Hs * _rup(Ws, 8) * _rup(C, 128) * 2
           + KH * KW * _rup(C, 8) * _rup(TN, 128) * 2
           + _rup(Ho * Wo, 8) * _rup(TN, 128) * (4 + out_isz))
    vmem_limit = int(min(_VMEM_LIMIT_CAP, max(4 * est, 16 << 20)))

    kernel = functools.partial(_conv_kxk_kernel, stride=stride, Ho=Ho, Wo=Wo,
                               relu=relu)
    out = pl.pallas_call(
        kernel,
        out_shape=jax.ShapeDtypeStruct((N, Ho * Wo, Npad), out_dtype),
        grid_spec=pltpu.PrefetchScalarGridSpec(
            num_scalar_prefetch=0,
            grid=(N, Npad // TN),
            in_specs=[
                pl.BlockSpec((stride * stride, Hs, Ws, C),
                             lambda b, j: (b, 0, 0, 0)),
                pl.BlockSpec((KH, KW, C, TN), lambda b, j: (0, 0, 0, j)),
                pl.BlockSpec((1, TN), lambda b, j: (0, j)),
                pl.BlockSpec((1, TN), lambda b, j: (0, j)),
            ],
            out_specs=pl.BlockSpec((1, Ho * Wo, TN), lambda b, j: (b, 0, j)),
        ),
        compiler_params=pltpu.CompilerParams(
            dimension_semantics=("parallel", "parallel"),
            vmem_limit_bytes=vmem_limit,
        ),
    )(xph, wq, s, t)

    out = out.reshape(N, Ho, Wo, Npad)
    if (not keep_channel_pad) and Npad != Cout:
        out = out[..., :Cout]
    return out


def _conv_kxk_im2col(x, w, scale, shift, *, stride, padding, relu, out_dtype,
                     keep_channel_pad):
    """Fallback path (large activations that do not fit the direct kernel)."""
    N, H, W, C = x.shape
    KH, KW, _, Cout = w.shape
    Ho = (H + 2 * padding - KH) // stride + 1
    Wo = (W + 2 * padding - KW) // stride + 1
    xp = x
    if padding:
        xp = jnp.pad(xp, ((0, 0), (padding, padding), (padding, padding), (0, 0)))
    taps = [xp[:, kh:kh + stride * (Ho - 1) + 1:stride,
                  kw:kw + stride * (Wo - 1) + 1:stride, :]
            for kh in range(KH) for kw in range(KW)]
    patches = jnp.stack(taps, axis=3).reshape(N * Ho * Wo, KH * KW * C)
    y = matmul_scale_bias(patches, w.reshape(KH * KW * C, Cout), scale, shift,
                          relu=relu, out_dtype=out_dtype,
                          keep_n_pad=keep_channel_pad)
    return y.reshape(N, Ho, Wo, y.shape[-1])


# ----------------------------------------------------------------------------
# Conv2d(bias=False) + folded eval-mode BatchNorm (+ residual) (+ ReLU)
# ----------------------------------------------------------------------------
def conv_bn(x, w, scale, shift, *, stride=1, padding=0, relu=True,
            residual=None, out_dtype=jnp.bfloat16, keep_channel_pad=False):
    """x: (N, H, W, Cin) NHWC; w: (KH, KW, Cin, Cout)."""
    x = x.astype(jnp.bfloat16)
    w = w.astype(jnp.bfloat16)
    N, H, W, Cx = x.shape
    KH, KW, Cw, Cout = w.shape
    if Cx != Cw:
        # upstream layer kept zero lane-padding on its channel dim: grow the
        # weight with matching zero rows (identical result, lane-dense K).
        assert Cx > Cw
        w = jnp.pad(w, ((0, 0), (0, 0), (0, Cx - Cw), (0, 0)))
    Ho = (H + 2 * padding - KH) // stride + 1
    Wo = (W + 2 * padding - KW) // stride + 1

    if KH == 1 and KW == 1:
        xs = x
        if padding:
            xs = jnp.pad(xs, ((0, 0), (padding, padding), (padding, padding), (0, 0)))
        if stride != 1:
            xs = xs[:, ::stride, ::stride, :]
        patches = xs.reshape(N * Ho * Wo, Cx)
        res2 = None if residual is None else residual.reshape(N * Ho * Wo, -1)
        y = matmul_scale_bias(patches, w.reshape(Cx, Cout), scale, shift,
                              residual=res2, relu=relu, out_dtype=out_dtype,
                              keep_n_pad=keep_channel_pad)
        return y.reshape(N, Ho, Wo, y.shape[-1])

    assert residual is None  # TODO(synk): residual fusion only in the 1x1 path
    Hp, Wp = H + 2 * padding, W + 2 * padding
    Hs, Ws = -(-Hp // stride), -(-Wp // stride)
    Npad = _rup(Cout, 128)
    TN = 256 if Npad % 256 == 0 else 128
    est = (stride * stride * Hs * _rup(Ws, 8) * _rup(Cx, 128) * 2
           + KH * KW * _rup(Cx, 8) * _rup(TN, 128) * 2
           + _rup(Ho * Wo, 8) * _rup(TN, 128) * 8)
    if 2 * est <= _DIRECT_CONV_BUDGET:
        return _conv_kxk_direct(x, w, scale, shift, stride=stride,
                                padding=padding, relu=relu, out_dtype=out_dtype,
                                keep_channel_pad=keep_channel_pad)
    return _conv_kxk_im2col(x, w, scale, shift, stride=stride, padding=padding,
                            relu=relu, out_dtype=out_dtype,
                            keep_channel_pad=keep_channel_pad)


# ----------------------------------------------------------------------------
# Deterministic parameter initialization (matches the PyTorch module shapes)
# ----------------------------------------------------------------------------
def init_conv(key, kh, kw, cin, cout):
    fan_in = kh * kw * cin
    return jax.random.normal(key, (kh, kw, cin, cout), jnp.float32) / jnp.sqrt(fan_in)


def init_bn(key, c):
    """Folded (scale, shift) for eval-mode BatchNorm with eps=1e-5."""
    k1, k2, k3, k4 = jax.random.split(key, 4)
    gamma = jax.random.uniform(k1, (c,), jnp.float32, 0.5, 1.5)
    beta = 0.1 * jax.random.normal(k2, (c,), jnp.float32)
    mean = 0.1 * jax.random.normal(k3, (c,), jnp.float32)
    var = jax.random.uniform(k4, (c,), jnp.float32, 0.5, 1.5)
    scale = gamma / jnp.sqrt(var + 1e-5)
    shift = beta - mean * scale
    return scale, shift


def init_block(key, in_channels, out_channels, stride):
    expansion = 4
    keys = jax.random.split(key, 8)
    p = {
        "w1": init_conv(keys[0], 1, 1, in_channels, out_channels),
        "bn1": init_bn(keys[1], out_channels),
        "w2": init_conv(keys[2], 3, 3, out_channels, out_channels),
        "bn2": init_bn(keys[3], out_channels),
        "w3": init_conv(keys[4], 1, 1, out_channels, out_channels * expansion),
        "bn3": init_bn(keys[5], out_channels * expansion),
        "stride": stride,
    }
    if stride != 1 or in_channels != out_channels * expansion:
        # identity_downsample: Conv2d(1x1, stride) + BatchNorm
        p["wd"] = init_conv(keys[6], 1, 1, in_channels, out_channels * expansion)
        p["bnd"] = init_bn(keys[7], out_channels * expansion)
    return p


# ----------------------------------------------------------------------------
# Forward pass (mirrors block.forward); NHWC, bf16 between chained blocks
# ----------------------------------------------------------------------------
def block_forward(x, p, *, out_dtype=jnp.bfloat16):
    identity = x
    y = conv_bn(x, p["w1"], *p["bn1"], stride=1, padding=0, relu=True,
                keep_channel_pad=True)
    y = conv_bn(y, p["w2"], *p["bn2"], stride=p["stride"], padding=1, relu=True,
                keep_channel_pad=True)
    if "wd" in p:
        identity = conv_bn(identity, p["wd"], *p["bnd"], stride=p["stride"],
                           padding=0, relu=False)
    # conv3 + bn3 + residual add + relu fused into one Pallas kernel
    y = conv_bn(y, p["w3"], *p["bn3"], stride=1, padding=0, relu=True,
                residual=identity, out_dtype=out_dtype)
    return y


def resnet_stage_nchw(x_nchw, params_list):
    """Chain of bottleneck blocks; NCHW<->NHWC only at the model boundary."""
    x = jnp.transpose(x_nchw, (0, 2, 3, 1)).astype(jnp.bfloat16)
    n_blocks = len(params_list)
    for i, p in enumerate(params_list):
        last = i == n_blocks - 1
        x = block_forward(x, p, out_dtype=jnp.float32 if last else jnp.bfloat16)
    return jnp.transpose(x, (0, 3, 1, 2))


if __name__ == "__main__":
    key = jax.random.PRNGKey(0)
    kp, kx = jax.random.split(key)

    in_channels, out_channels = 64, 64        # bottleneck width -> 256 out
    # block with identity_downsample (stride 2, channel change) ...
    p_down = init_block(jax.random.fold_in(kp, 0), in_channels, out_channels, stride=2)
    # ... followed by a plain residual block (no downsample)
    p_id = init_block(jax.random.fold_in(kp, 1), out_channels * 4, out_channels, stride=1)

    x = jax.random.normal(kx, (2, in_channels, 16, 16), jnp.float32)  # NCHW

    fwd = jax.jit(lambda xx: resnet_stage_nchw(xx, (p_down, p_id)))
    out = jax.block_until_ready(fwd(x))

    assert out.shape == (2, out_channels * 4, 8, 8), out.shape
    assert bool(jnp.all(jnp.isfinite(out)))
    print("KERNEL_OK")
</pallas_src>

<mosaic_0001>
module attributes {stable_mosaic.version = 11 : i64} {
  func.func @_mm_kernel(%arg0: i32, %arg1: i32, %arg2: i32, %arg3: memref<256x64xbf16, #tpu.memory_space<vmem>>, %arg4: memref<64x128xbf16, #tpu.memory_space<vmem>>, %arg5: memref<1x128xf32, #tpu.memory_space<vmem>>, %arg6: memref<1x128xf32, #tpu.memory_space<vmem>>, %arg7: memref<256x128xbf16, #tpu.memory_space<vmem>>, %arg8: memref<256x128xf32, #tpu.memory_space<vmem>>) attributes {dimension_semantics = [#tpu.dimension_semantics<parallel>, #tpu.dimension_semantics<parallel>, #tpu.dimension_semantics<arbitrary>], iteration_bounds = array<i64: 2, 1, 1>, scalar_prefetch = 0 : i64, scratch_operands = 1 : i64, tpu.core_type = #tpu.core_type<tc>, window_params = [{transform_indices = @transform_0, window_bounds = array<i64: 256, 64>}, {transform_indices = @transform_1, window_bounds = array<i64: 64, 128>}, {transform_indices = @transform_2, window_bounds = array<i64: 1, 128>}, {transform_indices = @transform_3, window_bounds = array<i64: 1, 128>}, {transform_indices = @transform_4, window_bounds = array<i64: 256, 128>}]} {
    %c0_i32 = arith.constant 0 : i32
    %0 = arith.cmpi eq, %arg2, %c0_i32 : i32
    %1 = arith.extui %0 : i1 to i32
    %c0_i32_0 = arith.constant 0 : i32
    %2 = arith.cmpi ne, %1, %c0_i32_0 : i32
    scf.if %2 {
      %cst_10 = arith.constant 0.000000e+00 : f32
      %12 = vector.broadcast %cst_10 : f32 to vector<256x128xf32>
      %c0_11 = arith.constant 0 : index
      %c0_12 = arith.constant 0 : index
      %13 = vector.load %arg8[%c0_11, %c0_12] : memref<256x128xf32, #tpu.memory_space<vmem>>, vector<256x128xf32>
      tpu.vector_store %arg8[%c0_11, %c0_12], %12 {strides = array<i32>} : memref<256x128xf32, #tpu.memory_space<vmem>>, vector<256x128xf32>,
    } else {
    }
    %c0 = arith.constant 0 : index
    %c0_1 = arith.constant 0 : index
    %3 = vector.load %arg8[%c0, %c0_1] : memref<256x128xf32, #tpu.memory_space<vmem>>, vector<256x128xf32>
    %c0_2 = arith.constant 0 : index
    %c0_3 = arith.constant 0 : index
    %4 = vector.load %arg3[%c0_2, %c0_3] : memref<256x64xbf16, #tpu.memory_space<vmem>>, vector<256x64xbf16>
    %c0_4 = arith.constant 0 : index
    %c0_5 = arith.constant 0 : index
    %5 = vector.load %arg4[%c0_4, %c0_5] : memref<64x128xbf16, #tpu.memory_space<vmem>>, vector<64x128xbf16>
    %cst = arith.constant dense<0.000000e+00> : vector<256x128xf32>
    %6 = tpu.matmul %4, %5, %cst {dimension_numbers = #tpu.dot_dimension_numbers<[1], [0], [0], [1], [0, 0, 1, 1], [], []>} : vector<256x64xbf16>, vector<64x128xbf16>, vector<256x128xf32> -> vector<256x128xf32>
    %7 = arith.addf %3, %6 : vector<256x128xf32>
    %c0_6 = arith.constant 0 : index
    %c0_7 = arith.constant 0 : index
    %8 = vector.load %arg8[%c0_6, %c0_7] : memref<256x128xf32, #tpu.memory_space<vmem>>, vector<256x128xf32>
    tpu.vector_store %arg8[%c0_6, %c0_7], %7 {strides = array<i32>} : memref<256x128xf32, #tpu.memory_space<vmem>>, vector<256x128xf32>,
    %c0_i32_8 = arith.constant 0 : i32
    %9 = arith.cmpi eq, %arg2, %c0_i32_8 : i32
    %10 = arith.extui %9 : i1 to i32
    %c0_i32_9 = arith.constant 0 : i32
    %11 = arith.cmpi ne, %10, %c0_i32_9 : i32
    scf.if %11 {
      %c0_10 = arith.constant 0 : index
      %c0_11 = arith.constant 0 : index
      %12 = vector.load %arg8[%c0_10, %c0_11] : memref<256x128xf32, #tpu.memory_space<vmem>>, vector<256x128xf32>
      %c0_12 = arith.constant 0 : index
      %c0_13 = arith.constant 0 : index
      %13 = vector.load %arg5[%c0_12, %c0_13] : memref<1x128xf32, #tpu.memory_space<vmem>>, vector<1x128xf32>
      %14 = vector.broadcast %13 : vector<1x128xf32> to vector<256x128xf32>
      %15 = arith.mulf %12, %14 : vector<256x128xf32>
      %c0_14 = arith.constant 0 : index
      %c0_15 = arith.constant 0 : index
      %16 = vector.load %arg6[%c0_14, %c0_15] : memref<1x128xf32, #tpu.memory_space<vmem>>, vector<1x128xf32>
      %17 = vector.broadcast %16 : vector<1x128xf32> to vector<256x128xf32>
      %18 = arith.addf %15, %17 : vector<256x128xf32>
      %cst_16 = arith.constant 0.000000e+00 : f32
      %19 = vector.broadcast %cst_16 : f32 to vector<256x128xf32>
      %20 = arith.maximumf %18, %19 : vector<256x128xf32>
      %21 = arith.truncf %20 : vector<256x128xf32> to vector<256x128xbf16>
      %c0_17 = arith.constant 0 : index
      %c0_18 = arith.constant 0 : index
      %22 = vector.load %arg7[%c0_17, %c0_18] : memref<256x128xbf16, #tpu.memory_space<vmem>>, vector<256x128xbf16>
      tpu.vector_store %arg7[%c0_17, %c0_18], %21 {strides = array<i32>} : memref<256x128xbf16, #tpu.memory_space<vmem>>, vector<256x128xbf16>,
    } else {
    }
    return
  }
  func.func @transform_0(%arg0: i32, %arg1: i32, %arg2: i32) -> (i32, i32) {
    %c0_i32 = arith.constant 0 : i32
    return %arg0, %arg2 : i32, i32
  }
  func.func @transform_1(%arg0: i32, %arg1: i32, %arg2: i32) -> (i32, i32) {
    %c0_i32 = arith.constant 0 : i32
    return %arg2, %arg1 : i32, i32
  }
  func.func @transform_2(%arg0: i32, %arg1: i32, %arg2: i32) -> (i32, i32) {
    %c0_i32 = arith.constant 0 : i32
    %c0_i32_0 = arith.constant 0 : i32
    return %c0_i32, %arg1 : i32, i32
  }
  func.func @transform_3(%arg0: i32, %arg1: i32, %arg2: i32) -> (i32, i32) {
    %c0_i32 = arith.constant 0 : i32
    %c0_i32_0 = arith.constant 0 : i32
    return %c0_i32, %arg1 : i32, i32
  }
  func.func @transform_4(%arg0: i32, %arg1: i32, %arg2: i32) -> (i32, i32) {
    %c0_i32 = arith.constant 0 : i32
    return %arg0, %arg1 : i32, i32
  }
}

module attributes {stable_mosaic.version = 11 : i64} {
  func.func @_conv_kxk_kernel(%arg0: i32, %arg1: i32, %arg2: memref<4x9x9x128xbf16, #tpu.memory_space<vmem>>, %arg3: memref<3x3x128x128xbf16, #tpu.memory_space<vmem>>, %arg4: memref<1x128xf32, #tpu.memory_space<vmem>>, %arg5: memref<1x128xf32, #tpu.memory_space<vmem>>, %arg6: memref<1x64x128xbf16, #tpu.memory_space<vmem>>) attributes {dimension_semantics = [#tpu.dimension_semantics<parallel>, #tpu.dimension_semantics<parallel>], iteration_bounds = array<i64: 2, 1>, scalar_prefetch = 0 : i64, scratch_operands = 0 : i64, tpu.core_type = #tpu.core_type<tc>, window_params = [{transform_indices = @transform_0, window_bounds = array<i64: 4, 9, 9, 128>}, {transform_indices = @transform_1, window_bounds = array<i64: 3, 3, 128, 128>}, {transform_indices = @transform_2, window_bounds = array<i64: 1, 128>}, {transform_indices = @transform_3, window_bounds = array<i64: 1, 128>}, {transform_indices = @transform_4, window_bounds = array<i64: 1, 64, 128>}]} {
    %cst = arith.constant 0.000000e+00 : f32
    %0 = vector.broadcast %cst : f32 to vector<64x128xf32>
    %c0 = arith.constant 0 : index
    %c0_0 = arith.constant 0 : index
    %c0_1 = arith.constant 0 : index
    %c0_2 = arith.constant 0 : index
    %1 = vector.load %arg2[%c0, %c0_0, %c0_1, %c0_2] : memref<4x9x9x128xbf16, #tpu.memory_space<vmem>>, vector<1x9x9x128xbf16>
    %2 = vector.shape_cast %1 : vector<1x9x9x128xbf16> to vector<9x9x128xbf16>
    %3 = vector.extract_strided_slice %2 {offsets = [0, 0, 0], sizes = [8, 8, 128], strides = [1, 1, 1]} : vector<9x9x128xbf16> to vector<8x8x128xbf16>
    %4 = vector.shape_cast %3 : vector<8x8x128xbf16> to vector<64x128xbf16>
    %c0_3 = arith.constant 0 : index
    %c0_4 = arith.constant 0 : index
    %c0_5 = arith.constant 0 : index
    %c0_6 = arith.constant 0 : index
    %5 = vector.load %arg3[%c0_3, %c0_4, %c0_5, %c0_6] : memref<3x3x128x128xbf16, #tpu.memory_space<vmem>>, vector<1x1x128x128xbf16>
    %6 = vector.shape_cast %5 : vector<1x1x128x128xbf16> to vector<128x128xbf16>
    %cst_7 = arith.constant dense<0.000000e+00> : vector<64x128xf32>
    %7 = tpu.matmul %4, %6, %cst_7 {dimension_numbers = #tpu.dot_dimension_numbers<[1], [0], [0], [1], [0, 0, 1, 1], [], []>} : vector<64x128xbf16>, vector<128x128xbf16>, vector<64x128xf32> -> vector<64x128xf32>
    %8 = arith.addf %0, %7 : vector<64x128xf32>
    %c1 = arith.constant 1 : index
    %c0_8 = arith.constant 0 : index
    %c0_9 = arith.constant 0 : index
    %c0_10 = arith.constant 0 : index
    %9 = vector.load %arg2[%c1, %c0_8, %c0_9, %c0_10] : memref<4x9x9x128xbf16, #tpu.memory_space<vmem>>, vector<1x9x9x128xbf16>
    %10 = vector.shape_cast %9 : vector<1x9x9x128xbf16> to vector<9x9x128xbf16>
    %11 = vector.extract_strided_slice %10 {offsets = [0, 0, 0], sizes = [8, 8, 128], strides = [1, 1, 1]} : vector<9x9x128xbf16> to vector<8x8x128xbf16>
    %12 = vector.shape_cast %11 : vector<8x8x128xbf16> to vector<64x128xbf16>
    %c0_11 = arith.constant 0 : index
    %c1_12 = arith.constant 1 : index
    %c0_13 = arith.constant 0 : index
    %c0_14 = arith.constant 0 : index
    %13 = vector.load %arg3[%c0_11, %c1_12, %c0_13, %c0_14] : memref<3x3x128x128xbf16, #tpu.memory_space<vmem>>, vector<1x1x128x128xbf16>
    %14 = vector.shape_cast %13 : vector<1x1x128x128xbf16> to vector<128x128xbf16>
    %cst_15 = arith.constant dense<0.000000e+00> : vector<64x128xf32>
    %15 = tpu.matmul %12, %14, %cst_15 {dimension_numbers = #tpu.dot_dimension_numbers<[1], [0], [0], [1], [0, 0, 1, 1], [], []>} : vector<64x128xbf16>, vector<128x128xbf16>, vector<64x128xf32> -> vector<64x128xf32>
    %16 = arith.addf %8, %15 : vector<64x128xf32>
    %c0_16 = arith.constant 0 : index
    %c0_17 = arith.constant 0 : index
    %c0_18 = arith.constant 0 : index
    %c0_19 = arith.constant 0 : index
    %17 = vector.load %arg2[%c0_16, %c0_17, %c0_18, %c0_19] : memref<4x9x9x128xbf16, #tpu.memory_space<vmem>>, vector<1x9x9x128xbf16>
    %18 = vector.shape_cast %17 : vector<1x9x9x128xbf16> to vector<9x9x128xbf16>
    %19 = vector.extract_strided_slice %18 {offsets = [0, 1, 0], sizes = [8, 8, 128], strides = [1, 1, 1]} : vector<9x9x128xbf16> to vector<8x8x128xbf16>
    %20 = vector.shape_cast %19 : vector<8x8x128xbf16> to vector<64x128xbf16>
    %c0_20 = arith.constant 0 : index
    %c2 = arith.constant 2 : index
    %c0_21 = arith.constant 0 : index
    %c0_22 = arith.constant 0 : index
    %21 = vector.load %arg3[%c0_20, %c2, %c0_21, %c0_22] : memref<3x3x128x128xbf16, #tpu.memory_space<vmem>>, vector<1x1x128x128xbf16>
    %22 = vector.shape_cast %21 : vector<1x1x128x128xbf16> to vector<128x128xbf16>
    %cst_23 = arith.constant dense<0.000000e+00> : vector<64x128xf32>
    %23 = tpu.matmul %20, %22, %cst_23 {dimension_numbers = #tpu.dot_dimension_numbers<[1], [0], [0], [1], [0, 0, 1, 1], [], []>} : vector<64x128xbf16>, vector<128x128xbf16>, vector<64x128xf32> -> vector<64x128xf32>
    %24 = arith.addf %16, %23 : vector<64x128xf32>
    %c2_24 = arith.constant 2 : index
    %c0_25 = arith.constant 0 : index
    %c0_26 = arith.constant 0 : index
    %c0_27 = arith.constant 0 : index
    %25 = vector.load %arg2[%c2_24, %c0_25, %c0_26, %c0_27] : memref<4x9x9x128xbf16, #tpu.memory_space<vmem>>, vector<1x9x9x128xbf16>
    %26 = vector.shape_cast %25 : vector<1x9x9x128xbf16> to vector<9x9x128xbf16>
    %27 = vector.extract_strided_slice %26 {offsets = [0, 0, 0], sizes = [8, 8, 128], strides = [1, 1, 1]} : vector<9x9x128xbf16> to vector<8x8x128xbf16>
    %28 = vector.shape_cast %27 : vector<8x8x128xbf16> to vector<64x128xbf16>
    %c1_28 = arith.constant 1 : index
    %c0_29 = arith.constant 0 : index
    %c0_30 = arith.constant 0 : index
    %c0_31 = arith.constant 0 : index
    %29 = vector.load %arg3[%c1_28, %c0_29, %c0_30, %c0_31] : memref<3x3x128x128xbf16, #tpu.memory_space<vmem>>, vector<1x1x128x128xbf16>
    %30 = vector.shape_cast %29 : vector<1x1x128x128xbf16> to vector<128x128xbf16>
    %cst_32 = arith.constant dense<0.000000e+00> : vector<64x128xf32>
    %31 = tpu.matmul %28, %30, %cst_32 {dimension_numbers = #tpu.dot_dimension_numbers<[1], [0], [0], [1], [0, 0, 1, 1], [], []>} : vector<64x128xbf16>, vector<128x128xbf16>, vector<64x128xf32> -> vector<64x128xf32>
    %32 = arith.addf %24, %31 : vector<64x128xf32>
    %c3 = arith.constant 3 : index
    %c0_33 = arith.constant 0 : index
    %c0_34 = arith.constant 0 : index
    %c0_35 = arith.constant 0 : index
    %33 = vector.load %arg2[%c3, %c0_33, %c0_34, %c0_35] : memref<4x9x9x128xbf16, #tpu.memory_space<vmem>>, vector<1x9x9x128xbf16>
    %34 = vector.shape_cast %33 : vector<1x9x9x128xbf16> to vector<9x9x128xbf16>
    %35 = vector.extract_strided_slice %34 {offsets = [0, 0, 0], sizes = [8, 8, 128], strides = [1, 1, 1]} : vector<9x9x128xbf16> to vector<8x8x128xbf16>
    %36 = vector.shape_cast %35 : vector<8x8x128xbf16> to vector<64x128xbf16>
    %c1_36 = arith.constant 1 : index
    %c1_37 = arith.constant 1 : index
    %c0_38 = arith.constant 0 : index
    %c0_39 = arith.constant 0 : index
    %37 = vector.load %arg3[%c1_36, %c1_37, %c0_38, %c0_39] : memref<3x3x128x128xbf16, #tpu.memory_space<vmem>>, vector<1x1x128x128xbf16>
    %38 = vector.shape_cast %37 : vector<1x1x128x128xbf16> to vector<128x128xbf16>
    %cst_40 = arith.constant dense<0.000000e+00> : vector<64x128xf32>
    %39 = tpu.matmul %36, %38, %cst_40 {dimension_numbers = #tpu.dot_dimension_numbers<[1], [0], [0], [1], [0, 0, 1, 1], [], []>} : vector<64x128xbf16>, vector<128x128xbf16>, vector<64x128xf32> -> vector<64x128xf32>
    %40 = arith.addf %32, %39 : vector<64x128xf32>
    %c2_41 = arith.constant 2 : index
    %c0_42 = arith.constant 0 : index
    %c0_43 = arith.constant 0 : index
    %c0_44 = arith.constant 0 : index
    %41 = vector.load %arg2[%c2_41, %c0_42, %c0_43, %c0_44] : memref<4x9x9x128xbf16, #tpu.memory_space<vmem>>, vector<1x9x9x128xbf16>
    %42 = vector.shape_cast %41 : vector<1x9x9x128xbf16> to vector<9x9x128xbf16>
    %43 = vector.extract_strided_slice %42 {offsets = [0, 1, 0], sizes = [8, 8, 128], strides = [1, 1, 1]} : vector<9x9x128xbf16> to vector<8x8x128xbf16>
    %44 = vector.shape_cast %43 : vector<8x8x128xbf16> to vector<64x128xbf16>
    %c1_45 = arith.constant 1 : index
    %c2_46 = arith.constant 2 : index
    %c0_47 = arith.constant 0 : index
    %c0_48 = arith.constant 0 : index
    %45 = vector.load %arg3[%c1_45, %c2_46, %c0_47, %c0_48] : memref<3x3x128x128xbf16, #tpu.memory_space<vmem>>, vector<1x1x128x128xbf16>
    %46 = vector.shape_cast %45 : vector<1x1x128x128xbf16> to vector<128x128xbf16>
    %cst_49 = arith.constant dense<0.000000e+00> : vector<64x128xf32>
    %47 = tpu.matmul %44, %46, %cst_49 {dimension_numbers = #tpu.dot_dimension_numbers<[1], [0], [0], [1], [0, 0, 1, 1], [], []>} : vector<64x128xbf16>, vector<128x128xbf16>, vector<64x128xf32> -> vector<64x128xf32>
    %48 = arith.addf %40, %47 : vector<64x128xf32>
    %c0_50 = arith.constant 0 : index
    %c0_51 = arith.constant 0 : index
    %c0_52 = arith.constant 0 : index
    %c0_53 = arith.constant 0 : index
    %49 = vector.load %arg2[%c0_50, %c0_51, %c0_52, %c0_53] : memref<4x9x9x128xbf16, #tpu.memory_space<vmem>>, vector<1x9x9x128xbf16>
    %50 = vector.shape_cast %49 : vector<1x9x9x128xbf16> to vector<9x9x128xbf16>
    %51 = vector.extract_strided_slice %50 {offsets = [1, 0, 0], sizes = [8, 8, 128], strides = [1, 1, 1]} : vector<9x9x128xbf16> to vector<8x8x128xbf16>
    %52 = vector.shape_cast %51 : vector<8x8x128xbf16> to vector<64x128xbf16>
    %c2_54 = arith.constant 2 : index
    %c0_55 = arith.constant 0 : index
    %c0_56 = arith.constant 0 : index
    %c0_57 = arith.constant 0 : index
    %53 = vector.load %arg3[%c2_54, %c0_55, %c0_56, %c0_57] : memref<3x3x128x128xbf16, #tpu.memory_space<vmem>>, vector<1x1x128x128xbf16>
    %54 = vector.shape_cast %53 : vector<1x1x128x128xbf16> to vector<128x128xbf16>
    %cst_58 = arith.constant dense<0.000000e+00> : vector<64x128xf32>
    %55 = tpu.matmul %52, %54, %cst_58 {dimension_numbers = #tpu.dot_dimension_numbers<[1], [0], [0], [1], [0, 0, 1, 1], [], []>} : vector<64x128xbf16>, vector<128x128xbf16>, vector<64x128xf32> -> vector<64x128xf32>
    %56 = arith.addf %48, %55 : vector<64x128xf32>
    %c1_59 = arith.constant 1 : index
    %c0_60 = arith.constant 0 : index
    %c0_61 = arith.constant 0 : index
    %c0_62 = arith.constant 0 : index
    %57 = vector.load %arg2[%c1_59, %c0_60, %c0_61, %c0_62] : memref<4x9x9x128xbf16, #tpu.memory_space<vmem>>, vector<1x9x9x128xbf16>
    %58 = vector.shape_cast %57 : vector<1x9x9x128xbf16> to vector<9x9x128xbf16>
    %59 = vector.extract_strided_slice %58 {offsets = [1, 0, 0], sizes = [8, 8, 128], strides = [1, 1, 1]} : vector<9x9x128xbf16> to vector<8x8x128xbf16>
    %60 = vector.shape_cast %59 : vector<8x8x128xbf16> to vector<64x128xbf16>
    %c2_63 = arith.constant 2 : index
    %c1_64 = arith.constant 1 : index
    %c0_65 = arith.constant 0 : index
    %c0_66 = arith.constant 0 : index
    %61 = vector.load %arg3[%c2_63, %c1_64, %c0_65, %c0_66] : memref<3x3x128x128xbf16, #tpu.memory_space<vmem>>, vector<1x1x128x128xbf16>
    %62 = vector.shape_cast %61 : vector<1x1x128x128xbf16> to vector<128x128xbf16>
    %cst_67 = arith.constant dense<0.000000e+00> : vector<64x128xf32>
    %63 = tpu.matmul %60, %62, %cst_67 {dimension_numbers = #tpu.dot_dimension_numbers<[1], [0], [0], [1], [0, 0, 1, 1], [], []>} : vector<64x128xbf16>, vector<128x128xbf16>, vector<64x128xf32> -> vector<64x128xf32>
    %64 = arith.addf %56, %63 : vector<64x128xf32>
    %c0_68 = arith.constant 0 : index
    %c0_69 = arith.constant 0 : index
    %c0_70 = arith.constant 0 : index
    %c0_71 = arith.constant 0 : index
    %65 = vector.load %arg2[%c0_68, %c0_69, %c0_70, %c0_71] : memref<4x9x9x128xbf16, #tpu.memory_space<vmem>>, vector<1x9x9x128xbf16>
    %66 = vector.shape_cast %65 : vector<1x9x9x128xbf16> to vector<9x9x128xbf16>
    %67 = vector.extract_strided_slice %66 {offsets = [1, 1, 0], sizes = [8, 8, 128], strides = [1, 1, 1]} : vector<9x9x128xbf16> to vector<8x8x128xbf16>
    %68 = vector.shape_cast %67 : vector<8x8x128xbf16> to vector<64x128xbf16>
    %c2_72 = arith.constant 2 : index
    %c2_73 = arith.constant 2 : index
    %c0_74 = arith.constant 0 : index
    %c0_75 = arith.constant 0 : index
    %69 = vector.load %arg3[%c2_72, %c2_73, %c0_74, %c0_75] : memref<3x3x128x128xbf16, #tpu.memory_space<vmem>>, vector<1x1x128x128xbf16>
    %70 = vector.shape_cast %69 : vector<1x1x128x128xbf16> to vector<128x128xbf16>
    %cst_76 = arith.constant dense<0.000000e+00> : vector<64x128xf32>
    %71 = tpu.matmul %68, %70, %cst_76 {dimension_numbers = #tpu.dot_dimension_numbers<[1], [0], [0], [1], [0, 0, 1, 1], [], []>} : vector<64x128xbf16>, vector<128x128xbf16>, vector<64x128xf32> -> vector<64x128xf32>
    %72 = arith.addf %64, %71 : vector<64x128xf32>
    %c0_77 = arith.constant 0 : index
    %c0_78 = arith.constant 0 : index
    %73 = vector.load %arg4[%c0_77, %c0_78] : memref<1x128xf32, #tpu.memory_space<vmem>>, vector<1x128xf32>
    %74 = vector.broadcast %73 : vector<1x128xf32> to vector<64x128xf32>
    %75 = arith.mulf %72, %74 : vector<64x128xf32>
    %c0_79 = arith.constant 0 : index
    %c0_80 = arith.constant 0 : index
    %76 = vector.load %arg5[%c0_79, %c0_80] : memref<1x128xf32, #tpu.memory_space<vmem>>, vector<1x128xf32>
    %77 = vector.broadcast %76 : vector<1x128xf32> to vector<64x128xf32>
    %78 = arith.addf %75, %77 : vector<64x128xf32>
    %cst_81 = arith.constant 0.000000e+00 : f32
    %79 = vector.broadcast %cst_81 : f32 to vector<64x128xf32>
    %80 = arith.maximumf %78, %79 : vector<64x128xf32>
    %81 = arith.truncf %80 : vector<64x128xf32> to vector<64x128xbf16>
    %c0_82 = arith.constant 0 : index
    %c0_83 = arith.constant 0 : index
    %c0_84 = arith.constant 0 : index
    %82 = vector.load %arg6[%c0_82, %c0_83, %c0_84] : memref<1x64x128xbf16, #tpu.memory_space<vmem>>, vector<1x64x128xbf16>
    %83 = vector.shape_cast %82 : vector<1x64x128xbf16> to vector<64x128xbf16>
    %84 = vector.shape_cast %81 : vector<64x128xbf16> to vector<1x64x128xbf16>
    tpu.vector_store %arg6[%c0_82, %c0_83, %c0_84], %84 {strides = array<i32>} : memref<1x64x128xbf16, #tpu.memory_space<vmem>>, vector<1x64x128xbf16>,
    return
  }
  func.func @transform_0(%arg0: i32, %arg1: i32) -> (i32, i32, i32, i32) {
    %c0_i32 = arith.constant 0 : i32
    %c0_i32_0 = arith.constant 0 : i32
    %c0_i32_1 = arith.constant 0 : i32
    %c0_i32_2 = arith.constant 0 : i32
    return %arg0, %c0_i32, %c0_i32_0, %c0_i32_1 : i32, i32, i32, i32
  }
  func.func @transform_1(%arg0: i32, %arg1: i32) -> (i32, i32, i32, i32) {
    %c0_i32 = arith.constant 0 : i32
    %c0_i32_0 = arith.constant 0 : i32
    %c0_i32_1 = arith.constant 0 : i32
    %c0_i32_2 = arith.constant 0 : i32
    return %c0_i32, %c0_i32_0, %c0_i32_1, %arg1 : i32, i32, i32, i32
  }
  func.func @transform_2(%arg0: i32, %arg1: i32) -> (i32, i32) {
    %c0_i32 = arith.constant 0 : i32
    %c0_i32_0 = arith.constant 0 : i32
    return %c0_i32, %arg1 : i32, i32
  }
  func.func @transform_3(%arg0: i32, %arg1: i32) -> (i32, i32) {
    %c0_i32 = arith.constant 0 : i32
    %c0_i32_0 = arith.constant 0 : i32
    return %c0_i32, %arg1 : i32, i32
  }
  func.func @transform_4(%arg0: i32, %arg1: i32) -> (i32, i32, i32) {
    %c0_i32 = arith.constant 0 : i32
    %c0_i32_0 = arith.constant 0 : i32
    return %arg0, %c0_i32, %arg1 : i32, i32, i32
  }
}

module attributes {stable_mosaic.version = 11 : i64} {
  func.func @_mm_kernel(%arg0: i32, %arg1: i32, %arg2: i32, %arg3: memref<128x64xbf16, #tpu.memory_space<vmem>>, %arg4: memref<64x256xbf16, #tpu.memory_space<vmem>>, %arg5: memref<1x256xf32, #tpu.memory_space<vmem>>, %arg6: memref<1x256xf32, #tpu.memory_space<vmem>>, %arg7: memref<128x256xbf16, #tpu.memory_space<vmem>>, %arg8: memref<128x256xf32, #tpu.memory_space<vmem>>) attributes {dimension_semantics = [#tpu.dimension_semantics<parallel>, #tpu.dimension_semantics<parallel>, #tpu.dimension_semantics<arbitrary>], iteration_bounds = array<i64: 1, 1, 1>, scalar_prefetch = 0 : i64, scratch_operands = 1 : i64, tpu.core_type = #tpu.core_type<tc>, window_params = [{transform_indices = @transform_0, window_bounds = array<i64: 128, 64>}, {transform_indices = @transform_1, window_bounds = array<i64: 64, 256>}, {transform_indices = @transform_2, window_bounds = array<i64: 1, 256>}, {transform_indices = @transform_3, window_bounds = array<i64: 1, 256>}, {transform_indices = @transform_4, window_bounds = array<i64: 128, 256>}]} {
    %c0_i32 = arith.constant 0 : i32
    %0 = arith.cmpi eq, %arg2, %c0_i32 : i32
    %1 = arith.extui %0 : i1 to i32
    %c0_i32_0 = arith.constant 0 : i32
    %2 = arith.cmpi ne, %1, %c0_i32_0 : i32
    scf.if %2 {
      %cst_10 = arith.constant 0.000000e+00 : f32
      %12 = vector.broadcast %cst_10 : f32 to vector<128x256xf32>
      %c0_11 = arith.constant 0 : index
      %c0_12 = arith.constant 0 : index
      %13 = vector.load %arg8[%c0_11, %c0_12] : memref<128x256xf32, #tpu.memory_space<vmem>>, vector<128x256xf32>
      tpu.vector_store %arg8[%c0_11, %c0_12], %12 {strides = array<i32>} : memref<128x256xf32, #tpu.memory_space<vmem>>, vector<128x256xf32>,
    } else {
    }
    %c0 = arith.constant 0 : index
    %c0_1 = arith.constant 0 : index
    %3 = vector.load %arg8[%c0, %c0_1] : memref<128x256xf32, #tpu.memory_space<vmem>>, vector<128x256xf32>
    %c0_2 = arith.constant 0 : index
    %c0_3 = arith.constant 0 : index
    %4 = vector.load %arg3[%c0_2, %c0_3] : memref<128x64xbf16, #tpu.memory_space<vmem>>, vector<128x64xbf16>
    %c0_4 = arith.constant 0 : index
    %c0_5 = arith.constant 0 : index
    %5 = vector.load %arg4[%c0_4, %c0_5] : memref<64x256xbf16, #tpu.memory_space<vmem>>, vector<64x256xbf16>
    %cst = arith.constant dense<0.000000e+00> : vector<128x256xf32>
    %6 = tpu.matmul %4, %5, %cst {dimension_numbers = #tpu.dot_dimension_numbers<[1], [0], [0], [1], [0, 0, 1, 1], [], []>} : vector<128x64xbf16>, vector<64x256xbf16>, vector<128x256xf32> -> vector<128x256xf32>
    %7 = arith.addf %3, %6 : vector<128x256xf32>
    %c0_6 = arith.constant 0 : index
    %c0_7 = arith.constant 0 : index
    %8 = vector.load %arg8[%c0_6, %c0_7] : memref<128x256xf32, #tpu.memory_space<vmem>>, vector<128x256xf32>
    tpu.vector_store %arg8[%c0_6, %c0_7], %7 {strides = array<i32>} : memref<128x256xf32, #tpu.memory_space<vmem>>, vector<128x256xf32>,
    %c0_i32_8 = arith.constant 0 : i32
    %9 = arith.cmpi eq, %arg2, %c0_i32_8 : i32
    %10 = arith.extui %9 : i1 to i32
    %c0_i32_9 = arith.constant 0 : i32
    %11 = arith.cmpi ne, %10, %c0_i32_9 : i32
    scf.if %11 {
      %c0_10 = arith.constant 0 : index
      %c0_11 = arith.constant 0 : index
      %12 = vector.load %arg8[%c0_10, %c0_11] : memref<128x256xf32, #tpu.memory_space<vmem>>, vector<128x256xf32>
      %c0_12 = arith.constant 0 : index
      %c0_13 = arith.constant 0 : index
      %13 = vector.load %arg5[%c0_12, %c0_13] : memref<1x256xf32, #tpu.memory_space<vmem>>, vector<1x256xf32>
      %14 = vector.broadcast %13 : vector<1x256xf32> to vector<128x256xf32>
      %15 = arith.mulf %12, %14 : vector<128x256xf32>
      %c0_14 = arith.constant 0 : index
      %c0_15 = arith.constant 0 : index
      %16 = vector.load %arg6[%c0_14, %c0_15] : memref<1x256xf32, #tpu.memory_space<vmem>>, vector<1x256xf32>
      %17 = vector.broadcast %16 : vector<1x256xf32> to vector<128x256xf32>
      %18 = arith.addf %15, %17 : vector<128x256xf32>
      %19 = arith.truncf %18 : vector<128x256xf32> to vector<128x256xbf16>
      %c0_16 = arith.constant 0 : index
      %c0_17 = arith.constant 0 : index
      %20 = vector.load %arg7[%c0_16, %c0_17] : memref<128x256xbf16, #tpu.memory_space<vmem>>, vector<128x256xbf16>
      tpu.vector_store %arg7[%c0_16, %c0_17], %19 {strides = array<i32>} : memref<128x256xbf16, #tpu.memory_space<vmem>>, vector<128x256xbf16>,
    } else {
    }
    return
  }
  func.func @transform_0(%arg0: i32, %arg1: i32, %arg2: i32) -> (i32, i32) {
    %c0_i32 = arith.constant 0 : i32
    return %arg0, %arg2 : i32, i32
  }
  func.func @transform_1(%arg0: i32, %arg1: i32, %arg2: i32) -> (i32, i32) {
    %c0_i32 = arith.constant 0 : i32
    return %arg2, %arg1 : i32, i32
  }
  func.func @transform_2(%arg0: i32, %arg1: i32, %arg2: i32) -> (i32, i32) {
    %c0_i32 = arith.constant 0 : i32
    %c0_i32_0 = arith.constant 0 : i32
    return %c0_i32, %arg1 : i32, i32
  }
  func.func @transform_3(%arg0: i32, %arg1: i32, %arg2: i32) -> (i32, i32) {
    %c0_i32 = arith.constant 0 : i32
    %c0_i32_0 = arith.constant 0 : i32
    return %c0_i32, %arg1 : i32, i32
  }
  func.func @transform_4(%arg0: i32, %arg1: i32, %arg2: i32) -> (i32, i32) {
    %c0_i32 = arith.constant 0 : i32
    return %arg0, %arg1 : i32, i32
  }
}

module attributes {stable_mosaic.version = 11 : i64} {
  func.func @_mm_res_kernel(%arg0: i32, %arg1: i32, %arg2: i32, %arg3: memref<128x128xbf16, #tpu.memory_space<vmem>>, %arg4: memref<128x256xbf16, #tpu.memory_space<vmem>>, %arg5: memref<1x256xf32, #tpu.memory_space<vmem>>, %arg6: memref<1x256xf32, #tpu.memory_space<vmem>>, %arg7: memref<128x256xbf16, #tpu.memory_space<vmem>>, %arg8: memref<128x256xbf16, #tpu.memory_space<vmem>>, %arg9: memref<128x256xf32, #tpu.memory_space<vmem>>) attributes {dimension_semantics = [#tpu.dimension_semantics<parallel>, #tpu.dimension_semantics<parallel>, #tpu.dimension_semantics<arbitrary>], iteration_bounds = array<i64: 1, 1, 1>, scalar_prefetch = 0 : i64, scratch_operands = 1 : i64, tpu.core_type = #tpu.core_type<tc>, window_params = [{transform_indices = @transform_0, window_bounds = array<i64: 128, 128>}, {transform_indices = @transform_1, window_bounds = array<i64: 128, 256>}, {transform_indices = @transform_2, window_bounds = array<i64: 1, 256>}, {transform_indices = @transform_3, window_bounds = array<i64: 1, 256>}, {transform_indices = @transform_4, window_bounds = array<i64: 128, 256>}, {transform_indices = @transform_5, window_bounds = array<i64: 128, 256>}]} {
    %c0_i32 = arith.constant 0 : i32
    %0 = arith.cmpi eq, %arg2, %c0_i32 : i32
    %1 = arith.extui %0 : i1 to i32
    %c0_i32_0 = arith.constant 0 : i32
    %2 = arith.cmpi ne, %1, %c0_i32_0 : i32
    scf.if %2 {
      %cst_10 = arith.constant 0.000000e+00 : f32
      %12 = vector.broadcast %cst_10 : f32 to vector<128x256xf32>
      %c0_11 = arith.constant 0 : index
      %c0_12 = arith.constant 0 : index
      %13 = vector.load %arg9[%c0_11, %c0_12] : memref<128x256xf32, #tpu.memory_space<vmem>>, vector<128x256xf32>
      tpu.vector_store %arg9[%c0_11, %c0_12], %12 {strides = array<i32>} : memref<128x256xf32, #tpu.memory_space<vmem>>, vector<128x256xf32>,
    } else {
    }
    %c0 = arith.constant 0 : index
    %c0_1 = arith.constant 0 : index
    %3 = vector.load %arg9[%c0, %c0_1] : memref<128x256xf32, #tpu.memory_space<vmem>>, vector<128x256xf32>
    %c0_2 = arith.constant 0 : index
    %c0_3 = arith.constant 0 : index
    %4 = vector.load %arg3[%c0_2, %c0_3] : memref<128x128xbf16, #tpu.memory_space<vmem>>, vector<128x128xbf16>
    %c0_4 = arith.constant 0 : index
    %c0_5 = arith.constant 0 : index
    %5 = vector.load %arg4[%c0_4, %c0_5] : memref<128x256xbf16, #tpu.memory_space<vmem>>, vector<128x256xbf16>
    %cst = arith.constant dense<0.000000e+00> : vector<128x256xf32>
    %6 = tpu.matmul %4, %5, %cst {dimension_numbers = #tpu.dot_dimension_numbers<[1], [0], [0], [1], [0, 0, 1, 1], [], []>} : vector<128x128xbf16>, vector<128x256xbf16>, vector<128x256xf32> -> vector<128x256xf32>
    %7 = arith.addf %3, %6 : vector<128x256xf32>
    %c0_6 = arith.constant 0 : index
    %c0_7 = arith.constant 0 : index
    %8 = vector.load %arg9[%c0_6, %c0_7] : memref<128x256xf32, #tpu.memory_space<vmem>>, vector<128x256xf32>
    tpu.vector_store %arg9[%c0_6, %c0_7], %7 {strides = array<i32>} : memref<128x256xf32, #tpu.memory_space<vmem>>, vector<128x256xf32>,
    %c0_i32_8 = arith.constant 0 : i32
    %9 = arith.cmpi eq, %arg2, %c0_i32_8 : i32
    %10 = arith.extui %9 : i1 to i32
    %c0_i32_9 = arith.constant 0 : i32
    %11 = arith.cmpi ne, %10, %c0_i32_9 : i32
    scf.if %11 {
      %c0_10 = arith.constant 0 : index
      %c0_11 = arith.constant 0 : index
      %12 = vector.load %arg9[%c0_10, %c0_11] : memref<128x256xf32, #tpu.memory_space<vmem>>, vector<128x256xf32>
      %c0_12 = arith.constant 0 : index
      %c0_13 = arith.constant 0 : index
      %13 = vector.load %arg5[%c0_12, %c0_13] : memref<1x256xf32, #tpu.memory_space<vmem>>, vector<1x256xf32>
      %14 = vector.broadcast %13 : vector<1x256xf32> to vector<128x256xf32>
      %15 = arith.mulf %12, %14 : vector<128x256xf32>
      %c0_14 = arith.constant 0 : index
      %c0_15 = arith.constant 0 : index
      %16 = vector.load %arg6[%c0_14, %c0_15] : memref<1x256xf32, #tpu.memory_space<vmem>>, vector<1x256xf32>
      %17 = vector.broadcast %16 : vector<1x256xf32> to vector<128x256xf32>
      %18 = arith.addf %15, %17 : vector<128x256xf32>
      %c0_16 = arith.constant 0 : index
      %c0_17 = arith.constant 0 : index
      %19 = vector.load %arg7[%c0_16, %c0_17] : memref<128x256xbf16, #tpu.memory_space<vmem>>, vector<128x256xbf16>
      %20 = arith.extf %19 : vector<128x256xbf16> to vector<128x256xf32>
      %21 = arith.addf %18, %20 : vector<128x256xf32>
      %cst_18 = arith.constant 0.000000e+00 : f32
      %22 = vector.broadcast %cst_18 : f32 to vector<128x256xf32>
      %23 = arith.maximumf %21, %22 : vector<128x256xf32>
      %24 = arith.truncf %23 : vector<128x256xf32> to vector<128x256xbf16>
      %c0_19 = arith.constant 0 : index
      %c0_20 = arith.constant 0 : index
      %25 = vector.load %arg8[%c0_19, %c0_20] : memref<128x256xbf16, #tpu.memory_space<vmem>>, vector<128x256xbf16>
      tpu.vector_store %arg8[%c0_19, %c0_20], %24 {strides = array<i32>} : memref<128x256xbf16, #tpu.memory_space<vmem>>, vector<128x256xbf16>,
    } else {
    }
    return
  }
  func.func @transform_0(%arg0: i32, %arg1: i32, %arg2: i32) -> (i32, i32) {
    %c0_i32 = arith.constant 0 : i32
    return %arg0, %arg2 : i32, i32
  }
  func.func @transform_1(%arg0: i32, %arg1: i32, %arg2: i32) -> (i32, i32) {
    %c0_i32 = arith.constant 0 : i32
    return %arg2, %arg1 : i32, i32
  }
  func.func @transform_2(%arg0: i32, %arg1: i32, %arg2: i32) -> (i32, i32) {
    %c0_i32 = arith.constant 0 : i32
    %c0_i32_0 = arith.constant 0 : i32
    return %c0_i32, %arg1 : i32, i32
  }
  func.func @transform_3(%arg0: i32, %arg1: i32, %arg2: i32) -> (i32, i32) {
    %c0_i32 = arith.constant 0 : i32
    %c0_i32_0 = arith.constant 0 : i32
    return %c0_i32, %arg1 : i32, i32
  }
  func.func @transform_4(%arg0: i32, %arg1: i32, %arg2: i32) -> (i32, i32) {
    %c0_i32 = arith.constant 0 : i32
    return %arg0, %arg1 : i32, i32
  }
  func.func @transform_5(%arg0: i32, %arg1: i32, %arg2: i32) -> (i32, i32) {
    %c0_i32 = arith.constant 0 : i32
    return %arg0, %arg1 : i32, i32
  }
}

module attributes {stable_mosaic.version = 11 : i64} {
  func.func @_mm_kernel(%arg0: i32, %arg1: i32, %arg2: i32, %arg3: memref<128x256xbf16, #tpu.memory_space<vmem>>, %arg4: memref<256x128xbf16, #tpu.memory_space<vmem>>, %arg5: memref<1x128xf32, #tpu.memory_space<vmem>>, %arg6: memref<1x128xf32, #tpu.memory_space<vmem>>, %arg7: memref<128x128xbf16, #tpu.memory_space<vmem>>, %arg8: memref<128x128xf32, #tpu.memory_space<vmem>>) attributes {dimension_semantics = [#tpu.dimension_semantics<parallel>, #tpu.dimension_semantics<parallel>, #tpu.dimension_semantics<arbitrary>], iteration_bounds = array<i64: 1, 1, 1>, scalar_prefetch = 0 : i64, scratch_operands = 1 : i64, tpu.core_type = #tpu.core_type<tc>, window_params = [{transform_indices = @transform_0, window_bounds = array<i64: 128, 256>}, {transform_indices = @transform_1, window_bounds = array<i64: 256, 128>}, {transform_indices = @transform_2, window_bounds = array<i64: 1, 128>}, {transform_indices = @transform_3, window_bounds = array<i64: 1, 128>}, {transform_indices = @transform_4, window_bounds = array<i64: 128, 128>}]} {
    %c0_i32 = arith.constant 0 : i32
    %0 = arith.cmpi eq, %arg2, %c0_i32 : i32
    %1 = arith.extui %0 : i1 to i32
    %c0_i32_0 = arith.constant 0 : i32
    %2 = arith.cmpi ne, %1, %c0_i32_0 : i32
    scf.if %2 {
      %cst_10 = arith.constant 0.000000e+00 : f32
      %12 = vector.broadcast %cst_10 : f32 to vector<128x128xf32>
      %c0_11 = arith.constant 0 : index
      %c0_12 = arith.constant 0 : index
      %13 = vector.load %arg8[%c0_11, %c0_12] : memref<128x128xf32, #tpu.memory_space<vmem>>, vector<128x128xf32>
      tpu.vector_store %arg8[%c0_11, %c0_12], %12 {strides = array<i32>} : memref<128x128xf32, #tpu.memory_space<vmem>>, vector<128x128xf32>,
    } else {
    }
    %c0 = arith.constant 0 : index
    %c0_1 = arith.constant 0 : index
    %3 = vector.load %arg8[%c0, %c0_1] : memref<128x128xf32, #tpu.memory_space<vmem>>, vector<128x128xf32>
    %c0_2 = arith.constant 0 : index
    %c0_3 = arith.constant 0 : index
    %4 = vector.load %arg3[%c0_2, %c0_3] : memref<128x256xbf16, #tpu.memory_space<vmem>>, vector<128x256xbf16>
    %c0_4 = arith.constant 0 : index
    %c0_5 = arith.constant 0 : index
    %5 = vector.load %arg4[%c0_4, %c0_5] : memref<256x128xbf16, #tpu.memory_space<vmem>>, vector<256x128xbf16>
    %cst = arith.constant dense<0.000000e+00> : vector<128x128xf32>
    %6 = tpu.matmul %4, %5, %cst {dimension_numbers = #tpu.dot_dimension_numbers<[1], [0], [0], [1], [0, 0, 1, 1], [], []>} : vector<128x256xbf16>, vector<256x128xbf16>, vector<128x128xf32> -> vector<128x128xf32>
    %7 = arith.addf %3, %6 : vector<128x128xf32>
    %c0_6 = arith.constant 0 : index
    %c0_7 = arith.constant 0 : index
    %8 = vector.load %arg8[%c0_6, %c0_7] : memref<128x128xf32, #tpu.memory_space<vmem>>, vector<128x128xf32>
    tpu.vector_store %arg8[%c0_6, %c0_7], %7 {strides = array<i32>} : memref<128x128xf32, #tpu.memory_space<vmem>>, vector<128x128xf32>,
    %c0_i32_8 = arith.constant 0 : i32
    %9 = arith.cmpi eq, %arg2, %c0_i32_8 : i32
    %10 = arith.extui %9 : i1 to i32
    %c0_i32_9 = arith.constant 0 : i32
    %11 = arith.cmpi ne, %10, %c0_i32_9 : i32
    scf.if %11 {
      %c0_10 = arith.constant 0 : index
      %c0_11 = arith.constant 0 : index
      %12 = vector.load %arg8[%c0_10, %c0_11] : memref<128x128xf32, #tpu.memory_space<vmem>>, vector<128x128xf32>
      %c0_12 = arith.constant 0 : index
      %c0_13 = arith.constant 0 : index
      %13 = vector.load %arg5[%c0_12, %c0_13] : memref<1x128xf32, #tpu.memory_space<vmem>>, vector<1x128xf32>
      %14 = vector.broadcast %13 : vector<1x128xf32> to vector<128x128xf32>
      %15 = arith.mulf %12, %14 : vector<128x128xf32>
      %c0_14 = arith.constant 0 : index
      %c0_15 = arith.constant 0 : index
      %16 = vector.load %arg6[%c0_14, %c0_15] : memref<1x128xf32, #tpu.memory_space<vmem>>, vector<1x128xf32>
      %17 = vector.broadcast %16 : vector<1x128xf32> to vector<128x128xf32>
      %18 = arith.addf %15, %17 : vector<128x128xf32>
      %cst_16 = arith.constant 0.000000e+00 : f32
      %19 = vector.broadcast %cst_16 : f32 to vector<128x128xf32>
      %20 = arith.maximumf %18, %19 : vector<128x128xf32>
      %21 = arith.truncf %20 : vector<128x128xf32> to vector<128x128xbf16>
      %c0_17 = arith.constant 0 : index
      %c0_18 = arith.constant 0 : index
      %22 = vector.load %arg7[%c0_17, %c0_18] : memref<128x128xbf16, #tpu.memory_space<vmem>>, vector<128x128xbf16>
      tpu.vector_store %arg7[%c0_17, %c0_18], %21 {strides = array<i32>} : memref<128x128xbf16, #tpu.memory_space<vmem>>, vector<128x128xbf16>,
    } else {
    }
    return
  }
  func.func @transform_0(%arg0: i32, %arg1: i32, %arg2: i32) -> (i32, i32) {
    %c0_i32 = arith.constant 0 : i32
    return %arg0, %arg2 : i32, i32
  }
  func.func @transform_1(%arg0: i32, %arg1: i32, %arg2: i32) -> (i32, i32) {
    %c0_i32 = arith.constant 0 : i32
    return %arg2, %arg1 : i32, i32
  }
  func.func @transform_2(%arg0: i32, %arg1: i32, %arg2: i32) -> (i32, i32) {
    %c0_i32 = arith.constant 0 : i32
    %c0_i32_0 = arith.constant 0 : i32
    return %c0_i32, %arg1 : i32, i32
  }
  func.func @transform_3(%arg0: i32, %arg1: i32, %arg2: i32) -> (i32, i32) {
    %c0_i32 = arith.constant 0 : i32
    %c0_i32_0 = arith.constant 0 : i32
    return %c0_i32, %arg1 : i32, i32
  }
  func.func @transform_4(%arg0: i32, %arg1: i32, %arg2: i32) -> (i32, i32) {
    %c0_i32 = arith.constant 0 : i32
    return %arg0, %arg1 : i32, i32
  }
}

module attributes {stable_mosaic.version = 11 : i64} {
  func.func @_conv_kxk_kernel(%arg0: i32, %arg1: i32, %arg2: memref<1x10x10x128xbf16, #tpu.memory_space<vmem>>, %arg3: memref<3x3x128x128xbf16, #tpu.memory_space<vmem>>, %arg4: memref<1x128xf32, #tpu.memory_space<vmem>>, %arg5: memref<1x128xf32, #tpu.memory_space<vmem>>, %arg6: memref<1x64x128xbf16, #tpu.memory_space<vmem>>) attributes {dimension_semantics = [#tpu.dimension_semantics<parallel>, #tpu.dimension_semantics<parallel>], iteration_bounds = array<i64: 2, 1>, scalar_prefetch = 0 : i64, scratch_operands = 0 : i64, tpu.core_type = #tpu.core_type<tc>, window_params = [{transform_indices = @transform_0, window_bounds = array<i64: 1, 10, 10, 128>}, {transform_indices = @transform_1, window_bounds = array<i64: 3, 3, 128, 128>}, {transform_indices = @transform_2, window_bounds = array<i64: 1, 128>}, {transform_indices = @transform_3, window_bounds = array<i64: 1, 128>}, {transform_indices = @transform_4, window_bounds = array<i64: 1, 64, 128>}]} {
    %cst = arith.constant 0.000000e+00 : f32
    %0 = vector.broadcast %cst : f32 to vector<64x128xf32>
    %c0 = arith.constant 0 : index
    %c0_0 = arith.constant 0 : index
    %c0_1 = arith.constant 0 : index
    %c0_2 = arith.constant 0 : index
    %1 = vector.load %arg2[%c0, %c0_0, %c0_1, %c0_2] : memref<1x10x10x128xbf16, #tpu.memory_space<vmem>>, vector<1x10x10x128xbf16>
    %2 = vector.shape_cast %1 : vector<1x10x10x128xbf16> to vector<10x10x128xbf16>
    %3 = vector.extract_strided_slice %2 {offsets = [0, 0, 0], sizes = [8, 8, 128], strides = [1, 1, 1]} : vector<10x10x128xbf16> to vector<8x8x128xbf16>
    %4 = vector.shape_cast %3 : vector<8x8x128xbf16> to vector<64x128xbf16>
    %c0_3 = arith.constant 0 : index
    %c0_4 = arith.constant 0 : index
    %c0_5 = arith.constant 0 : index
    %c0_6 = arith.constant 0 : index
    %5 = vector.load %arg3[%c0_3, %c0_4, %c0_5, %c0_6] : memref<3x3x128x128xbf16, #tpu.memory_space<vmem>>, vector<1x1x128x128xbf16>
    %6 = vector.shape_cast %5 : vector<1x1x128x128xbf16> to vector<128x128xbf16>
    %cst_7 = arith.constant dense<0.000000e+00> : vector<64x128xf32>
    %7 = tpu.matmul %4, %6, %cst_7 {dimension_numbers = #tpu.dot_dimension_numbers<[1], [0], [0], [1], [0, 0, 1, 1], [], []>} : vector<64x128xbf16>, vector<128x128xbf16>, vector<64x128xf32> -> vector<64x128xf32>
    %8 = arith.addf %0, %7 : vector<64x128xf32>
    %c0_8 = arith.constant 0 : index
    %c0_9 = arith.constant 0 : index
    %c0_10 = arith.constant 0 : index
    %c0_11 = arith.constant 0 : index
    %9 = vector.load %arg2[%c0_8, %c0_9, %c0_10, %c0_11] : memref<1x10x10x128xbf16, #tpu.memory_space<vmem>>, vector<1x10x10x128xbf16>
    %10 = vector.shape_cast %9 : vector<1x10x10x128xbf16> to vector<10x10x128xbf16>
    %11 = vector.extract_strided_slice %10 {offsets = [0, 1, 0], sizes = [8, 8, 128], strides = [1, 1, 1]} : vector<10x10x128xbf16> to vector<8x8x128xbf16>
    %12 = vector.shape_cast %11 : vector<8x8x128xbf16> to vector<64x128xbf16>
    %c0_12 = arith.constant 0 : index
    %c1 = arith.constant 1 : index
    %c0_13 = arith.constant 0 : index
    %c0_14 = arith.constant 0 : index
    %13 = vector.load %arg3[%c0_12, %c1, %c0_13, %c0_14] : memref<3x3x128x128xbf16, #tpu.memory_space<vmem>>, vector<1x1x128x128xbf16>
    %14 = vector.shape_cast %13 : vector<1x1x128x128xbf16> to vector<128x128xbf16>
    %cst_15 = arith.constant dense<0.000000e+00> : vector<64x128xf32>
    %15 = tpu.matmul %12, %14, %cst_15 {dimension_numbers = #tpu.dot_dimension_numbers<[1], [0], [0], [1], [0, 0, 1, 1], [], []>} : vector<64x128xbf16>, vector<128x128xbf16>, vector<64x128xf32> -> vector<64x128xf32>
    %16 = arith.addf %8, %15 : vector<64x128xf32>
    %c0_16 = arith.constant 0 : index
    %c0_17 = arith.constant 0 : index
    %c0_18 = arith.constant 0 : index
    %c0_19 = arith.constant 0 : index
    %17 = vector.load %arg2[%c0_16, %c0_17, %c0_18, %c0_19] : memref<1x10x10x128xbf16, #tpu.memory_space<vmem>>, vector<1x10x10x128xbf16>
    %18 = vector.shape_cast %17 : vector<1x10x10x128xbf16> to vector<10x10x128xbf16>
    %19 = vector.extract_strided_slice %18 {offsets = [0, 2, 0], sizes = [8, 8, 128], strides = [1, 1, 1]} : vector<10x10x128xbf16> to vector<8x8x128xbf16>
    %20 = vector.shape_cast %19 : vector<8x8x128xbf16> to vector<64x128xbf16>
    %c0_20 = arith.constant 0 : index
    %c2 = arith.constant 2 : index
    %c0_21 = arith.constant 0 : index
    %c0_22 = arith.constant 0 : index
    %21 = vector.load %arg3[%c0_20, %c2, %c0_21, %c0_22] : memref<3x3x128x128xbf16, #tpu.memory_space<vmem>>, vector<1x1x128x128xbf16>
    %22 = vector.shape_cast %21 : vector<1x1x128x128xbf16> to vector<128x128xbf16>
    %cst_23 = arith.constant dense<0.000000e+00> : vector<64x128xf32>
    %23 = tpu.matmul %20, %22, %cst_23 {dimension_numbers = #tpu.dot_dimension_numbers<[1], [0], [0], [1], [0, 0, 1, 1], [], []>} : vector<64x128xbf16>, vector<128x128xbf16>, vector<64x128xf32> -> vector<64x128xf32>
    %24 = arith.addf %16, %23 : vector<64x128xf32>
    %c0_24 = arith.constant 0 : index
    %c0_25 = arith.constant 0 : index
    %c0_26 = arith.constant 0 : index
    %c0_27 = arith.constant 0 : index
    %25 = vector.load %arg2[%c0_24, %c0_25, %c0_26, %c0_27] : memref<1x10x10x128xbf16, #tpu.memory_space<vmem>>, vector<1x10x10x128xbf16>
    %26 = vector.shape_cast %25 : vector<1x10x10x128xbf16> to vector<10x10x128xbf16>
    %27 = vector.extract_strided_slice %26 {offsets = [1, 0, 0], sizes = [8, 8, 128], strides = [1, 1, 1]} : vector<10x10x128xbf16> to vector<8x8x128xbf16>
    %28 = vector.shape_cast %27 : vector<8x8x128xbf16> to vector<64x128xbf16>
    %c1_28 = arith.constant 1 : index
    %c0_29 = arith.constant 0 : index
    %c0_30 = arith.constant 0 : index
    %c0_31 = arith.constant 0 : index
    %29 = vector.load %arg3[%c1_28, %c0_29, %c0_30, %c0_31] : memref<3x3x128x128xbf16, #tpu.memory_space<vmem>>, vector<1x1x128x128xbf16>
    %30 = vector.shape_cast %29 : vector<1x1x128x128xbf16> to vector<128x128xbf16>
    %cst_32 = arith.constant dense<0.000000e+00> : vector<64x128xf32>
    %31 = tpu.matmul %28, %30, %cst_32 {dimension_numbers = #tpu.dot_dimension_numbers<[1], [0], [0], [1], [0, 0, 1, 1], [], []>} : vector<64x128xbf16>, vector<128x128xbf16>, vector<64x128xf32> -> vector<64x128xf32>
    %32 = arith.addf %24, %31 : vector<64x128xf32>
    %c0_33 = arith.constant 0 : index
    %c0_34 = arith.constant 0 : index
    %c0_35 = arith.constant 0 : index
    %c0_36 = arith.constant 0 : index
    %33 = vector.load %arg2[%c0_33, %c0_34, %c0_35, %c0_36] : memref<1x10x10x128xbf16, #tpu.memory_space<vmem>>, vector<1x10x10x128xbf16>
    %34 = vector.shape_cast %33 : vector<1x10x10x128xbf16> to vector<10x10x128xbf16>
    %35 = vector.extract_strided_slice %34 {offsets = [1, 1, 0], sizes = [8, 8, 128], strides = [1, 1, 1]} : vector<10x10x128xbf16> to vector<8x8x128xbf16>
    %36 = vector.shape_cast %35 : vector<8x8x128xbf16> to vector<64x128xbf16>
    %c1_37 = arith.constant 1 : index
    %c1_38 = arith.constant 1 : index
    %c0_39 = arith.constant 0 : index
    %c0_40 = arith.constant 0 : index
    %37 = vector.load %arg3[%c1_37, %c1_38, %c0_39, %c0_40] : memref<3x3x128x128xbf16, #tpu.memory_space<vmem>>, vector<1x1x128x128xbf16>
    %38 = vector.shape_cast %37 : vector<1x1x128x128xbf16> to vector<128x128xbf16>
    %cst_41 = arith.constant dense<0.000000e+00> : vector<64x128xf32>
    %39 = tpu.matmul %36, %38, %cst_41 {dimension_numbers = #tpu.dot_dimension_numbers<[1], [0], [0], [1], [0, 0, 1, 1], [], []>} : vector<64x128xbf16>, vector<128x128xbf16>, vector<64x128xf32> -> vector<64x128xf32>
    %40 = arith.addf %32, %39 : vector<64x128xf32>
    %c0_42 = arith.constant 0 : index
    %c0_43 = arith.constant 0 : index
    %c0_44 = arith.constant 0 : index
    %c0_45 = arith.constant 0 : index
    %41 = vector.load %arg2[%c0_42, %c0_43, %c0_44, %c0_45] : memref<1x10x10x128xbf16, #tpu.memory_space<vmem>>, vector<1x10x10x128xbf16>
    %42 = vector.shape_cast %41 : vector<1x10x10x128xbf16> to vector<10x10x128xbf16>
    %43 = vector.extract_strided_slice %42 {offsets = [1, 2, 0], sizes = [8, 8, 128], strides = [1, 1, 1]} : vector<10x10x128xbf16> to vector<8x8x128xbf16>
    %44 = vector.shape_cast %43 : vector<8x8x128xbf16> to vector<64x128xbf16>
    %c1_46 = arith.constant 1 : index
    %c2_47 = arith.constant 2 : index
    %c0_48 = arith.constant 0 : index
    %c0_49 = arith.constant 0 : index
    %45 = vector.load %arg3[%c1_46, %c2_47, %c0_48, %c0_49] : memref<3x3x128x128xbf16, #tpu.memory_space<vmem>>, vector<1x1x128x128xbf16>
    %46 = vector.shape_cast %45 : vector<1x1x128x128xbf16> to vector<128x128xbf16>
    %cst_50 = arith.constant dense<0.000000e+00> : vector<64x128xf32>
    %47 = tpu.matmul %44, %46, %cst_50 {dimension_numbers = #tpu.dot_dimension_numbers<[1], [0], [0], [1], [0, 0, 1, 1], [], []>} : vector<64x128xbf16>, vector<128x128xbf16>, vector<64x128xf32> -> vector<64x128xf32>
    %48 = arith.addf %40, %47 : vector<64x128xf32>
    %c0_51 = arith.constant 0 : index
    %c0_52 = arith.constant 0 : index
    %c0_53 = arith.constant 0 : index
    %c0_54 = arith.constant 0 : index
    %49 = vector.load %arg2[%c0_51, %c0_52, %c0_53, %c0_54] : memref<1x10x10x128xbf16, #tpu.memory_space<vmem>>, vector<1x10x10x128xbf16>
    %50 = vector.shape_cast %49 : vector<1x10x10x128xbf16> to vector<10x10x128xbf16>
    %51 = vector.extract_strided_slice %50 {offsets = [2, 0, 0], sizes = [8, 8, 128], strides = [1, 1, 1]} : vector<10x10x128xbf16> to vector<8x8x128xbf16>
    %52 = vector.shape_cast %51 : vector<8x8x128xbf16> to vector<64x128xbf16>
    %c2_55 = arith.constant 2 : index
    %c0_56 = arith.constant 0 : index
    %c0_57 = arith.constant 0 : index
    %c0_58 = arith.constant 0 : index
    %53 = vector.load %arg3[%c2_55, %c0_56, %c0_57, %c0_58] : memref<3x3x128x128xbf16, #tpu.memory_space<vmem>>, vector<1x1x128x128xbf16>
    %54 = vector.shape_cast %53 : vector<1x1x128x128xbf16> to vector<128x128xbf16>
    %cst_59 = arith.constant dense<0.000000e+00> : vector<64x128xf32>
    %55 = tpu.matmul %52, %54, %cst_59 {dimension_numbers = #tpu.dot_dimension_numbers<[1], [0], [0], [1], [0, 0, 1, 1], [], []>} : vector<64x128xbf16>, vector<128x128xbf16>, vector<64x128xf32> -> vector<64x128xf32>
    %56 = arith.addf %48, %55 : vector<64x128xf32>
    %c0_60 = arith.constant 0 : index
    %c0_61 = arith.constant 0 : index
    %c0_62 = arith.constant 0 : index
    %c0_63 = arith.constant 0 : index
    %57 = vector.load %arg2[%c0_60, %c0_61, %c0_62, %c0_63] : memref<1x10x10x128xbf16, #tpu.memory_space<vmem>>, vector<1x10x10x128xbf16>
    %58 = vector.shape_cast %57 : vector<1x10x10x128xbf16> to vector<10x10x128xbf16>
    %59 = vector.extract_strided_slice %58 {offsets = [2, 1, 0], sizes = [8, 8, 128], strides = [1, 1, 1]} : vector<10x10x128xbf16> to vector<8x8x128xbf16>
    %60 = vector.shape_cast %59 : vector<8x8x128xbf16> to vector<64x128xbf16>
    %c2_64 = arith.constant 2 : index
    %c1_65 = arith.constant 1 : index
    %c0_66 = arith.constant 0 : index
    %c0_67 = arith.constant 0 : index
    %61 = vector.load %arg3[%c2_64, %c1_65, %c0_66, %c0_67] : memref<3x3x128x128xbf16, #tpu.memory_space<vmem>>, vector<1x1x128x128xbf16>
    %62 = vector.shape_cast %61 : vector<1x1x128x128xbf16> to vector<128x128xbf16>
    %cst_68 = arith.constant dense<0.000000e+00> : vector<64x128xf32>
    %63 = tpu.matmul %60, %62, %cst_68 {dimension_numbers = #tpu.dot_dimension_numbers<[1], [0], [0], [1], [0, 0, 1, 1], [], []>} : vector<64x128xbf16>, vector<128x128xbf16>, vector<64x128xf32> -> vector<64x128xf32>
    %64 = arith.addf %56, %63 : vector<64x128xf32>
    %c0_69 = arith.constant 0 : index
    %c0_70 = arith.constant 0 : index
    %c0_71 = arith.constant 0 : index
    %c0_72 = arith.constant 0 : index
    %65 = vector.load %arg2[%c0_69, %c0_70, %c0_71, %c0_72] : memref<1x10x10x128xbf16, #tpu.memory_space<vmem>>, vector<1x10x10x128xbf16>
    %66 = vector.shape_cast %65 : vector<1x10x10x128xbf16> to vector<10x10x128xbf16>
    %67 = vector.extract_strided_slice %66 {offsets = [2, 2, 0], sizes = [8, 8, 128], strides = [1, 1, 1]} : vector<10x10x128xbf16> to vector<8x8x128xbf16>
    %68 = vector.shape_cast %67 : vector<8x8x128xbf16> to vector<64x128xbf16>
    %c2_73 = arith.constant 2 : index
    %c2_74 = arith.constant 2 : index
    %c0_75 = arith.constant 0 : index
    %c0_76 = arith.constant 0 : index
    %69 = vector.load %arg3[%c2_73, %c2_74, %c0_75, %c0_76] : memref<3x3x128x128xbf16, #tpu.memory_space<vmem>>, vector<1x1x128x128xbf16>
    %70 = vector.shape_cast %69 : vector<1x1x128x128xbf16> to vector<128x128xbf16>
    %cst_77 = arith.constant dense<0.000000e+00> : vector<64x128xf32>
    %71 = tpu.matmul %68, %70, %cst_77 {dimension_numbers = #tpu.dot_dimension_numbers<[1], [0], [0], [1], [0, 0, 1, 1], [], []>} : vector<64x128xbf16>, vector<128x128xbf16>, vector<64x128xf32> -> vector<64x128xf32>
    %72 = arith.addf %64, %71 : vector<64x128xf32>
    %c0_78 = arith.constant 0 : index
    %c0_79 = arith.constant 0 : index
    %73 = vector.load %arg4[%c0_78, %c0_79] : memref<1x128xf32, #tpu.memory_space<vmem>>, vector<1x128xf32>
    %74 = vector.broadcast %73 : vector<1x128xf32> to vector<64x128xf32>
    %75 = arith.mulf %72, %74 : vector<64x128xf32>
    %c0_80 = arith.constant 0 : index
    %c0_81 = arith.constant 0 : index
    %76 = vector.load %arg5[%c0_80, %c0_81] : memref<1x128xf32, #tpu.memory_space<vmem>>, vector<1x128xf32>
    %77 = vector.broadcast %76 : vector<1x128xf32> to vector<64x128xf32>
    %78 = arith.addf %75, %77 : vector<64x128xf32>
    %cst_82 = arith.constant 0.000000e+00 : f32
    %79 = vector.broadcast %cst_82 : f32 to vector<64x128xf32>
    %80 = arith.maximumf %78, %79 : vector<64x128xf32>
    %81 = arith.truncf %80 : vector<64x128xf32> to vector<64x128xbf16>
    %c0_83 = arith.constant 0 : index
    %c0_84 = arith.constant 0 : index
    %c0_85 = arith.constant 0 : index
    %82 = vector.load %arg6[%c0_83, %c0_84, %c0_85] : memref<1x64x128xbf16, #tpu.memory_space<vmem>>, vector<1x64x128xbf16>
    %83 = vector.shape_cast %82 : vector<1x64x128xbf16> to vector<64x128xbf16>
    %84 = vector.shape_cast %81 : vector<64x128xbf16> to vector<1x64x128xbf16>
    tpu.vector_store %arg6[%c0_83, %c0_84, %c0_85], %84 {strides = array<i32>} : memref<1x64x128xbf16, #tpu.memory_space<vmem>>, vector<1x64x128xbf16>,
    return
  }
  func.func @transform_0(%arg0: i32, %arg1: i32) -> (i32, i32, i32, i32) {
    %c0_i32 = arith.constant 0 : i32
    %c0_i32_0 = arith.constant 0 : i32
    %c0_i32_1 = arith.constant 0 : i32
    %c0_i32_2 = arith.constant 0 : i32
    return %arg0, %c0_i32, %c0_i32_0, %c0_i32_1 : i32, i32, i32, i32
  }
  func.func @transform_1(%arg0: i32, %arg1: i32) -> (i32, i32, i32, i32) {
    %c0_i32 = arith.constant 0 : i32
    %c0_i32_0 = arith.constant 0 : i32
    %c0_i32_1 = arith.constant 0 : i32
    %c0_i32_2 = arith.constant 0 : i32
    return %c0_i32, %c0_i32_0, %c0_i32_1, %arg1 : i32, i32, i32, i32
  }
  func.func @transform_2(%arg0: i32, %arg1: i32) -> (i32, i32) {
    %c0_i32 = arith.constant 0 : i32
    %c0_i32_0 = arith.constant 0 : i32
    return %c0_i32, %arg1 : i32, i32
  }
  func.func @transform_3(%arg0: i32, %arg1: i32) -> (i32, i32) {
    %c0_i32 = arith.constant 0 : i32
    %c0_i32_0 = arith.constant 0 : i32
    return %c0_i32, %arg1 : i32, i32
  }
  func.func @transform_4(%arg0: i32, %arg1: i32) -> (i32, i32, i32) {
    %c0_i32 = arith.constant 0 : i32
    %c0_i32_0 = arith.constant 0 : i32
    return %arg0, %c0_i32, %arg1 : i32, i32, i32
  }
}

module attributes {stable_mosaic.version = 11 : i64} {
  func.func @_mm_res_kernel(%arg0: i32, %arg1: i32, %arg2: i32, %arg3: memref<128x128xbf16, #tpu.memory_space<vmem>>, %arg4: memref<128x256xbf16, #tpu.memory_space<vmem>>, %arg5: memref<1x256xf32, #tpu.memory_space<vmem>>, %arg6: memref<1x256xf32, #tpu.memory_space<vmem>>, %arg7: memref<128x256xbf16, #tpu.memory_space<vmem>>, %arg8: memref<128x256xf32, #tpu.memory_space<vmem>>, %arg9: memref<128x256xf32, #tpu.memory_space<vmem>>) attributes {dimension_semantics = [#tpu.dimension_semantics<parallel>, #tpu.dimension_semantics<parallel>, #tpu.dimension_semantics<arbitrary>], iteration_bounds = array<i64: 1, 1, 1>, scalar_prefetch = 0 : i64, scratch_operands = 1 : i64, tpu.core_type = #tpu.core_type<tc>, window_params = [{transform_indices = @transform_0, window_bounds = array<i64: 128, 128>}, {transform_indices = @transform_1, window_bounds = array<i64: 128, 256>}, {transform_indices = @transform_2, window_bounds = array<i64: 1, 256>}, {transform_indices = @transform_3, window_bounds = array<i64: 1, 256>}, {transform_indices = @transform_4, window_bounds = array<i64: 128, 256>}, {transform_indices = @transform_5, window_bounds = array<i64: 128, 256>}]} {
    %c0_i32 = arith.constant 0 : i32
    %0 = arith.cmpi eq, %arg2, %c0_i32 : i32
    %1 = arith.extui %0 : i1 to i32
    %c0_i32_0 = arith.constant 0 : i32
    %2 = arith.cmpi ne, %1, %c0_i32_0 : i32
    scf.if %2 {
      %cst_10 = arith.constant 0.000000e+00 : f32
      %12 = vector.broadcast %cst_10 : f32 to vector<128x256xf32>
      %c0_11 = arith.constant 0 : index
      %c0_12 = arith.constant 0 : index
      %13 = vector.load %arg9[%c0_11, %c0_12] : memref<128x256xf32, #tpu.memory_space<vmem>>, vector<128x256xf32>
      tpu.vector_store %arg9[%c0_11, %c0_12], %12 {strides = array<i32>} : memref<128x256xf32, #tpu.memory_space<vmem>>, vector<128x256xf32>,
    } else {
    }
    %c0 = arith.constant 0 : index
    %c0_1 = arith.constant 0 : index
    %3 = vector.load %arg9[%c0, %c0_1] : memref<128x256xf32, #tpu.memory_space<vmem>>, vector<128x256xf32>
    %c0_2 = arith.constant 0 : index
    %c0_3 = arith.constant 0 : index
    %4 = vector.load %arg3[%c0_2, %c0_3] : memref<128x128xbf16, #tpu.memory_space<vmem>>, vector<128x128xbf16>
    %c0_4 = arith.constant 0 : index
    %c0_5 = arith.constant 0 : index
    %5 = vector.load %arg4[%c0_4, %c0_5] : memref<128x256xbf16, #tpu.memory_space<vmem>>, vector<128x256xbf16>
    %cst = arith.constant dense<0.000000e+00> : vector<128x256xf32>
    %6 = tpu.matmul %4, %5, %cst {dimension_numbers = #tpu.dot_dimension_numbers<[1], [0], [0], [1], [0, 0, 1, 1], [], []>} : vector<128x128xbf16>, vector<128x256xbf16>, vector<128x256xf32> -> vector<128x256xf32>
    %7 = arith.addf %3, %6 : vector<128x256xf32>
    %c0_6 = arith.constant 0 : index
    %c0_7 = arith.constant 0 : index
    %8 = vector.load %arg9[%c0_6, %c0_7] : memref<128x256xf32, #tpu.memory_space<vmem>>, vector<128x256xf32>
    tpu.vector_store %arg9[%c0_6, %c0_7], %7 {strides = array<i32>} : memref<128x256xf32, #tpu.memory_space<vmem>>, vector<128x256xf32>,
    %c0_i32_8 = arith.constant 0 : i32
    %9 = arith.cmpi eq, %arg2, %c0_i32_8 : i32
    %10 = arith.extui %9 : i1 to i32
    %c0_i32_9 = arith.constant 0 : i32
    %11 = arith.cmpi ne, %10, %c0_i32_9 : i32
    scf.if %11 {
      %c0_10 = arith.constant 0 : index
      %c0_11 = arith.constant 0 : index
      %12 = vector.load %arg9[%c0_10, %c0_11] : memref<128x256xf32, #tpu.memory_space<vmem>>, vector<128x256xf32>
      %c0_12 = arith.constant 0 : index
      %c0_13 = arith.constant 0 : index
      %13 = vector.load %arg5[%c0_12, %c0_13] : memref<1x256xf32, #tpu.memory_space<vmem>>, vector<1x256xf32>
      %14 = vector.broadcast %13 : vector<1x256xf32> to vector<128x256xf32>
      %15 = arith.mulf %12, %14 : vector<128x256xf32>
      %c0_14 = arith.constant 0 : index
      %c0_15 = arith.constant 0 : index
      %16 = vector.load %arg6[%c0_14, %c0_15] : memref<1x256xf32, #tpu.memory_space<vmem>>, vector<1x256xf32>
      %17 = vector.broadcast %16 : vector<1x256xf32> to vector<128x256xf32>
      %18 = arith.addf %15, %17 : vector<128x256xf32>
      %c0_16 = arith.constant 0 : index
      %c0_17 = arith.constant 0 : index
      %19 = vector.load %arg7[%c0_16, %c0_17] : memref<128x256xbf16, #tpu.memory_space<vmem>>, vector<128x256xbf16>
      %20 = arith.extf %19 : vector<128x256xbf16> to vector<128x256xf32>
      %21 = arith.addf %18, %20 : vector<128x256xf32>
      %cst_18 = arith.constant 0.000000e+00 : f32
      %22 = vector.broadcast %cst_18 : f32 to vector<128x256xf32>
      %23 = arith.maximumf %21, %22 : vector<128x256xf32>
      %c0_19 = arith.constant 0 : index
      %c0_20 = arith.constant 0 : index
      %24 = vector.load %arg8[%c0_19, %c0_20] : memref<128x256xf32, #tpu.memory_space<vmem>>, vector<128x256xf32>
      tpu.vector_store %arg8[%c0_19, %c0_20], %23 {strides = array<i32>} : memref<128x256xf32, #tpu.memory_space<vmem>>, vector<128x256xf32>,
    } else {
    }
    return
  }
  func.func @transform_0(%arg0: i32, %arg1: i32, %arg2: i32) -> (i32, i32) {
    %c0_i32 = arith.constant 0 : i32
    return %arg0, %arg2 : i32, i32
  }
  func.func @transform_1(%arg0: i32, %arg1: i32, %arg2: i32) -> (i32, i32) {
    %c0_i32 = arith.constant 0 : i32
    return %arg2, %arg1 : i32, i32
  }
  func.func @transform_2(%arg0: i32, %arg1: i32, %arg2: i32) -> (i32, i32) {
    %c0_i32 = arith.constant 0 : i32
    %c0_i32_0 = arith.constant 0 : i32
    return %c0_i32, %arg1 : i32, i32
  }
  func.func @transform_3(%arg0: i32, %arg1: i32, %arg2: i32) -> (i32, i32) {
    %c0_i32 = arith.constant 0 : i32
    %c0_i32_0 = arith.constant 0 : i32
    return %c0_i32, %arg1 : i32, i32
  }
  func.func @transform_4(%arg0: i32, %arg1: i32, %arg2: i32) -> (i32, i32) {
    %c0_i32 = arith.constant 0 : i32
    return %arg0, %arg1 : i32, i32
  }
  func.func @transform_5(%arg0: i32, %arg1: i32, %arg2: i32) -> (i32, i32) {
    %c0_i32 = arith.constant 0 : i32
    return %arg0, %arg1 : i32, i32
  }
}

</mosaic_0001>

<bundles_post_ra>
// kernel: _lambda_.7
= control target key start
LH: loop header
LB: loop body
LE: loop exit
PB: predicated region body
PF: predicated region fallthrough
CT: control target
= control target key end

     0   :  { %s1587_s15 = smov 0   ;;  %s1589_s16 = smov 0   ;;  %s1765_s0 = inlined_call_operand.vmem [shape: bf16[512,64], index: 0, kind: input, shape index: {}]   ;;  %s1766_s1 = inlined_call_operand.vmem [shape: bf16[64,128], index: 1, kind: input, shape index: {}]   ;;  %s1767_s2 = inlined_call_operand.vmem [shape: f32[1,128], index: 2, kind: input, shape index: {}]   ;;  %s1768_s3 = inlined_call_operand.vmem [shape: f32[1,128], index: 3, kind: input, shape index: {}]   ;;  %s1769_s4 = inlined_call_operand.vmem [shape: bf16[512,128], index: 4, kind: output, shape index: {}]  }
   0x1   :  { %s1591_s17 = smov 0  }
   0x2 LB: > { %s33_s18 = sadd.s32 1, %s1556_s16  ;;  %p1222_p0 = scmp.ge.s32.totalorder %s1560_s17, 1  ;;  %s1560_s17 = sphi %s1591_s17, %s14_s17   ;;  %s1556_s16 = sphi %s1589_s16, %s1771_s16   ;;  %s1552_s15 = sphi %s1587_s15, %s1770_s15  }
   0x3   : > { %p35_p1 = scmp.ge.s32.totalorder %s33_s18, 2  ;;  %p221_p2 = scmp.lt.s32.totalorder %s1560_s17, 3 }
   0x5   : > { %s1773_s18 = smov (%p35_p1, %s33_s18), 0  ;;  %p222_p3 = pnand %p1222_p0, %p221_p2 }
   0x6   : > { %v1518_v0 = vld [vmem:[%s1766_s1] sm:$0xff] (!%p222_p3)   ;;  %s1223_s21 = sshll.u32 (!%p222_p3), %s1552_s15, 5  ;;  %v1519_v1 = vld [vmem:[%s1766_s1 + $0x8] sm:$0xff] (!%p222_p3)   ;;  %v1520_v2 = vld [vmem:[%s1766_s1 + $0x10] sm:$0xff] (!%p222_p3)   ;;  %vm513_vm0 = vcmask (!%p222_p3), 523264  }
   0x7   : > { %225 = sbr.rel (%p222_p3) target bundleno = 272 (0x110), region = 36  ;;  %p268_p4 = scmp.lt.s32.totalorder (!%p222_p3), %s1223_s21, 63  ;;  %1446 = vmatprep.subr.bf16.mxu0 (!%p222_p3), %v1518_v0  ;;  %1486 = vmatprep.subr.bf16.mxu1 (!%p222_p3), %v1518_v0  ;;  %v1521_v3 = vld [vmem:[%s1766_s1 + $0x18] sm:$0xff] (!%p222_p3)   ;;  %v1662_v20 = vld [vmem:[%s1767_s2] ss:$0 sm:$0xff] (!%p222_p3) }
   0x8   : > { %1447 = vmatpush3.bf16.msra.mxu0 (!%p222_p3), %v1518_v0  ;;  %1490 = vmatpush3.bf16.msra.mxu1 (!%p222_p3), %v1518_v0  ;;  %v1667_v22 = vld [vmem:[%s1768_s3] ss:$0 sm:$0xff] (!%p222_p3) }
   0x9   : > { %1448 = vmatprep.subr.bf16.mxu0 (!%p222_p3), %v1519_v1  ;;  %1487 = vmatprep.subr.bf16.mxu1 (!%p222_p3), %v1519_v1 }
   0xc   : > { %1449 = vmatpush3.bf16.msra.mxu0 (!%p222_p3), %v1519_v1  ;;  %1491 = vmatpush3.bf16.msra.mxu1 (!%p222_p3), %v1519_v1 }
   0xd   : > { %1450 = vmatprep.subr.bf16.mxu0 (!%p222_p3), %v1520_v2  ;;  %1488 = vmatprep.subr.bf16.mxu1 (!%p222_p3), %v1520_v2 }
   0xe   : > { %s1775_s21 = smov (!%p268_p4, %s1223_s21), 63 }
   0xf   : > { %s1224_s26 = sshll.u32 %s1775_s21, 2 }
  0x10   : > { %s1625_s5 = scalar_lea.vmem %s1765_s0, %s1224_s26  ;;  %1451 = vmatpush3.bf16.msra.mxu0 %v1520_v2  ;;  %1492 = vmatpush3.bf16.msra.mxu1 %v1520_v2  ;;  %s1690_s12 = scalar_lea.vmem %s1769_s4, %s1224_s26 }
  0x11   : > { %v1522_v4 = vld [vmem:[%s1625_s5] sm:$0xff]   ;;  %1452 = vmatprep.subr.bf16.mxu0 %v1521_v3  ;;  %1489 = vmatprep.subr.bf16.mxu1 %v1521_v3  ;;  %v1524_v6 = vld [vmem:[%s1625_s5 + $0x8] sm:$0xff]   ;;  %v1526_v8 = vld [vmem:[%s1625_s5 + $0x10] sm:$0xff]  }
  0x12   : > { %v1523_v5 = vld [vmem:[%s1625_s5 + $0x40] sm:$0xff]   ;;  %1454 = vmatprep.mubr.msk.bf16.mxu0 %vm513_vm0, %v1522_v4  ;;  %v1525_v7 = vld [vmem:[%s1625_s5 + $0x48] sm:$0xff]   ;;  %v1527_v9 = vld [vmem:[%s1625_s5 + $0x50] sm:$0xff]  }
  0x13   : > { %1470 = vmatprep.mubr.msk.bf16.mxu1 %vm513_vm0, %v1523_v5  ;;  %v1528_v10 = vld [vmem:[%s1625_s5 + $0x18] sm:$0xff]   ;;  %v1530_v12 = vld [vmem:[%s1625_s5 + $0x20] sm:$0xff]   ;;  %v1532_v14 = vld [vmem:[%s1625_s5 + $0x28] sm:$0xff]  }
  0x14   : > { %1453 = vmatpush3.bf16.msra.mxu0 %v1521_v3  ;;  %1493 = vmatpush3.bf16.msra.mxu1 %v1521_v3  ;;  %v1529_v11 = vld [vmem:[%s1625_s5 + $0x58] sm:$0xff]   ;;  %v1531_v13 = vld [vmem:[%s1625_s5 + $0x60] sm:$0xff]   ;;  %v1533_v15 = vld [vmem:[%s1625_s5 + $0x68] sm:$0xff]  }
  0x15   : > { %v1534_v16 = vld [vmem:[%s1625_s5 + $0x30] sm:$0xff]   ;;  %v1536_v18 = vld [vmem:[%s1625_s5 + $0x38] sm:$0xff]  }
  0x16   : > { %v1535_v17 = vld [vmem:[%s1625_s5 + $0x70] sm:$0xff]   ;;  %v1537_v19 = vld [vmem:[%s1625_s5 + $0x78] sm:$0xff]  }
  0x17   : > { %1455 = vmatmul.mubr.msk.bf16.vlgmr.msra.gmra.mrb[0].mxu0 %vm513_vm0, %v1524_v6  ;;  %1471 = vmatmul.mubr.msk.bf16.vlgmr.msra.gmra.mrb[0].mxu1 %vm513_vm0, %v1525_v7 }
  0x18   : > { %1458 = vmatprep.mubr.msk.bf16.mxu0 %vm513_vm0, %v1526_v8  ;;  %1474 = vmatprep.mubr.msk.bf16.mxu1 %vm513_vm0, %v1527_v9 }
  0x1f   : > { %1459 = vmatmul.mubr.msk.bf16.gmra.mrb[4].mxu0 %vm513_vm0, %v1528_v10  ;;  %1475 = vmatmul.mubr.msk.bf16.gmra.mrb[4].mxu1 %vm513_vm0, %v1529_v11 }
  0x20   : > { %1462 = vmatprep.mubr.msk.bf16.mxu0 %vm513_vm0, %v1530_v12  ;;  %1478 = vmatprep.mubr.msk.bf16.mxu1 %vm513_vm0, %v1531_v13 }
  0x27   : > { %1463 = vmatmul.mubr.msk.bf16.gmra.mrb[8].mxu0 %vm513_vm0, %v1532_v14  ;;  %1479 = vmatmul.mubr.msk.bf16.gmra.mrb[8].mxu1 %vm513_vm0, %v1533_v15 }
  0x28   : > { %1466 = vmatprep.mubr.msk.bf16.mxu0 %vm513_vm0, %v1534_v16  ;;  %1482 = vmatprep.mubr.msk.bf16.mxu1 %vm513_vm0, %v1535_v17 }
  0x2f   : > { %1467 = vmatmul.mubr.msk.bf16.gmra.mrb[12].mxu0 %vm513_vm0, %v1536_v18  ;;  %1483 = vmatmul.mubr.msk.bf16.gmra.mrb[12].mxu1 %vm513_vm0, %v1537_v19 }
  0xea   : > { %v1456_v21 = vpop.f32.mrb[0].mxu0  ;;  %v1472_v23 = vpop.f32.mrb[0].mxu1 }
  0xeb   : > { %v831_v24 = vmul.f32 %v1456_v21, %v1662_v20  ;;  %v847_v25 = vmul.f32 %v1472_v23, %v1662_v20  ;;  %v596_v26 = vpop.f32.mrb[1].mxu0  ;;  %v660_v27 = vpop.f32.mrb[1].mxu1 }
  0xec   : > { %v829_v28 = vmul.f32 %v1662_v20, %v596_v26  ;;  %v845_v29 = vmul.f32 %v1662_v20, %v660_v27  ;;  %v1457_v30 = vpop.f32.mrb[2].mxu0  ;;  %v1473_v31 = vpop.f32.mrb[2].mxu1 }
  0xed   : > { %v870_v32 = vadd.f32 %v1667_v22, %v831_v24  ;;  %v886_v33 = vadd.f32 %v1667_v22, %v847_v25  ;;  %v832_v34 = vmul.f32 %v1457_v30, %v1662_v20  ;;  %v848_v35 = vmul.f32 %v1473_v31, %v1662_v20  ;;  %v599_v36 = vpop.f32.mrb[3].mxu0  ;;  %v663_v37 = vpop.f32.mrb[3].mxu1 }
  0xee   : > { %v868_v38 = vadd.f32 %v1667_v22, %v829_v28  ;;  %v884_v39 = vadd.f32 %v1667_v22, %v845_v29  ;;  %v830_v40 = vmul.f32 %v1662_v20, %v599_v36  ;;  %v846_v41 = vmul.f32 %v1662_v20, %v663_v37 }
  0xef   : > { %v871_v42 = vadd.f32 %v1667_v22, %v832_v34  ;;  %v887_v43 = vadd.f32 %v1667_v22, %v848_v35  ;;  %v902_v46 = vmax.f32 %v870_v32, 0.0  ;;  %v918_v47 = vmax.f32 %v886_v33, 0.0 }
  0xf0   : > { %v869_v44 = vadd.f32 %v1667_v22, %v830_v40  ;;  %v885_v45 = vadd.f32 %v1667_v22, %v846_v41  ;;  %v900_v50 = vmax.f32 %v868_v38, 0.0  ;;  %v916_v51 = vmax.f32 %v884_v39, 0.0 }
  0xf1   : > { %v903_v48 = vmax.f32 %v871_v42, 0.0  ;;  %v919_v49 = vmax.f32 %v887_v43, 0.0 }
  0xf2   : > { %v901_v52 = vmax.f32 %v869_v44, 0.0  ;;  %v917_v53 = vmax.f32 %v885_v45, 0.0  ;;  %v1460_v54 = vpop.f32.mrb[4].mxu0  ;;  %v1476_v55 = vpop.f32.mrb[4].mxu1 }
  0xf3   : > { %v1339_v56 = vpack.c.bf16 %v903_v48, %v902_v46  ;;  %v1379_v57 = vpack.c.bf16 %v919_v49, %v918_v47  ;;  %v835_v58 = vmul.f32 %v1460_v54, %v1662_v20  ;;  %v851_v59 = vmul.f32 %v1476_v55, %v1662_v20  ;;  %v612_v60 = vpop.f32.mrb[5].mxu0  ;;  %v676_v61 = vpop.f32.mrb[5].mxu1 }
  0xf4   : > { %v1334_v62 = vpack.c.bf16 %v901_v52, %v900_v50  ;;  %v1374_v63 = vpack.c.bf16 %v917_v53, %v916_v51  ;;  %v833_v0 = vmul.f32 %v1662_v20, %v612_v60  ;;  %v849_v1 = vmul.f32 %v1662_v20, %v676_v61  ;;  %v1461_v2 = vpop.f32.mrb[6].mxu0  ;;  %v1477_v3 = vpop.f32.mrb[6].mxu1 }
  0xf5   : > { %1411 = vst [vmem:[%s1690_s12 + $0x8] sm:$0xff] %v1339_v56   ;;  %1419 = vst [vmem:[%s1690_s12 + $0x48] sm:$0xff] %v1379_v57   ;;  %v874_v4 = vadd.f32 %v1667_v22, %v835_v58  ;;  %v890_v5 = vadd.f32 %v1667_v22, %v851_v59  ;;  %v836_v6 = vmul.f32 %v1461_v2, %v1662_v20  ;;  %v615_v8 = vpop.f32.mrb[7].mxu0  ;;  %v679_v9 = vpop.f32.mrb[7].mxu1 }
  0xf6   : > { %v852_v7 = vmul.f32 %v1477_v3, %v1662_v20  ;;  %1335 = vst [vmem:[%s1690_s12] sm:$0xff] %v1334_v62   ;;  %1418 = vst [vmem:[%s1690_s12 + $0x40] sm:$0xff] %v1374_v63   ;;  %v872_v10 = vadd.f32 %v1667_v22, %v833_v0  ;;  %v888_v11 = vadd.f32 %v1667_v22, %v849_v1 }
  0xf7   : > { %v834_v12 = vmul.f32 %v1662_v20, %v615_v8  ;;  %v850_v13 = vmul.f32 %v1662_v20, %v679_v9  ;;  %v875_v14 = vadd.f32 %v1667_v22, %v836_v6  ;;  %v906_v18 = vmax.f32 %v874_v4, 0.0 }
  0xf8   : > { %v891_v15 = vadd.f32 %v1667_v22, %v852_v7  ;;  %v922_v19 = vmax.f32 %v890_v5, 0.0  ;;  %v904_v24 = vmax.f32 %v872_v10, 0.0  ;;  %v920_v25 = vmax.f32 %v888_v11, 0.0 }
  0xf9   : > { %v873_v16 = vadd.f32 %v1667_v22, %v834_v12  ;;  %v889_v17 = vadd.f32 %v1667_v22, %v850_v13  ;;  %v907_v21 = vmax.f32 %v875_v14, 0.0 }
  0xfa   : > { %v923_v23 = vmax.f32 %v891_v15, 0.0  ;;  %v1464_v28 = vpop.f32.mrb[8].mxu0  ;;  %v1480_v29 = vpop.f32.mrb[8].mxu1 }
  0xfb   : > { %v905_v26 = vmax.f32 %v873_v16, 0.0  ;;  %v921_v27 = vmax.f32 %v889_v17, 0.0  ;;  %v1349_v30 = vpack.c.bf16 %v907_v21, %v906_v18  ;;  %v839_v32 = vmul.f32 %v1464_v28, %v1662_v20  ;;  %v628_v34 = vpop.f32.mrb[9].mxu0  ;;  %v692_v35 = vpop.f32.mrb[9].mxu1 }
  0xfc   : > { %v1389_v31 = vpack.c.bf16 %v923_v23, %v922_v19  ;;  %v855_v33 = vmul.f32 %v1480_v29, %v1662_v20  ;;  %v837_v38 = vmul.f32 %v1662_v20, %v628_v34  ;;  %v853_v39 = vmul.f32 %v1662_v20, %v692_v35  ;;  %v1465_v40 = vpop.f32.mrb[10].mxu0  ;;  %v1481_v41 = vpop.f32.mrb[10].mxu1 }
  0xfd   : > { %v1344_v36 = vpack.c.bf16 %v905_v26, %v904_v24  ;;  %v1384_v37 = vpack.c.bf16 %v921_v27, %v920_v25  ;;  %1413 = vst [vmem:[%s1690_s12 + $0x18] sm:$0xff] %v1349_v30   ;;  %v878_v42 = vadd.f32 %v1667_v22, %v839_v32  ;;  %v840_v44 = vmul.f32 %v1465_v40, %v1662_v20  ;;  %v631_v46 = vpop.f32.mrb[11].mxu0  ;;  %v695_v47 = vpop.f32.mrb[11].mxu1 }
  0xfe   : > { %1421 = vst [vmem:[%s1690_s12 + $0x58] sm:$0xff] %v1389_v31   ;;  %v894_v43 = vadd.f32 %v1667_v22, %v855_v33  ;;  %v856_v45 = vmul.f32 %v1481_v41, %v1662_v20  ;;  %v876_v48 = vadd.f32 %v1667_v22, %v837_v38  ;;  %v892_v49 = vadd.f32 %v1667_v22, %v853_v39 }
  0xff   : > { %1412 = vst [vmem:[%s1690_s12 + $0x10] sm:$0xff] %v1344_v36   ;;  %1420 = vst [vmem:[%s1690_s12 + $0x50] sm:$0xff] %v1384_v37   ;;  %v838_v50 = vmul.f32 %v1662_v20, %v631_v46  ;;  %v854_v51 = vmul.f32 %v1662_v20, %v695_v47  ;;  %v879_v52 = vadd.f32 %v1667_v22, %v840_v44  ;;  %v910_v56 = vmax.f32 %v878_v42, 0.0 }
 0x100   : > { %v895_v53 = vadd.f32 %v1667_v22, %v856_v45  ;;  %v926_v57 = vmax.f32 %v894_v43, 0.0  ;;  %v908_v60 = vmax.f32 %v876_v48, 0.0  ;;  %v924_v61 = vmax.f32 %v892_v49, 0.0 }
 0x101   : > { %v877_v54 = vadd.f32 %v1667_v22, %v838_v50  ;;  %v893_v55 = vadd.f32 %v1667_v22, %v854_v51  ;;  %v911_v58 = vmax.f32 %v879_v52, 0.0 }
 0x102   : > { %v927_v59 = vmax.f32 %v895_v53, 0.0  ;;  %v1468_v0 = vpop.f32.mrb[12].mxu0  ;;  %v1484_v1 = vpop.f32.mrb[12].mxu1 }
 0x103   : > { %v909_v62 = vmax.f32 %v877_v54, 0.0  ;;  %v925_v63 = vmax.f32 %v893_v55, 0.0  ;;  %v1359_v2 = vpack.c.bf16 %v911_v58, %v910_v56  ;;  %v843_v4 = vmul.f32 %v1468_v0, %v1662_v20  ;;  %v644_v6 = vpop.f32.mrb[13].mxu0  ;;  %v708_v7 = vpop.f32.mrb[13].mxu1 }
 0x104   : > { %v1399_v3 = vpack.c.bf16 %v927_v59, %v926_v57  ;;  %v859_v5 = vmul.f32 %v1484_v1, %v1662_v20  ;;  %v841_v10 = vmul.f32 %v1662_v20, %v644_v6  ;;  %v857_v11 = vmul.f32 %v1662_v20, %v708_v7  ;;  %v1469_v12 = vpop.f32.mrb[14].mxu0  ;;  %v1485_v13 = vpop.f32.mrb[14].mxu1 }
 0x105   : > { %v1354_v8 = vpack.c.bf16 %v909_v62, %v908_v60  ;;  %v1394_v9 = vpack.c.bf16 %v925_v63, %v924_v61  ;;  %1415 = vst [vmem:[%s1690_s12 + $0x28] sm:$0xff] %v1359_v2   ;;  %v882_v14 = vadd.f32 %v1667_v22, %v843_v4  ;;  %v844_v16 = vmul.f32 %v1469_v12, %v1662_v20  ;;  %v647_v18 = vpop.f32.mrb[15].mxu0  ;;  %v711_v19 = vpop.f32.mrb[15].mxu1 }
 0x106   : > { %1423 = vst [vmem:[%s1690_s12 + $0x68] sm:$0xff] %v1399_v3   ;;  %v898_v15 = vadd.f32 %v1667_v22, %v859_v5  ;;  %v860_v17 = vmul.f32 %v1485_v13, %v1662_v20  ;;  %v880_v21 = vadd.f32 %v1667_v22, %v841_v10  ;;  %v896_v23 = vadd.f32 %v1667_v22, %v857_v11 }
 0x107   : > { %1414 = vst [vmem:[%s1690_s12 + $0x20] sm:$0xff] %v1354_v8   ;;  %1422 = vst [vmem:[%s1690_s12 + $0x60] sm:$0xff] %v1394_v9   ;;  %v842_v24 = vmul.f32 %v1662_v20, %v647_v18  ;;  %v858_v25 = vmul.f32 %v1662_v20, %v711_v19  ;;  %v883_v26 = vadd.f32 %v1667_v22, %v844_v16  ;;  %v914_v30 = vmax.f32 %v882_v14, 0.0 }
 0x108   : > { %v899_v27 = vadd.f32 %v1667_v22, %v860_v17  ;;  %v930_v31 = vmax.f32 %v898_v15, 0.0  ;;  %v912_v34 = vmax.f32 %v880_v21, 0.0  ;;  %v928_v35 = vmax.f32 %v896_v23, 0.0 }
 0x109   : > { %v881_v28 = vadd.f32 %v1667_v22, %v842_v24  ;;  %v897_v29 = vadd.f32 %v1667_v22, %v858_v25  ;;  %v915_v32 = vmax.f32 %v883_v26, 0.0 }
 0x10a   : > { %v931_v33 = vmax.f32 %v899_v27, 0.0 }
 0x10b   : > { %v913_v36 = vmax.f32 %v881_v28, 0.0  ;;  %v929_v20 = vmax.f32 %v897_v29, 0.0  ;;  %v1369_v37 = vpack.c.bf16 %v915_v32, %v914_v30 }
 0x10c   : > { %v1409_v38 = vpack.c.bf16 %v931_v33, %v930_v31 }
 0x10d   : > { %v1364_v39 = vpack.c.bf16 %v913_v36, %v912_v34  ;;  %v1404_v40 = vpack.c.bf16 %v929_v20, %v928_v35  ;;  %1417 = vst [vmem:[%s1690_s12 + $0x38] sm:$0xff] %v1369_v37  }
 0x10e   : > { %1425 = vst [vmem:[%s1690_s12 + $0x78] sm:$0xff] %v1409_v38  }
 0x10f   : > { %1416 = vst [vmem:[%s1690_s12 + $0x30] sm:$0xff] %v1364_v39   ;;  %1424 = vst [vmem:[%s1690_s12 + $0x70] sm:$0xff] %v1404_v40  }
 0x110 PF: > { %s14_s17 = sadd.s32 1, %s1560_s17   ;;  %s1770_s15 = smov %s1556_s16 }
 0x111   : > { %p11_p5 = scmp.ge.s32.totalorder %s14_s17, 4   ;;  %s1771_s16 = smov %s1773_s18 }
 0x113   :  { %13 = sbr.rel (!%p11_p5) target bundleno = 2 (0x2), region = 83 }

// kernel: _lambda_.10
= control target key start
LH: loop header
LB: loop body
LE: loop exit
PB: predicated region body
PF: predicated region fallthrough
CT: control target
= control target key end

     0   :  { %v882_v1 = vmov 0   ;;  %v463_v25 = vlaneseq  ;;  %s1291_s1 = inlined_call_operand.vmem [shape: bf16[128,256], index: 1, kind: input, shape index: {}]   ;;  %s1292_s0 = inlined_call_operand.vmem [shape: bf16[128,128], index: 0, kind: input, shape index: {}]   ;;  %s1293_s2 = inlined_call_operand.vmem [shape: f32[1,256], index: 2, kind: input, shape index: {}]   ;;  %s1294_s3 = inlined_call_operand.vmem [shape: f32[1,256], index: 3, kind: input, shape index: {}]   ;;  %s1295_s4 = inlined_call_operand.vmem [shape: bf16[128,256], index: 4, kind: input, shape index: {}]   ;;  %s1296_s5 = inlined_call_operand.vmem [shape: bf16[128,256], index: 5, kind: output, shape index: {}]  }
   0x1   :  { %v850_v0 = vld [vmem:[%s1291_s1 + $0x4] ss:$8 sps:$4 sm:$0xff]   ;;  %281 = vmatprep.mubr.bf16.mxu0 %v882_v1  ;;  %321 = vmatprep.mubr.bf16.mxu1 %v882_v1  ;;  %v852_v2 = vld [vmem:[%s1291_s1] ss:$8 sps:$4 sm:$0xff]   ;;  %v853_v3 = vld [vmem:[%s1291_s1 + $0x14] ss:$8 sps:$4 sm:$0xff]  }
   0x2   :  { %249 = vmatprep.subr.bf16.mxu0 %v850_v0  ;;  %833 = vmatprep.subr.bf16.mxu1 %v850_v0  ;;  %v855_v4 = vld [vmem:[%s1291_s1 + $0x10] ss:$8 sps:$4 sm:$0xff]   ;;  %v856_v5 = vld [vmem:[%s1291_s1 + $0x24] ss:$8 sps:$4 sm:$0xff]   ;;  %v858_v6 = vld [vmem:[%s1291_s1 + $0x20] ss:$8 sps:$4 sm:$0xff]  }
   0x3   :  { %250 = vmatpush1.bf16.msra.mxu0 %v852_v2  ;;  %841 = vmatpush1.bf16.msra.mxu1 %v852_v2  ;;  %v859_v7 = vld [vmem:[%s1291_s1 + $0x34] ss:$8 sps:$4 sm:$0xff]   ;;  %v861_v8 = vld [vmem:[%s1291_s1 + $0x30] ss:$8 sps:$4 sm:$0xff]   ;;  %v862_v9 = vld [vmem:[%s1291_s1 + $0x44] ss:$8 sps:$4 sm:$0xff]  }
   0x4   :  { %251 = vmatprep.subr.bf16.mxu0 %v853_v3  ;;  %834 = vmatprep.subr.bf16.mxu1 %v853_v3  ;;  %v864_v10 = vld [vmem:[%s1291_s1 + $0x40] ss:$8 sps:$4 sm:$0xff]   ;;  %v865_v11 = vld [vmem:[%s1291_s1 + $0x54] ss:$8 sps:$4 sm:$0xff]   ;;  %v867_v12 = vld [vmem:[%s1291_s1 + $0x50] ss:$8 sps:$4 sm:$0xff]  }
   0x5   :  { %v868_v13 = vld [vmem:[%s1291_s1 + $0x64] ss:$8 sps:$4 sm:$0xff]   ;;  %v870_v14 = vld [vmem:[%s1291_s1 + $0x60] ss:$8 sps:$4 sm:$0xff]   ;;  %v871_v15 = vld [vmem:[%s1291_s1 + $0x74] ss:$8 sps:$4 sm:$0xff]  }
   0x6   :  { %v873_v16 = vld [vmem:[%s1291_s1 + $0x70] ss:$8 sps:$4 sm:$0xff]   ;;  %v874_v17 = vld [vmem:[%s1292_s0] sm:$0xff]   ;;  %v876_v19 = vld [vmem:[%s1292_s0 + $0x8] sm:$0xff]   ;;  %v464_v26 = vshrl.u32 %v463_v25, 7 }
   0x7   :  { %252 = vmatpush1.bf16.msra.mxu0 %v855_v4  ;;  %842 = vmatpush1.bf16.msra.mxu1 %v855_v4  ;;  %v875_v18 = vld [vmem:[%s1292_s0 + $0x20] sm:$0xff]   ;;  %v877_v20 = vld [vmem:[%s1292_s0 + $0x28] sm:$0xff]   ;;  %v878_v21 = vld [vmem:[%s1292_s0 + $0x10] sm:$0xff]  }
   0x8   :  { %253 = vmatprep.subr.bf16.mxu0 %v856_v5  ;;  %835 = vmatprep.subr.bf16.mxu1 %v856_v5  ;;  %v879_v22 = vld [vmem:[%s1292_s0 + $0x30] sm:$0xff]   ;;  %v880_v23 = vld [vmem:[%s1292_s0 + $0x18] sm:$0xff]   ;;  %v465_v27 = vsub.s32 0, %v464_v26  ;;  %v469_v28 = vsub.s32 1, %v464_v26  ;;  %v461_v29 = vld [vmem:[%s1293_s2] sm:$0x3] }
   0x9   :  { %v881_v24 = vld [vmem:[%s1292_s0 + $0x38] sm:$0xff]   ;;  %v505_v30 = vld [vmem:[%s1294_s3] sm:$0x3]  ;;  %v1012_v33 = vld [vmem:[%s1295_s4 + $0x8] sm:$0xff] }
   0xa   :  { %v1002_v31 = vld [vmem:[%s1295_s4] sm:$0xff]  ;;  %v1017_v34 = vld [vmem:[%s1295_s4 + $0x48] sm:$0xff]  ;;  %v1019_v35 = vrot.slane %v461_v29, %v465_v27  ;;  %v1021_v36 = vrot.slane %v505_v30, %v465_v27  ;;  %v1023_v37 = vrot.slane %v461_v29, %v469_v28  ;;  %v1025_v38 = vrot.slane %v505_v30, %v469_v28  ;;  %v1030_v39 = vld [vmem:[%s1295_s4 + $0x10] sm:$0xff] }
   0xb   :  { %254 = vmatpush1.bf16.msra.mxu0 %v858_v6  ;;  %843 = vmatpush1.bf16.msra.mxu1 %v858_v6  ;;  %v1007_v32 = vld [vmem:[%s1295_s4 + $0x40] sm:$0xff]  ;;  %v1035_v40 = vld [vmem:[%s1295_s4 + $0x50] sm:$0xff]  ;;  %v565_v41 = vunpack.c.l.bf16 %v1002_v31  ;;  %v566_v43 = vunpack.c.h.bf16 %v1002_v31  ;;  %v1044_v45 = vld [vmem:[%s1295_s4 + $0x18] sm:$0xff]  ;;  %v567_v47 = vunpack.c.l.bf16 %v1012_v33  ;;  %v583_v48 = vunpack.c.l.bf16 %v1017_v34 }
   0xc   :  { %255 = vmatprep.subr.bf16.mxu0 %v859_v7  ;;  %836 = vmatprep.subr.bf16.mxu1 %v859_v7  ;;  %v581_v42 = vunpack.c.l.bf16 %v1007_v32  ;;  %v582_v44 = vunpack.c.h.bf16 %v1007_v32  ;;  %v1049_v46 = vld [vmem:[%s1295_s4 + $0x58] sm:$0xff]  ;;  %v568_v49 = vunpack.c.h.bf16 %v1012_v33  ;;  %v584_v50 = vunpack.c.h.bf16 %v1017_v34  ;;  %v1058_v51 = vld [vmem:[%s1295_s4 + $0x20] sm:$0xff]  ;;  %v1072_v57 = vld [vmem:[%s1295_s4 + $0x28] sm:$0xff] }
   0xd   :  { %v1063_v52 = vld [vmem:[%s1295_s4 + $0x60] sm:$0xff]  ;;  %v569_v53 = vunpack.c.l.bf16 %v1030_v39  ;;  %v585_v54 = vunpack.c.l.bf16 %v1035_v40  ;;  %v570_v55 = vunpack.c.h.bf16 %v1030_v39  ;;  %v586_v56 = vunpack.c.h.bf16 %v1035_v40  ;;  %v1077_v58 = vld [vmem:[%s1295_s4 + $0x68] sm:$0xff]  ;;  %v1086_v63 = vld [vmem:[%s1295_s4 + $0x30] sm:$0xff] }
   0xe   :  { %v571_v59 = vunpack.c.l.bf16 %v1044_v45  ;;  %v587_v60 = vunpack.c.l.bf16 %v1049_v46  ;;  %v572_v61 = vunpack.c.h.bf16 %v1044_v45  ;;  %v588_v62 = vunpack.c.h.bf16 %v1049_v46  ;;  %v1091_v0 = vld [vmem:[%s1295_s4 + $0x70] sm:$0xff]  ;;  %v1100_v5 = vld [vmem:[%s1295_s4 + $0x38] sm:$0xff] }
   0xf   :  { %256 = vmatpush1.bf16.msra.mxu0 %v861_v8  ;;  %844 = vmatpush1.bf16.msra.mxu1 %v861_v8  ;;  %v589_v2 = vunpack.c.l.bf16 %v1063_v52  ;;  %v574_v3 = vunpack.c.h.bf16 %v1058_v51  ;;  %v590_v4 = vunpack.c.h.bf16 %v1063_v52  ;;  %v1105_v6 = vld [vmem:[%s1295_s4 + $0x78] sm:$0xff]  ;;  %v575_v7 = vunpack.c.l.bf16 %v1072_v57 }
  0x10   :  { %257 = vmatprep.subr.bf16.mxu0 %v862_v9  ;;  %837 = vmatprep.subr.bf16.mxu1 %v862_v9  ;;  %v591_v8 = vunpack.c.l.bf16 %v1077_v58  ;;  %v576_v9 = vunpack.c.h.bf16 %v1072_v57 }
  0x13   :  { %258 = vmatpush1.bf16.msra.mxu0 %v864_v10  ;;  %845 = vmatpush1.bf16.msra.mxu1 %v864_v10  ;;  %v592_v10 = vunpack.c.h.bf16 %v1077_v58 }
  0x14   :  { %259 = vmatprep.subr.bf16.mxu0 %v865_v11  ;;  %838 = vmatprep.subr.bf16.mxu1 %v865_v11 }
  0x17   :  { %260 = vmatpush1.bf16.msra.mxu0 %v867_v12  ;;  %846 = vmatpush1.bf16.msra.mxu1 %v867_v12 }
  0x18   :  { %261 = vmatprep.subr.bf16.mxu0 %v868_v13  ;;  %839 = vmatprep.subr.bf16.mxu1 %v868_v13  ;;  %v577_v13 = vunpack.c.l.bf16 %v1086_v63 }
  0x1b   :  { %262 = vmatpush1.bf16.msra.mxu0 %v870_v14  ;;  %847 = vmatpush1.bf16.msra.mxu1 %v870_v14 }
  0x1c   :  { %263 = vmatprep.subr.bf16.mxu0 %v871_v15  ;;  %840 = vmatprep.subr.bf16.mxu1 %v871_v15 }
  0x1f   :  { %264 = vmatpush1.bf16.msra.mxu0 %v873_v16  ;;  %848 = vmatpush1.bf16.msra.mxu1 %v873_v16 }
  0x22   :  { %282 = vmatmul.mubr.bf16.vlgmr.msra.gmra.mrb[0].mxu0 %v874_v17  ;;  %322 = vmatmul.mubr.bf16.vlgmr.msra.gmra.mrb[0].mxu1 %v875_v18 }
  0x23   :  { %291 = vmatprep.mubr.bf16.mxu0 %v882_v1  ;;  %331 = vmatprep.mubr.bf16.mxu1 %v882_v1 }
  0x2a   :  { %292 = vmatmul.mubr.bf16.gmra.mrb[4].mxu0 %v876_v19  ;;  %332 = vmatmul.mubr.bf16.gmra.mrb[4].mxu1 %v877_v20 }
  0x2b   :  { %301 = vmatprep.mubr.bf16.mxu0 %v882_v1  ;;  %341 = vmatprep.mubr.bf16.mxu1 %v882_v1 }
  0x32   :  { %302 = vmatmul.mubr.bf16.gmra.mrb[8].mxu0 %v878_v21  ;;  %342 = vmatmul.mubr.bf16.gmra.mrb[8].mxu1 %v879_v22 }
  0x33   :  { %311 = vmatprep.mubr.bf16.mxu0 %v882_v1  ;;  %351 = vmatprep.mubr.bf16.mxu1 %v882_v1  ;;  %v573_v1 = vunpack.c.l.bf16 %v1058_v51 }
  0x3a   :  { %312 = vmatmul.mubr.bf16.gmra.mrb[12].mxu0 %v880_v23  ;;  %352 = vmatmul.mubr.bf16.gmra.mrb[12].mxu1 %v881_v24 }
  0xf5   :  { %v283_v11 = vpop.f32.mrb[0].mxu0  ;;  %v323_v12 = vpop.f32.mrb[0].mxu1 }
  0xf6   :  { %v473_v17 = vmul.f32 %v1019_v35, %v283_v11  ;;  %v489_v18 = vmul.f32 %v1019_v35, %v323_v12  ;;  %v285_v19 = vpop.f32.mrb[1].mxu0  ;;  %v325_v20 = vpop.f32.mrb[1].mxu1 }
  0xf7   :  { %v474_v23 = vmul.f32 %v1023_v37, %v285_v19  ;;  %v490_v24 = vmul.f32 %v1023_v37, %v325_v20  ;;  %v287_v25 = vpop.f32.mrb[2].mxu0  ;;  %v327_v26 = vpop.f32.mrb[2].mxu1 }
  0xf8   :  { %v517_v29 = vadd.f32 %v1021_v36, %v473_v17  ;;  %v533_v30 = vadd.f32 %v1021_v36, %v489_v18  ;;  %v475_v11 = vmul.f32 %v1019_v35, %v287_v25  ;;  %v491_v12 = vmul.f32 %v1019_v35, %v327_v26  ;;  %v289_v21 = vpop.f32.mrb[3].mxu0  ;;  %v329_v22 = vpop.f32.mrb[3].mxu1 }
  0xf9   :  { %v518_v19 = vadd.f32 %v1025_v38, %v474_v23  ;;  %v534_v20 = vadd.f32 %v1025_v38, %v490_v24  ;;  %v476_v16 = vmul.f32 %v1023_v37, %v289_v21  ;;  %v492_v27 = vmul.f32 %v1023_v37, %v329_v22 }
  0xfa   :  { %v597_v15 = vadd.f32 %v565_v41, %v517_v29  ;;  %v613_v28 = vadd.f32 %v581_v42, %v533_v30  ;;  %v519_v17 = vadd.f32 %v1021_v36, %v475_v11  ;;  %v535_v18 = vadd.f32 %v1021_v36, %v491_v12 }
  0xfb   :  { %v598_v25 = vadd.f32 %v566_v43, %v518_v19  ;;  %v614_v26 = vadd.f32 %v582_v44, %v534_v20  ;;  %v520_v23 = vadd.f32 %v1025_v38, %v476_v16  ;;  %v536_v24 = vadd.f32 %v1025_v38, %v492_v27 }
  0xfc   :  { %v629_v14 = vmax.f32 %v597_v15, 0.0  ;;  %v645_v21 = vmax.f32 %v613_v28, 0.0  ;;  %v599_v41 = vadd.f32 %v567_v47, %v519_v17  ;;  %v615_v42 = vadd.f32 %v583_v48, %v535_v18 }
  0xfd   :  { %v630_v22 = vmax.f32 %v598_v25, 0.0  ;;  %v646_v29 = vmax.f32 %v614_v26, 0.0  ;;  %v600_v31 = vadd.f32 %v568_v49, %v520_v23  ;;  %v616_v32 = vadd.f32 %v584_v50, %v536_v24  ;;  %v293_v43 = vpop.f32.mrb[4].mxu0  ;;  %v333_v44 = vpop.f32.mrb[4].mxu1 }
  0xfe   :  { %v631_v16 = vmax.f32 %v599_v41, 0.0  ;;  %v647_v27 = vmax.f32 %v615_v42, 0.0  ;;  %v477_v15 = vmul.f32 %v1019_v35, %v293_v43  ;;  %v493_v28 = vmul.f32 %v1019_v35, %v333_v44  ;;  %v295_v47 = vpop.f32.mrb[5].mxu0  ;;  %v335_v30 = vpop.f32.mrb[5].mxu1 }
  0xff   :  { %v817_v11 = vpack.c.bf16 %v630_v22, %v629_v14  ;;  %v825_v48 = vpack.c.bf16 %v646_v29, %v645_v21  ;;  %v632_v12 = vmax.f32 %v600_v31, 0.0  ;;  %v648_v19 = vmax.f32 %v616_v32, 0.0  ;;  %v297_v20 = vpop.f32.mrb[6].mxu0  ;;  %v337_v33 = vpop.f32.mrb[6].mxu1 }
 0x100   :  { %v521_v49 = vadd.f32 %v1021_v36, %v477_v15  ;;  %v537_v34 = vadd.f32 %v1021_v36, %v493_v28  ;;  %v478_v50 = vmul.f32 %v1023_v37, %v295_v47  ;;  %v494_v17 = vmul.f32 %v1023_v37, %v335_v30  ;;  %v299_v18 = vpop.f32.mrb[7].mxu0  ;;  %v339_v25 = vpop.f32.mrb[7].mxu1 }
 0x101   :  { %757 = vst [vmem:[%s1296_s5] sm:$0xff] %v817_v11  ;;  %765 = vst [vmem:[%s1296_s5 + $0x40] sm:$0xff] %v825_v48  ;;  %v818_v14 = vpack.c.bf16 %v632_v12, %v631_v16  ;;  %v826_v26 = vpack.c.bf16 %v648_v19, %v647_v27  ;;  %v479_v23 = vmul.f32 %v1019_v35, %v297_v20 }
 0x102   :  { %v495_v24 = vmul.f32 %v1019_v35, %v337_v33  ;;  %v601_v21 = vadd.f32 %v569_v53, %v521_v49  ;;  %v617_v41 = vadd.f32 %v585_v54, %v537_v34  ;;  %v522_v42 = vadd.f32 %v1025_v38, %v478_v50 }
 0x103   :  { %v538_v22 = vadd.f32 %v1025_v38, %v494_v17  ;;  %758 = vst [vmem:[%s1296_s5 + $0x8] sm:$0xff] %v818_v14  ;;  %766 = vst [vmem:[%s1296_s5 + $0x48] sm:$0xff] %v826_v26  ;;  %v523_v29 = vadd.f32 %v1021_v36, %v479_v23  ;;  %v480_v53 = vmul.f32 %v1023_v37, %v299_v18 }
 0x104   :  { %v539_v31 = vadd.f32 %v1021_v36, %v495_v24  ;;  %v496_v54 = vmul.f32 %v1023_v37, %v339_v25  ;;  %v633_v32 = vmax.f32 %v601_v21, 0.0  ;;  %v649_v43 = vmax.f32 %v617_v41, 0.0 }
 0x105   :  { %v602_v44 = vadd.f32 %v570_v55, %v522_v42  ;;  %v618_v16 = vadd.f32 %v586_v56, %v538_v22  ;;  %v603_v27 = vadd.f32 %v571_v59, %v523_v29  ;;  %v524_v28 = vadd.f32 %v1025_v38, %v480_v53  ;;  %v303_v30 = vpop.f32.mrb[8].mxu0  ;;  %v343_v11 = vpop.f32.mrb[8].mxu1 }
 0x106   :  { %v619_v15 = vadd.f32 %v587_v60, %v539_v31  ;;  %v540_v47 = vadd.f32 %v1025_v38, %v496_v54  ;;  %v481_v39 = vmul.f32 %v1019_v35, %v303_v30  ;;  %v497_v55 = vmul.f32 %v1019_v35, %v343_v11  ;;  %v305_v40 = vpop.f32.mrb[9].mxu0  ;;  %v345_v56 = vpop.f32.mrb[9].mxu1 }
 0x107   :  { %v634_v48 = vmax.f32 %v602_v44, 0.0  ;;  %v650_v12 = vmax.f32 %v618_v16, 0.0  ;;  %v635_v19 = vmax.f32 %v603_v27, 0.0  ;;  %v604_v59 = vadd.f32 %v572_v61, %v524_v28  ;;  %v307_v33 = vpop.f32.mrb[10].mxu0  ;;  %v347_v49 = vpop.f32.mrb[10].mxu1 }
 0x108   :  { %v651_v20 = vmax.f32 %v619_v15, 0.0  ;;  %v620_v60 = vadd.f32 %v588_v62, %v540_v47  ;;  %v525_v17 = vadd.f32 %v1021_v36, %v481_v39  ;;  %v541_v18 = vadd.f32 %v1021_v36, %v497_v55  ;;  %v309_v25 = vpop.f32.mrb[11].mxu0  ;;  %v349_v14 = vpop.f32.mrb[11].mxu1 }
 0x109   :  { %v819_v34 = vpack.c.bf16 %v634_v48, %v633_v32  ;;  %v827_v50 = vpack.c.bf16 %v650_v12, %v649_v43  ;;  %v636_v26 = vmax.f32 %v604_v59, 0.0  ;;  %v482_v24 = vmul.f32 %v1023_v37, %v305_v40 }
 0x10a   :  { %v652_v23 = vmax.f32 %v620_v60, 0.0  ;;  %v498_v45 = vmul.f32 %v1023_v37, %v345_v56  ;;  %v605_v46 = vadd.f32 %v573_v1, %v525_v17  ;;  %v621_v61 = vadd.f32 %v589_v2, %v541_v18 }
 0x10b   :  { %759 = vst [vmem:[%s1296_s5 + $0x10] sm:$0xff] %v819_v34  ;;  %767 = vst [vmem:[%s1296_s5 + $0x50] sm:$0xff] %v827_v50  ;;  %v483_v62 = vmul.f32 %v1019_v35, %v307_v33  ;;  %v499_v21 = vmul.f32 %v1019_v35, %v347_v49  ;;  %v820_v41 = vpack.c.bf16 %v636_v26, %v635_v19  ;;  %v1297_v34 = vunpack.c.l.bf16 %v1091_v0 }
 0x10c   :  { %v828_v42 = vpack.c.bf16 %v652_v23, %v651_v20  ;;  %v526_v22 = vadd.f32 %v1025_v38, %v482_v24  ;;  %v542_v29 = vadd.f32 %v1025_v38, %v498_v45  ;;  %v637_v31 = vmax.f32 %v605_v46, 0.0 }
 0x10d   :  { %v653_v53 = vmax.f32 %v621_v61, 0.0  ;;  %v527_v54 = vadd.f32 %v1021_v36, %v483_v62  ;;  %v543_v32 = vadd.f32 %v1021_v36, %v499_v21  ;;  %760 = vst [vmem:[%s1296_s5 + $0x18] sm:$0xff] %v820_v41  ;;  %v484_v43 = vmul.f32 %v1023_v37, %v309_v25  ;;  %v313_v16 = vpop.f32.mrb[12].mxu0  ;;  %v353_v27 = vpop.f32.mrb[12].mxu1 }
 0x10e   :  { %768 = vst [vmem:[%s1296_s5 + $0x58] sm:$0xff] %v828_v42  ;;  %v606_v1 = vadd.f32 %v574_v3, %v526_v22  ;;  %v622_v2 = vadd.f32 %v590_v4, %v542_v29  ;;  %v500_v44 = vmul.f32 %v1023_v37, %v349_v14  ;;  %v485_v47 = vmul.f32 %v1019_v35, %v313_v16  ;;  %v315_v3 = vpop.f32.mrb[13].mxu0  ;;  %v355_v30 = vpop.f32.mrb[13].mxu1 }
 0x10f   :  { %v607_v15 = vadd.f32 %v575_v7, %v527_v54  ;;  %v623_v28 = vadd.f32 %v591_v8, %v543_v32  ;;  %v501_v51 = vmul.f32 %v1019_v35, %v353_v27  ;;  %v528_v11 = vadd.f32 %v1025_v38, %v484_v43  ;;  %v317_v12 = vpop.f32.mrb[14].mxu0  ;;  %v357_v39 = vpop.f32.mrb[14].mxu1 }
 0x110   :  { %v638_v52 = vmax.f32 %v606_v1, 0.0  ;;  %v654_v4 = vmax.f32 %v622_v2, 0.0  ;;  %v544_v48 = vadd.f32 %v1025_v38, %v500_v44  ;;  %v529_v7 = vadd.f32 %v1021_v36, %v485_v47  ;;  %v319_v56 = vpop.f32.mrb[15].mxu0  ;;  %v359_v19 = vpop.f32.mrb[15].mxu1 }
 0x111   :  { %v639_v55 = vmax.f32 %v607_v15, 0.0  ;;  %v655_v40 = vmax.f32 %v623_v28, 0.0  ;;  %v545_v8 = vadd.f32 %v1021_v36, %v501_v51  ;;  %v608_v60 = vadd.f32 %v576_v9, %v528_v11 }
 0x112   :  { %v821_v20 = vpack.c.bf16 %v638_v52, %v637_v31  ;;  %v829_v59 = vpack.c.bf16 %v654_v4, %v653_v53  ;;  %v624_v33 = vadd.f32 %v592_v10, %v544_v48  ;;  %v609_v49 = vadd.f32 %v577_v13, %v529_v7 }
 0x113   :  { %v625_v50 = vadd.f32 %v1297_v34, %v545_v8  ;;  %v486_v17 = vmul.f32 %v1023_v37, %v315_v3  ;;  %v502_v18 = vmul.f32 %v1023_v37, %v355_v30  ;;  %v640_v57 = vmax.f32 %v608_v60, 0.0 }
 0x114   :  { %761 = vst [vmem:[%s1296_s5 + $0x20] sm:$0xff] %v821_v20  ;;  %769 = vst [vmem:[%s1296_s5 + $0x60] sm:$0xff] %v829_v59  ;;  %v656_v58 = vmax.f32 %v624_v33, 0.0  ;;  %v487_v9 = vmul.f32 %v1019_v35, %v317_v12  ;;  %v503_v10 = vmul.f32 %v1019_v35, %v357_v39  ;;  %v641_v13 = vmax.f32 %v609_v49, 0.0 }
 0x115   :  { %v657_v25 = vmax.f32 %v625_v50, 0.0  ;;  %v530_v14 = vadd.f32 %v1025_v38, %v486_v17  ;;  %v546_v26 = vadd.f32 %v1025_v38, %v502_v18  ;;  %v822_v23 = vpack.c.bf16 %v640_v57, %v639_v55 }
 0x116   :  { %v830_v24 = vpack.c.bf16 %v656_v58, %v655_v40  ;;  %v531_v45 = vadd.f32 %v1021_v36, %v487_v9  ;;  %v547_v46 = vadd.f32 %v1021_v36, %v503_v10  ;;  %v1298_v61 = vunpack.c.h.bf16 %v1086_v63 }
 0x117   :  { %v1299_v21 = vunpack.c.h.bf16 %v1091_v0  ;;  %v488_v35 = vmul.f32 %v1023_v37, %v319_v56  ;;  %v504_v42 = vmul.f32 %v1023_v37, %v359_v19  ;;  %762 = vst [vmem:[%s1296_s5 + $0x28] sm:$0xff] %v822_v23  ;;  %v1300_v36 = vunpack.c.l.bf16 %v1100_v5 }
 0x118   :  { %v610_v62 = vadd.f32 %v1298_v61, %v530_v14  ;;  %770 = vst [vmem:[%s1296_s5 + $0x68] sm:$0xff] %v830_v24  ;;  %v1301_v63 = vunpack.c.l.bf16 %v1105_v6  ;;  %v1302_v43 = vunpack.c.h.bf16 %v1100_v5  ;;  %v1303_v16 = vunpack.c.h.bf16 %v1105_v6 }
 0x119   :  { %v626_v41 = vadd.f32 %v1299_v21, %v546_v26  ;;  %v611_v22 = vadd.f32 %v1300_v36, %v531_v45  ;;  %v532_v53 = vadd.f32 %v1025_v38, %v488_v35  ;;  %v548_v37 = vadd.f32 %v1025_v38, %v504_v42 }
 0x11a   :  { %v627_v29 = vadd.f32 %v1301_v63, %v547_v46  ;;  %v642_v0 = vmax.f32 %v610_v62, 0.0 }
 0x11b   :  { %v658_v31 = vmax.f32 %v626_v41, 0.0  ;;  %v643_v54 = vmax.f32 %v611_v22, 0.0  ;;  %v612_v44 = vadd.f32 %v1302_v43, %v532_v53  ;;  %v628_v27 = vadd.f32 %v1303_v16, %v548_v37 }
 0x11c   :  { %v659_v32 = vmax.f32 %v627_v29, 0.0  ;;  %v823_v1 = vpack.c.bf16 %v642_v0, %v641_v13 }
 0x11d   :  { %v831_v2 = vpack.c.bf16 %v658_v31, %v657_v25  ;;  %v644_v15 = vmax.f32 %v612_v44, 0.0  ;;  %v660_v38 = vmax.f32 %v628_v27, 0.0 }
 0x11e   :  { %763 = vst [vmem:[%s1296_s5 + $0x30] sm:$0xff] %v823_v1 }
 0x11f   :  { %771 = vst [vmem:[%s1296_s5 + $0x70] sm:$0xff] %v831_v2  ;;  %v824_v28 = vpack.c.bf16 %v644_v15, %v643_v54  ;;  %v832_v47 = vpack.c.bf16 %v660_v38, %v659_v32 }
 0x121   :  { %764 = vst [vmem:[%s1296_s5 + $0x38] sm:$0xff] %v824_v28  ;;  %772 = vst [vmem:[%s1296_s5 + $0x78] sm:$0xff] %v832_v47 }

// kernel: _lambda_.9
= control target key start
LH: loop header
LB: loop body
LE: loop exit
PB: predicated region body
PF: predicated region fallthrough
CT: control target
= control target key end

     0   :  { %v716_v1 = vmov 0   ;;  %vm190_vm0 = vcmask 523264   ;;  %v429_v17 = vlaneseq  ;;  %s924_s1 = inlined_call_operand.vmem [shape: bf16[64,256], index: 1, kind: input, shape index: {}]   ;;  %s925_s0 = inlined_call_operand.vmem [shape: bf16[128,64], index: 0, kind: input, shape index: {}]   ;;  %s926_s2 = inlined_call_operand.vmem [shape: f32[1,256], index: 2, kind: input, shape index: {}]   ;;  %s927_s3 = inlined_call_operand.vmem [shape: f32[1,256], index: 3, kind: input, shape index: {}]   ;;  %s928_s4 = inlined_call_operand.vmem [shape: bf16[128,256], index: 4, kind: output, shape index: {}]  }
   0x1   :  { %v696_v0 = vld [vmem:[%s924_s1 + $0x4] ss:$8 sps:$4 sm:$0xff]   ;;  %247 = vmatprep.mubr.bf16.mxu0 %v716_v1  ;;  %287 = vmatprep.mubr.bf16.mxu1 %v716_v1  ;;  %v698_v2 = vld [vmem:[%s924_s1] ss:$8 sps:$4 sm:$0xff]   ;;  %v699_v3 = vld [vmem:[%s924_s1 + $0x14] ss:$8 sps:$4 sm:$0xff]  }
   0x2   :  { %215 = vmatprep.subr.bf16.mxu0 %v696_v0  ;;  %687 = vmatprep.subr.bf16.mxu1 %v696_v0  ;;  %v701_v4 = vld [vmem:[%s924_s1 + $0x10] ss:$8 sps:$4 sm:$0xff]   ;;  %v702_v5 = vld [vmem:[%s924_s1 + $0x24] ss:$8 sps:$4 sm:$0xff]   ;;  %v704_v6 = vld [vmem:[%s924_s1 + $0x20] ss:$8 sps:$4 sm:$0xff]  }
   0x3   :  { %216 = vmatpush1.bf16.msra.mxu0 %v698_v2  ;;  %691 = vmatpush1.bf16.msra.mxu1 %v698_v2  ;;  %v705_v7 = vld [vmem:[%s924_s1 + $0x34] ss:$8 sps:$4 sm:$0xff]   ;;  %v707_v8 = vld [vmem:[%s924_s1 + $0x30] ss:$8 sps:$4 sm:$0xff]   ;;  %v708_v9 = vld [vmem:[%s925_s0] sm:$0xff]   ;;  %v430_v18 = vshrl.u32 %v429_v17, 7 }
   0x4   :  { %217 = vmatprep.subr.bf16.mxu0 %v699_v3  ;;  %688 = vmatprep.subr.bf16.mxu1 %v699_v3  ;;  %v709_v10 = vld [vmem:[%s925_s0 + $0x20] sm:$0xff]   ;;  %v710_v11 = vld [vmem:[%s925_s0 + $0x8] sm:$0xff]   ;;  %v712_v13 = vld [vmem:[%s925_s0 + $0x10] sm:$0xff]  }
   0x5   :  { %v711_v12 = vld [vmem:[%s925_s0 + $0x28] sm:$0xff]   ;;  %v713_v14 = vld [vmem:[%s925_s0 + $0x30] sm:$0xff]   ;;  %v714_v15 = vld [vmem:[%s925_s0 + $0x18] sm:$0xff]   ;;  %v431_v19 = vsub.s32 0, %v430_v18  ;;  %v435_v21 = vsub.s32 1, %v430_v18 }
   0x6   :  { %v715_v16 = vld [vmem:[%s925_s0 + $0x38] sm:$0xff]   ;;  %v427_v20 = vld [vmem:[%s926_s2] sm:$0x3] }
   0x7   :  { %218 = vmatpush1.bf16.msra.mxu0 %v701_v4  ;;  %692 = vmatpush1.bf16.msra.mxu1 %v701_v4  ;;  %v471_v22 = vld [vmem:[%s927_s3] sm:$0x3]  ;;  %v804_v23 = vrot.slane %v427_v20, %v431_v19  ;;  %v806_v24 = vrot.slane %v427_v20, %v435_v21 }
   0x8   :  { %219 = vmatprep.subr.bf16.mxu0 %v702_v5  ;;  %689 = vmatprep.subr.bf16.mxu1 %v702_v5  ;;  %v808_v25 = vrot.slane %v471_v22, %v431_v19  ;;  %v810_v28 = vrot.slane %v471_v22, %v435_v21 }
   0xb   :  { %220 = vmatpush1.bf16.msra.mxu0 %v704_v6  ;;  %693 = vmatpush1.bf16.msra.mxu1 %v704_v6 }
   0xc   :  { %221 = vmatprep.subr.bf16.mxu0 %v705_v7  ;;  %690 = vmatprep.subr.bf16.mxu1 %v705_v7 }
   0xf   :  { %222 = vmatpush1.bf16.msra.mxu0 %v707_v8  ;;  %694 = vmatpush1.bf16.msra.mxu1 %v707_v8 }
  0x12   :  { %647 = vmatmul.mubr.msk.bf16.vlgmr.msra.gmra.mrb[0].mxu0 %vm190_vm0, %v708_v9  ;;  %651 = vmatmul.mubr.msk.bf16.vlgmr.msra.gmra.mrb[0].mxu1 %vm190_vm0, %v709_v10 }
  0x13   :  { %257 = vmatprep.mubr.bf16.mxu0 %v716_v1  ;;  %297 = vmatprep.mubr.bf16.mxu1 %v716_v1 }
  0x1a   :  { %648 = vmatmul.mubr.msk.bf16.gmra.mrb[4].mxu0 %vm190_vm0, %v710_v11  ;;  %652 = vmatmul.mubr.msk.bf16.gmra.mrb[4].mxu1 %vm190_vm0, %v711_v12 }
  0x1b   :  { %267 = vmatprep.mubr.bf16.mxu0 %v716_v1  ;;  %307 = vmatprep.mubr.bf16.mxu1 %v716_v1 }
  0x22   :  { %649 = vmatmul.mubr.msk.bf16.gmra.mrb[8].mxu0 %vm190_vm0, %v712_v13  ;;  %653 = vmatmul.mubr.msk.bf16.gmra.mrb[8].mxu1 %vm190_vm0, %v713_v14 }
  0x23   :  { %277 = vmatprep.mubr.bf16.mxu0 %v716_v1  ;;  %317 = vmatprep.mubr.bf16.mxu1 %v716_v1 }
  0x2a   :  { %650 = vmatmul.mubr.msk.bf16.gmra.mrb[12].mxu0 %vm190_vm0, %v714_v15  ;;  %654 = vmatmul.mubr.msk.bf16.gmra.mrb[12].mxu1 %vm190_vm0, %v715_v16 }
  0xe5   :  { %v249_v26 = vpop.f32.mrb[0].mxu0  ;;  %v289_v27 = vpop.f32.mrb[0].mxu1 }
  0xe6   :  { %v439_v29 = vmul.f32 %v804_v23, %v249_v26  ;;  %v455_v30 = vmul.f32 %v804_v23, %v289_v27  ;;  %v251_v31 = vpop.f32.mrb[1].mxu0  ;;  %v291_v32 = vpop.f32.mrb[1].mxu1 }
  0xe7   :  { %v440_v33 = vmul.f32 %v806_v24, %v251_v31  ;;  %v456_v34 = vmul.f32 %v806_v24, %v291_v32  ;;  %v253_v35 = vpop.f32.mrb[2].mxu0  ;;  %v293_v36 = vpop.f32.mrb[2].mxu1 }
  0xe8   :  { %v483_v37 = vadd.f32 %v808_v25, %v439_v29  ;;  %v499_v38 = vadd.f32 %v808_v25, %v455_v30  ;;  %v441_v39 = vmul.f32 %v804_v23, %v253_v35  ;;  %v457_v40 = vmul.f32 %v804_v23, %v293_v36  ;;  %v255_v41 = vpop.f32.mrb[3].mxu0  ;;  %v295_v42 = vpop.f32.mrb[3].mxu1 }
  0xe9   :  { %v484_v43 = vadd.f32 %v810_v28, %v440_v33  ;;  %v500_v44 = vadd.f32 %v810_v28, %v456_v34  ;;  %v442_v45 = vmul.f32 %v806_v24, %v255_v41  ;;  %v458_v46 = vmul.f32 %v806_v24, %v295_v42 }
  0xea   :  { %v485_v47 = vadd.f32 %v808_v25, %v441_v39  ;;  %v501_v48 = vadd.f32 %v808_v25, %v457_v40 }
  0xeb   :  { %v671_v49 = vpack.c.bf16 %v484_v43, %v483_v37  ;;  %v679_v50 = vpack.c.bf16 %v500_v44, %v499_v38  ;;  %v486_v51 = vadd.f32 %v810_v28, %v442_v45  ;;  %v502_v52 = vadd.f32 %v810_v28, %v458_v46 }
  0xed   :  { %611 = vst [vmem:[%s928_s4] sm:$0xff] %v671_v49  ;;  %619 = vst [vmem:[%s928_s4 + $0x40] sm:$0xff] %v679_v50  ;;  %v672_v53 = vpack.c.bf16 %v486_v51, %v485_v47  ;;  %v680_v54 = vpack.c.bf16 %v502_v52, %v501_v48  ;;  %v259_v55 = vpop.f32.mrb[4].mxu0  ;;  %v299_v56 = vpop.f32.mrb[4].mxu1 }
  0xee   :  { %v443_v57 = vmul.f32 %v804_v23, %v259_v55  ;;  %v459_v58 = vmul.f32 %v804_v23, %v299_v56  ;;  %v261_v59 = vpop.f32.mrb[5].mxu0  ;;  %v301_v60 = vpop.f32.mrb[5].mxu1 }
  0xef   :  { %612 = vst [vmem:[%s928_s4 + $0x8] sm:$0xff] %v672_v53  ;;  %620 = vst [vmem:[%s928_s4 + $0x48] sm:$0xff] %v680_v54  ;;  %v444_v61 = vmul.f32 %v806_v24, %v261_v59  ;;  %v460_v62 = vmul.f32 %v806_v24, %v301_v60  ;;  %v263_v63 = vpop.f32.mrb[6].mxu0  ;;  %v303_v0 = vpop.f32.mrb[6].mxu1 }
  0xf0   :  { %v487_v1 = vadd.f32 %v808_v25, %v443_v57  ;;  %v503_v2 = vadd.f32 %v808_v25, %v459_v58  ;;  %v445_v3 = vmul.f32 %v804_v23, %v263_v63  ;;  %v461_v4 = vmul.f32 %v804_v23, %v303_v0  ;;  %v265_v5 = vpop.f32.mrb[7].mxu0  ;;  %v305_v6 = vpop.f32.mrb[7].mxu1 }
  0xf1   :  { %v488_v7 = vadd.f32 %v810_v28, %v444_v61  ;;  %v504_v8 = vadd.f32 %v810_v28, %v460_v62  ;;  %v446_v9 = vmul.f32 %v806_v24, %v265_v5  ;;  %v462_v10 = vmul.f32 %v806_v24, %v305_v6 }
  0xf2   :  { %v489_v11 = vadd.f32 %v808_v25, %v445_v3  ;;  %v505_v12 = vadd.f32 %v808_v25, %v461_v4 }
  0xf3   :  { %v673_v13 = vpack.c.bf16 %v488_v7, %v487_v1  ;;  %v681_v14 = vpack.c.bf16 %v504_v8, %v503_v2  ;;  %v490_v15 = vadd.f32 %v810_v28, %v446_v9  ;;  %v506_v16 = vadd.f32 %v810_v28, %v462_v10 }
  0xf5   :  { %613 = vst [vmem:[%s928_s4 + $0x10] sm:$0xff] %v673_v13  ;;  %621 = vst [vmem:[%s928_s4 + $0x50] sm:$0xff] %v681_v14  ;;  %v674_v17 = vpack.c.bf16 %v490_v15, %v489_v11  ;;  %v682_v18 = vpack.c.bf16 %v506_v16, %v505_v12  ;;  %v269_v19 = vpop.f32.mrb[8].mxu0  ;;  %v309_v20 = vpop.f32.mrb[8].mxu1 }
  0xf6   :  { %v447_v21 = vmul.f32 %v804_v23, %v269_v19  ;;  %v463_v22 = vmul.f32 %v804_v23, %v309_v20  ;;  %v271_v26 = vpop.f32.mrb[9].mxu0  ;;  %v311_v27 = vpop.f32.mrb[9].mxu1 }
  0xf7   :  { %614 = vst [vmem:[%s928_s4 + $0x18] sm:$0xff] %v674_v17  ;;  %622 = vst [vmem:[%s928_s4 + $0x58] sm:$0xff] %v682_v18  ;;  %v448_v29 = vmul.f32 %v806_v24, %v271_v26  ;;  %v464_v30 = vmul.f32 %v806_v24, %v311_v27  ;;  %v273_v31 = vpop.f32.mrb[10].mxu0  ;;  %v313_v32 = vpop.f32.mrb[10].mxu1 }
  0xf8   :  { %v491_v33 = vadd.f32 %v808_v25, %v447_v21  ;;  %v507_v34 = vadd.f32 %v808_v25, %v463_v22  ;;  %v449_v35 = vmul.f32 %v804_v23, %v273_v31  ;;  %v465_v36 = vmul.f32 %v804_v23, %v313_v32  ;;  %v275_v37 = vpop.f32.mrb[11].mxu0  ;;  %v315_v38 = vpop.f32.mrb[11].mxu1 }
  0xf9   :  { %v492_v39 = vadd.f32 %v810_v28, %v448_v29  ;;  %v508_v40 = vadd.f32 %v810_v28, %v464_v30  ;;  %v450_v41 = vmul.f32 %v806_v24, %v275_v37  ;;  %v466_v42 = vmul.f32 %v806_v24, %v315_v38 }
  0xfa   :  { %v493_v43 = vadd.f32 %v808_v25, %v449_v35  ;;  %v509_v44 = vadd.f32 %v808_v25, %v465_v36 }
  0xfb   :  { %v675_v45 = vpack.c.bf16 %v492_v39, %v491_v33  ;;  %v683_v46 = vpack.c.bf16 %v508_v40, %v507_v34  ;;  %v494_v47 = vadd.f32 %v810_v28, %v450_v41  ;;  %v510_v48 = vadd.f32 %v810_v28, %v466_v42 }
  0xfd   :  { %615 = vst [vmem:[%s928_s4 + $0x20] sm:$0xff] %v675_v45  ;;  %623 = vst [vmem:[%s928_s4 + $0x60] sm:$0xff] %v683_v46  ;;  %v676_v49 = vpack.c.bf16 %v494_v47, %v493_v43  ;;  %v684_v50 = vpack.c.bf16 %v510_v48, %v509_v44  ;;  %v279_v51 = vpop.f32.mrb[12].mxu0  ;;  %v319_v52 = vpop.f32.mrb[12].mxu1 }
  0xfe   :  { %v451_v53 = vmul.f32 %v804_v23, %v279_v51  ;;  %v467_v54 = vmul.f32 %v804_v23, %v319_v52  ;;  %v281_v55 = vpop.f32.mrb[13].mxu0  ;;  %v321_v56 = vpop.f32.mrb[13].mxu1 }
  0xff   :  { %616 = vst [vmem:[%s928_s4 + $0x28] sm:$0xff] %v676_v49  ;;  %624 = vst [vmem:[%s928_s4 + $0x68] sm:$0xff] %v684_v50  ;;  %v452_v57 = vmul.f32 %v806_v24, %v281_v55  ;;  %v468_v58 = vmul.f32 %v806_v24, %v321_v56  ;;  %v283_v59 = vpop.f32.mrb[14].mxu0  ;;  %v323_v60 = vpop.f32.mrb[14].mxu1 }
 0x100   :  { %v495_v61 = vadd.f32 %v808_v25, %v451_v53  ;;  %v511_v62 = vadd.f32 %v808_v25, %v467_v54  ;;  %v453_v63 = vmul.f32 %v804_v23, %v283_v59  ;;  %v469_v0 = vmul.f32 %v804_v23, %v323_v60  ;;  %v285_v1 = vpop.f32.mrb[15].mxu0  ;;  %v325_v2 = vpop.f32.mrb[15].mxu1 }
 0x101   :  { %v496_v3 = vadd.f32 %v810_v28, %v452_v57  ;;  %v512_v4 = vadd.f32 %v810_v28, %v468_v58  ;;  %v454_v5 = vmul.f32 %v806_v24, %v285_v1  ;;  %v470_v6 = vmul.f32 %v806_v24, %v325_v2 }
 0x102   :  { %v497_v7 = vadd.f32 %v808_v25, %v453_v63  ;;  %v513_v8 = vadd.f32 %v808_v25, %v469_v0 }
 0x103   :  { %v677_v9 = vpack.c.bf16 %v496_v3, %v495_v61  ;;  %v685_v10 = vpack.c.bf16 %v512_v4, %v511_v62  ;;  %v498_v11 = vadd.f32 %v810_v28, %v454_v5  ;;  %v514_v23 = vadd.f32 %v810_v28, %v470_v6 }
 0x105   :  { %617 = vst [vmem:[%s928_s4 + $0x30] sm:$0xff] %v677_v9  ;;  %625 = vst [vmem:[%s928_s4 + $0x70] sm:$0xff] %v685_v10  ;;  %v678_v12 = vpack.c.bf16 %v498_v11, %v497_v7  ;;  %v686_v24 = vpack.c.bf16 %v514_v23, %v513_v8 }
 0x107   :  { %618 = vst [vmem:[%s928_s4 + $0x38] sm:$0xff] %v678_v12  ;;  %626 = vst [vmem:[%s928_s4 + $0x78] sm:$0xff] %v686_v24 }

// kernel: _lambda_.8
= control target key start
LH: loop header
LB: loop body
LE: loop exit
PB: predicated region body
PF: predicated region fallthrough
CT: control target
= control target key end

     0   :  { %s3040_s15 = smov 0   ;;  %s3042_s16 = smov 0   ;;  %s3580_s0 = inlined_call_operand.vmem [shape: bf16[8,9,9,128], index: 0, kind: input, shape index: {}]   ;;  %s3581_s1 = inlined_call_operand.vmem [shape: bf16[3,3,128,128], index: 1, kind: input, shape index: {}]   ;;  %s3582_s2 = inlined_call_operand.vmem [shape: f32[1,128], index: 2, kind: input, shape index: {}]   ;;  %s3583_s3 = inlined_call_operand.vmem [shape: f32[1,128], index: 3, kind: input, shape index: {}]   ;;  %s3584_s4 = inlined_call_operand.vmem [shape: bf16[2,64,128], index: 4, kind: output, shape index: {}]  }
   0x1   :  { %s3044_s17 = smov 0  }
   0x2 LB: > { %s26_s18 = sadd.s32 1, %s3009_s16  ;;  %p2148_p0 = scmp.ge.s32.totalorder %s3013_s17, 1  ;;  %s3013_s17 = sphi %s3044_s17, %s14_s17   ;;  %s3009_s16 = sphi %s3042_s16, %s3588_s16   ;;  %s3005_s15 = sphi %s3040_s15, %s3587_s15  }
   0x3   : > { %p28_p1 = scmp.ge.s32.totalorder %s26_s18, 2  ;;  %p203_p2 = scmp.lt.s32.totalorder %s3013_s17, 3 }
   0x5   : > { %s3590_s18 = smov (%p28_p1, %s26_s18), 0  ;;  %p204_p3 = pnand %p2148_p0, %p203_p2 }
   0x6   : > { %v2895_v0 = vld [vmem:[%s3581_s1 + $0x40] sm:$0xff] (!%p204_p3)   ;;  %s2149_s21 = sshll.u32 (!%p204_p3), %s3005_s15, 2  ;;  %v2897_v2 = vld [vmem:[%s3581_s1 + $0x48] sm:$0xff] (!%p204_p3)   ;;  %v2899_v4 = vld [vmem:[%s3581_s1 + $0x50] sm:$0xff] (!%p204_p3)   ;;  %vm604_vm0 = vsmask.f32 (!%p204_p3), 3328 }
   0x7   : > { %207 = sbr.rel (%p204_p3) target bundleno = 394 (0x18a), region = 36  ;;  %v2896_v1 = vld [vmem:[%s3581_s1 + $0x100] sm:$0xff] (!%p204_p3)   ;;  %p244_p4 = scmp.lt.s32.totalorder (!%p204_p3), %s2149_s21, 7  ;;  %2574 = vmatprep.subr.bf16.mxu1 (!%p204_p3), %v2895_v0  ;;  %v2898_v3 = vld [vmem:[%s3581_s1 + $0x108] sm:$0xff] (!%p204_p3)   ;;  %v2900_v5 = vld [vmem:[%s3581_s1 + $0x110] sm:$0xff] (!%p204_p3)  }
   0x8   : > { %2670 = vmatprep.subr.bf16.mxu0 (!%p204_p3), %v2896_v1  ;;  %2575 = vmatpush3.bf16.msra.mxu1 (!%p204_p3), %v2895_v0  ;;  %v2901_v6 = vld [vmem:[%s3581_s1 + $0x58] sm:$0xff] (!%p204_p3)   ;;  %v2903_v8 = vld [vmem:[%s3581_s1 + $0x60] sm:$0xff] (!%p204_p3)   ;;  %v2905_v10 = vld [vmem:[%s3581_s1 + $0x68] sm:$0xff] (!%p204_p3)   ;;  %vm605_vm1 = vsmask.f32 (!%p204_p3), 7440  ;;  %p260_p5 = scmp.lt.s32.totalorder (!%p204_p3), %s3005_s15, 1 }
   0x9   : > { %2671 = vmatpush3.bf16.msra.mxu0 (!%p204_p3), %v2896_v1  ;;  %2576 = vmatprep.subr.bf16.mxu1 (!%p204_p3), %v2897_v2  ;;  %v2902_v7 = vld [vmem:[%s3581_s1 + $0x118] sm:$0xff] (!%p204_p3)   ;;  %v2904_v9 = vld [vmem:[%s3581_s1 + $0x120] sm:$0xff] (!%p204_p3)   ;;  %v2906_v14 = vld [vmem:[%s3581_s1 + $0x128] sm:$0xff] (!%p204_p3)  }
   0xa   : > { %2672 = vmatprep.subr.bf16.mxu0 (!%p204_p3), %v2898_v3  ;;  %v2907_v18 = vld [vmem:[%s3581_s1 + $0x70] sm:$0xff] (!%p204_p3)   ;;  %v2909_v20 = vld [vmem:[%s3581_s1 + $0x78] sm:$0xff] (!%p204_p3)   ;;  %v2913_v23 = vld [vmem:[%s3581_s1] sm:$0xff] (!%p204_p3)  }
   0xb   : > { %v2908_v19 = vld [vmem:[%s3581_s1 + $0x130] sm:$0xff] (!%p204_p3)   ;;  %v2910_v21 = vld [vmem:[%s3581_s1 + $0x138] sm:$0xff] (!%p204_p3)   ;;  %v2915_v24 = vld [vmem:[%s3581_s1 + $0x140] sm:$0xff] (!%p204_p3)  }
   0xc   : > { %2577 = vmatpush3.bf16.msra.mxu1 (!%p204_p3), %v2897_v2  ;;  %v2918_v29 = vld [vmem:[%s3581_s1 + $0x8] sm:$0xff] (!%p204_p3)   ;;  %v2920_v36 = vld [vmem:[%s3581_s1 + $0x10] sm:$0xff] (!%p204_p3)   ;;  %v2922_v43 = vld [vmem:[%s3581_s1 + $0x18] sm:$0xff] (!%p204_p3)  }
   0xd   : > { %2673 = vmatpush3.bf16.msra.mxu0 (!%p204_p3), %v2898_v3  ;;  %2578 = vmatprep.subr.bf16.mxu1 (!%p204_p3), %v2899_v4  ;;  %v2919_v31 = vld [vmem:[%s3581_s1 + $0x148] sm:$0xff] (!%p204_p3)   ;;  %v2921_v38 = vld [vmem:[%s3581_s1 + $0x150] sm:$0xff] (!%p204_p3)   ;;  %v2923_v44 = vld [vmem:[%s3581_s1 + $0x158] sm:$0xff] (!%p204_p3)  }
   0xe   : > { %s3592_s21 = smov (!%p244_p4, %s2149_s21), 7  ;;  %2674 = vmatprep.subr.bf16.mxu0 %v2900_v5  ;;  %v2924_v46 = vld [vmem:[%s3581_s1 + $0x20] sm:$0xff]   ;;  %v2926_v60 = vld [vmem:[%s3581_s1 + $0x28] sm:$0xff]   ;;  %vm3218_vm2 = vmor %vm604_vm0, %vm605_vm1  ;;  %s3594_s15 = smov (!%p260_p5, %s3005_s15), 1 }
   0xf   : > { %s2870_s10 = smul.u32 72, %s3592_s21  ;;  %v2925_v49 = vld [vmem:[%s3581_s1 + $0x160] sm:$0xff]   ;;  %v2927_v0 = vld [vmem:[%s3581_s1 + $0x168] sm:$0xff]   ;;  %s2434_s23 = sshll.u32 %s3594_s15, 5 }
  0x10   : > { %2579 = vmatpush3.bf16.msra.mxu1 %v2899_v4  ;;  %s267_s26 = scalar_lea.vmem %s3584_s4, %s2434_s23 }
  0x11   : > { %2675 = vmatpush3.bf16.msra.mxu0 %v2900_v5  ;;  %2580 = vmatprep.subr.bf16.mxu1 %v2901_v6  ;;  %s3094_s22 = scalar_lea.vmem %s3580_s0, %s2870_s10 }
  0x12   : > { %2676 = vmatprep.subr.bf16.mxu0 %v2902_v7  ;;  %v2153_v11 = vld [vmem:[%s3094_s22 + $0x48] sm:$0xf]  ;;  %v3101_v12 = vld [vmem:[%s3094_s22 + $0x50] sm:$0xf]  ;;  %v3104_v13 = vld [vmem:[%s3094_s22 + $0x58] sm:$0xf] }
  0x13   : > { %v2178_v15 = vcombine.low %v2153_v11, %v3101_v12  ;;  %v2382_v16 = vcombine.low %v3101_v12, %v3104_v13  ;;  %v2914_v17 = vld [vmem:[%s3094_s22 + $0xd8] ss:$8 sps:$4 sm:$0xff]   ;;  %v2917_v26 = vld [vmem:[%s3094_s22 + $0xe8] ss:$8 sps:$4 sm:$0xff]   ;;  %v2231_v48 = vld [vmem:[%s3094_s22 + $0x94] sm:$0x1] }
  0x14   : > { %2581 = vmatpush3.bf16.msra.mxu1 %v2901_v6  ;;  %2686 = vmatprep.mubr.bf16.mxu0 %v2914_v17  ;;  %v3126_v22 = vld [vmem:[%s3094_s22 + $0x60] sm:$0xf]  ;;  %v3138_v27 = vld [vmem:[%s3094_s22 + $0x68] sm:$0xf]  ;;  %v3141_v28 = vld [vmem:[%s3094_s22 + $0x70] sm:$0xf] }
  0x15   : > { %2677 = vmatpush3.bf16.msra.mxu0 %v2902_v7  ;;  %2582 = vmatprep.subr.bf16.mxu1 %v2903_v8  ;;  %v2179_v25 = vcombine.low %v3104_v13, %v3126_v22  ;;  %v2383_v30 = vcombine.low %v3126_v22, %v3138_v27  ;;  %v2180_v32 = vcombine.low %v3138_v27, %v3141_v28  ;;  %v2931_v33 = vld [vmem:[%s3094_s22 + $0xf8] ss:$8 sps:$4 sm:$0xff]   ;;  %v2934_v41 = vld [vmem:[%s3094_s22 + $0x108] ss:$8 sps:$4 sm:$0xff]   ;;  %v2233_v51 = vld [vmem:[%s3094_s22 + $0x9c] sm:$0x1] }
  0x16   : > { %2678 = vmatprep.subr.bf16.mxu0 %v2904_v9  ;;  %2590 = vmatprep.mubr.bf16.mxu1 %v2178_v15  ;;  %v3155_v34 = vld [vmem:[%s3094_s22 + $0x78] sm:$0xf]  ;;  %v3158_v35 = vld [vmem:[%s3094_s22 + $0x80] sm:$0xf]  ;;  %v3175_v42 = vld [vmem:[%s3094_s22 + $0x8] sm:$0xf] }
  0x17   : > { %v2384_v37 = vcombine.low %v3141_v28, %v3155_v34  ;;  %v2181_v39 = vcombine.low %v3155_v34, %v3158_v35  ;;  %v3171_v40 = vld [vmem:[%s3094_s22] sm:$0xf]  ;;  %v3189_v47 = vld [vmem:[%s3094_s22 + $0x90] sm:$0xf]  ;;  %v3196_v50 = vld [vmem:[%s3094_s22 + $0x98] sm:$0xf] }
  0x18   : > { %2583 = vmatpush3.bf16.msra.mxu1 %v2903_v8  ;;  %v2190_v45 = vcombine.low %v3171_v40, %v3175_v42  ;;  %v1224_v52 = vshrl.u32 %v3189_v47, 16  ;;  %v1227_v53 = vshll.u32 %v3189_v47, 16  ;;  %v1233_v54 = vshll.u32 %v2231_v48, 16  ;;  %v3212_v4 = vld [vmem:[%s3094_s22 + $0xa0] sm:$0xf]  ;;  %v2972_v12 = vld [vmem:[%s3581_s1 + $0xf0] sm:$0xff]  }
  0x19   : > { %2679 = vmatpush3.bf16.msra.mxu0 %v2904_v9  ;;  %2584 = vmatprep.subr.bf16.mxu1 %v2905_v10  ;;  %v1238_v55 = vshrl.u32 %v3196_v50, 16  ;;  %v1241_v56 = vshll.u32 %v3196_v50, 16  ;;  %v1247_v57 = vshll.u32 %v2233_v51, 16  ;;  %v608_v61 = vshrl.u32 %v3171_v40, 16  ;;  %v2235_v5 = vld [vmem:[%s3094_s22 + $0xa4] sm:$0x1] }
  0x1a   : > { %2680 = vmatprep.subr.bf16.mxu0 %v2906_v14  ;;  %v1226_v58 = vrot.slane %v1224_v52, 4  ;;  %v1229_v59 = vrot.slane %v1227_v53, 5  ;;  %v611_v1 = vshll.u32 %v3171_v40, 16  ;;  %v1235_v3 = vrot.slane %v1233_v54, 5  ;;  %v2237_v11 = vld [vmem:[%s3094_s22 + $0xac] sm:$0x1] }
  0x1b   : > { %v1240_v62 = vrot.slane %v1238_v55, 4  ;;  %v1243_v63 = vrot.slane %v1241_v56, 5  ;;  %v622_v6 = vshrl.u32 %v3175_v42, 16  ;;  %v1249_v9 = vrot.slane %v1247_v57, 5  ;;  %v2936_v51 = vld [vmem:[%s3581_s1 + $0x178] sm:$0xff]   ;;  %v2974_v13 = vld [vmem:[%s3581_s1 + $0x1f0] sm:$0xff]  }
  0x1c   : > { %2585 = vmatpush3.bf16.msra.mxu1 %v2905_v10  ;;  %v1230_v2 = vor.u32 %v1229_v59, %v1226_v58  ;;  %v3223_v10 = vld [vmem:[%s3094_s22 + $0xa8] sm:$0xf]  ;;  %v1252_v17 = vshrl.u32 %v3212_v4, 16  ;;  %v613_v40 = vrot.slane %v611_v1, 5  ;;  %v3250_v56 = vld [vmem:[%s3094_s22 + $0x10] sm:$0xf] }
  0x1d   : > { %2681 = vmatpush3.bf16.msra.mxu0 %v2906_v14  ;;  %2586 = vmatprep.subr.bf16.mxu1 %v2907_v18  ;;  %v1244_v8 = vor.u32 %v1243_v63, %v1240_v62  ;;  %v625_v14 = vshll.u32 %v3175_v42, 16  ;;  %v624_v48 = vrot.slane %v622_v6, 4  ;;  %v3253_v57 = vld [vmem:[%s3094_s22 + $0x18] sm:$0xf]  ;;  %v2938_v59 = vld [vmem:[%s3581_s1 + $0x80] sm:$0xff]   ;;  %v639_v63 = vshll.u32 %v3250_v56, 16 }
  0x1e   : > { %2682 = vmatprep.subr.bf16.mxu0 %v2908_v19  ;;  %v1231_v15 = vrot.slane %v1230_v2, 4  ;;  %v2939_v62 = vld [vmem:[%s3581_s1 + $0x180] sm:$0xff]   ;;  %v650_v6 = vshrl.u32 %v3253_v57, 16  ;;  %v2986_v27 = vld [vmem:[%s3581_s1 + $0x218] sm:$0xff]  }
  0x1f   : > { %v3268_v2 = vld [vmem:[%s3094_s22 + $0x20] sm:$0xf] }
  0x20   : > { %2587 = vmatpush3.bf16.msra.mxu1 %v2907_v18  ;;  %v1255_v18 = vshll.u32 %v3212_v4, 16 }
  0x21   : > { %2683 = vmatpush3.bf16.msra.mxu0 %v2908_v19  ;;  %2588 = vmatprep.subr.bf16.mxu1 %v2909_v20  ;;  %v1245_v19 = vrot.slane %v1244_v8, 4  ;;  %v653_v8 = vshll.u32 %v3253_v57, 16 }
  0x22   : > { %2684 = vmatprep.subr.bf16.mxu0 %v2910_v21 }
  0x24   : > { %2589 = vmatpush3.bf16.msra.mxu1 %v2909_v20  ;;  %v1261_v20 = vshll.u32 %v2235_v5, 16  ;;  %v2191_v5 = vcombine.low %v3250_v56, %v3253_v57 }
  0x25   : > { %2685 = vmatpush3.bf16.msra.mxu0 %v2910_v21  ;;  %2598 = vmatprep.subr.bf16.mxu1 %v2913_v23  ;;  %v1266_v21 = vshrl.u32 %v3223_v10, 16 }
  0x26   : > { %2694 = vmatprep.subr.bf16.mxu0 %v2915_v24  ;;  %v1263_v52 = vrot.slane %v1261_v20, 5 }
  0x27   : > { %2591 = vmatmul.mubr.bf16.vlgmr.msra.gmra.mrb[0].mxu1 %v2179_v25  ;;  %v1254_v25 = vrot.slane %v1252_v17, 4  ;;  %v3286_v17 = vld [vmem:[%s3094_s22 + $0xb0] sm:$0xf] }
  0x28   : > { %2599 = vmatpush3.bf16.msra.mxu1 %v2913_v23  ;;  %2687 = vmatmul.mubr.bf16.vlgmr.msra.gmra.mrb[0].mxu0 %v2917_v26  ;;  %v1269_v23 = vshll.u32 %v3223_v10, 16  ;;  %v1257_v26 = vrot.slane %v1255_v18, 5  ;;  %v2239_v18 = vld [vmem:[%s3094_s22 + $0xb4] sm:$0x1] }
  0x29   : > { %2695 = vmatpush3.bf16.msra.mxu0 %v2915_v24  ;;  %2600 = vmatprep.subr.bf16.mxu1 %v2918_v29  ;;  %v1236_v24 = vsel %vm3218_vm2, %v1231_v15, %v1235_v3  ;;  %v3271_v3 = vld [vmem:[%s3094_s22 + $0x28] sm:$0xf] }
  0x2a   : > { %2696 = vmatprep.subr.bf16.mxu0 %v2919_v31  ;;  %2594 = vmatprep.mubr.bf16.mxu1 %v2180_v32  ;;  %v610_v32 = vrot.slane %v608_v61, 4  ;;  %v2942_v15 = vld [vmem:[%s3581_s1 + $0x188] sm:$0xff]  }
  0x2b   : > { %2690 = vmatprep.mubr.bf16.mxu0 %v2931_v33  ;;  %v1250_v33 = vsel %vm3218_vm2, %v1245_v19, %v1249_v9  ;;  %v2941_v9 = vld [vmem:[%s3581_s1 + $0x88] sm:$0xff]  }
  0x2c   : > { %2601 = vmatpush3.bf16.msra.mxu1 %v2918_v29  ;;  %v1275_v29 = vshll.u32 %v2237_v11, 16  ;;  %v614_v58 = vor.u32 %v613_v40, %v610_v32  ;;  %v3307_v40 = vld [vmem:[%s3094_s22 + $0x30] sm:$0xf] }
  0x2d   : > { %2697 = vmatpush3.bf16.msra.mxu0 %v2919_v31  ;;  %2602 = vmatprep.subr.bf16.mxu1 %v2920_v36  ;;  %v2930_v31 = vld [vmem:[%s3581_s1 + $0x30] sm:$0xff]  }
  0x2e   : > { %2698 = vmatprep.subr.bf16.mxu0 %v2921_v38  ;;  %v1277_v53 = vrot.slane %v1275_v29, 5  ;;  %v3280_v11 = vrot.slane %v614_v58, 4  ;;  %v1289_v29 = vshll.u32 %v2239_v18, 16  ;;  %v3325_v58 = vrot.slane %v653_v8, 5 }
  0x2f   : > { %2595 = vmatmul.mubr.bf16.gmra.mrb[4].mxu1 %v2181_v39  ;;  %v2932_v39 = vld [vmem:[%s3581_s1 + $0x170] sm:$0xff]  }
  0x30   : > { %2603 = vmatpush3.bf16.msra.mxu1 %v2920_v36  ;;  %2691 = vmatmul.mubr.bf16.gmra.mrb[4].mxu0 %v2934_v41  ;;  %v1268_v36 = vrot.slane %v1266_v21, 4  ;;  %v2326_v41 = vcombine.low %v1236_v24, %v1250_v33  ;;  %v2192_v21 = vcombine.low %v3268_v2, %v3271_v3  ;;  %v2241_v24 = vld [vmem:[%s3094_s22 + $0xbc] sm:$0x1] }
  0x31   : > { %2699 = vmatpush3.bf16.msra.mxu0 %v2921_v38  ;;  %2604 = vmatprep.subr.bf16.mxu1 %v2922_v43  ;;  %v1271_v38 = vrot.slane %v1269_v23, 5  ;;  %v3296_v23 = vld [vmem:[%s3094_s22 + $0xb8] sm:$0xf]  ;;  %v1303_v33 = vshll.u32 %v2241_v24, 16 }
  0x32   : > { %2700 = vmatprep.subr.bf16.mxu0 %v2923_v44  ;;  %2614 = vmatprep.mubr.bf16.mxu1 %v2190_v45  ;;  %v2935_v45 = vld [vmem:[%s3581_s1 + $0x38] sm:$0xff]   ;;  %v1297_v32 = vshll.u32 %v3296_v23, 16 }
  0x33   : > { %2710 = vmatprep.mubr.bf16.mxu0 %v2326_v41  ;;  %v2264_v41 = vcombine.low %v3286_v17, %v3296_v23 }
  0x34   : > { %2605 = vmatpush3.bf16.msra.mxu1 %v2922_v43  ;;  %v1258_v43 = vor.u32 %v1257_v26, %v1254_v25  ;;  %v1280_v25 = vshrl.u32 %v3286_v17, 16  ;;  %v1283_v26 = vshll.u32 %v3286_v17, 16  ;;  %v2988_v17 = vld [vmem:[%s3581_s1 + $0x228] sm:$0xff]  }
  0x35   : > { %2701 = vmatpush3.bf16.msra.mxu0 %v2923_v44  ;;  %2606 = vmatprep.subr.bf16.mxu1 %v2924_v46  ;;  %v2263_v44 = vcombine.low %v3212_v4, %v3223_v10 }
  0x36   : > { %2702 = vmatprep.subr.bf16.mxu0 %v2925_v49  ;;  %v1259_v54 = vrot.slane %v1258_v43, 4  ;;  %v2944_v43 = vld [vmem:[%s3581_s1 + $0x190] sm:$0xff]  }
  0x38   : > { %2607 = vmatpush3.bf16.msra.mxu1 %v2924_v46  ;;  %v1272_v46 = vor.u32 %v1271_v38, %v1268_v36  ;;  %v2943_v36 = vld [vmem:[%s3581_s1 + $0x90] sm:$0xff]   ;;  %v1282_v38 = vrot.slane %v1280_v25, 4  ;;  %v2945_v25 = vld [vmem:[%s3581_s1 + $0x98] sm:$0xff]  }
  0x39   : > { %2703 = vmatpush3.bf16.msra.mxu0 %v2925_v49  ;;  %2608 = vmatprep.subr.bf16.mxu1 %v2926_v60  ;;  %v627_v49 = vrot.slane %v625_v14, 5 }
  0x3a   : > { %2704 = vmatprep.subr.bf16.mxu0 %v2927_v0  ;;  %v1273_v55 = vrot.slane %v1272_v46, 4  ;;  %v1299_v46 = vrot.slane %v1297_v32, 5  ;;  %v2946_v32 = vld [vmem:[%s3581_s1 + $0x198] sm:$0xff]  }
  0x3b   : > { %v628_v61 = vor.u32 %v627_v49, %v624_v48  ;;  %v3315_v48 = vld [vmem:[%s3094_s22 + $0x38] sm:$0xf]  ;;  %v3317_v49 = vrot.slane %v639_v63, 5 }
  0x3c   : > { %2609 = vmatpush3.bf16.msra.mxu1 %v2926_v60  ;;  %v636_v60 = vshrl.u32 %v3250_v56, 16  ;;  %v1278_v1 = vsel %vm3218_vm2, %v1273_v55, %v1277_v53  ;;  %v1291_v53 = vrot.slane %v1289_v29, 5  ;;  %v2243_v55 = vld [vmem:[%s3094_s22 + $0xc4] sm:$0x1]  ;;  %v2193_v63 = vcombine.low %v3307_v40, %v3315_v48 }
  0x3d   : > { %2705 = vmatpush3.bf16.msra.mxu0 %v2927_v0  ;;  %2610 = vmatprep.subr.bf16.mxu1 %v2930_v31  ;;  %v1264_v0 = vsel %vm3218_vm2, %v1259_v54, %v1263_v52  ;;  %v3289_v19 = vrot.slane %v628_v61, 4  ;;  %v3322_v54 = vld [vmem:[%s3094_s22 + $0xc0] sm:$0xf]  ;;  %v1305_v61 = vrot.slane %v1303_v33, 5 }
  0x3e   : > { %2706 = vmatprep.subr.bf16.mxu0 %v2932_v39  ;;  %v2327_v14 = vcombine.low %v1264_v0, %v1278_v1  ;;  %v3291_v20 = vrot.slane %v636_v60, 4  ;;  %v3331_v0 = vld [vmem:[%s3094_s22 + $0xc8] sm:$0xf] }
  0x3f   : > { %v1322_v18 = vshrl.u32 %v3331_v0, 16 }
  0x40   : > { %2611 = vmatpush3.bf16.msra.mxu1 %v2930_v31  ;;  %v1294_v31 = vshrl.u32 %v3296_v23, 16 }
  0x41   : > { %2707 = vmatpush3.bf16.msra.mxu0 %v2932_v39  ;;  %2612 = vmatprep.subr.bf16.mxu1 %v2935_v45  ;;  %v1285_v39 = vrot.slane %v1283_v26, 5  ;;  %v667_v26 = vshll.u32 %v3268_v2, 16 }
  0x42   : > { %2708 = vmatprep.subr.bf16.mxu0 %v2936_v51 }
  0x43   : > { %v1286_v52 = vor.u32 %v1285_v39, %v1282_v38  ;;  %v1324_v38 = vrot.slane %v1322_v18, 4 }
  0x44   : > { %2613 = vmatpush3.bf16.msra.mxu1 %v2935_v45  ;;  %v1296_v45 = vrot.slane %v1294_v31, 4 }
  0x45   : > { %2709 = vmatpush3.bf16.msra.mxu0 %v2936_v51  ;;  %2622 = vmatprep.subr.bf16.mxu1 %v2938_v59  ;;  %v3319_v51 = vrot.slane %v650_v6, 4  ;;  %v1287_v1 = vrot.slane %v1286_v52, 4  ;;  %v1311_v6 = vshll.u32 %v3322_v54, 16  ;;  %v270_v52 = vld [vmem:[%s3094_s22 + $0x4] sm:$0x1] }
  0x46   : > { %2718 = vmatprep.subr.bf16.mxu0 %v2939_v62  ;;  %v1300_v60 = vor.u32 %v1299_v46, %v1296_v45 }
  0x47   : > { %2615 = vmatmul.mubr.bf16.vlgmr.msra.gmra.mrb[0].mxu1 %v2191_v5  ;;  %v1308_v5 = vshrl.u32 %v3322_v54, 16  ;;  %v1292_v29 = vsel %vm3218_vm2, %v1287_v1, %v1291_v53  ;;  %v1313_v31 = vrot.slane %v1311_v6, 5  ;;  %v2265_v53 = vcombine.low %v3322_v54, %v3331_v0  ;;  %v2989_v54 = vld [vmem:[%s3581_s1 + $0x230] sm:$0xff]  }
  0x48   : > { %2623 = vmatpush3.bf16.msra.mxu1 %v2938_v59  ;;  %2711 = vmatmul.mubr.bf16.vlgmr.msra.gmra.mrb[0].mxu0 %v2327_v14  ;;  %v664_v59 = vshrl.u32 %v3268_v2, 16  ;;  %v1317_v14 = vshll.u32 %v2243_v55, 16  ;;  %v1301_v8 = vrot.slane %v1300_v60, 4  ;;  %v272_v55 = vld [vmem:[%s3094_s22 + $0xc] sm:$0x1]  ;;  %v2947_v60 = vld [vmem:[%s3581_s1 + $0xa0] sm:$0xff]  }
  0x49   : > { %2719 = vmatpush3.bf16.msra.mxu0 %v2939_v62  ;;  %2624 = vmatprep.subr.bf16.mxu1 %v2941_v9  ;;  %v2245_v62 = vld [vmem:[%s3094_s22 + $0xcc] sm:$0x1] }
  0x4a   : > { %2720 = vmatprep.subr.bf16.mxu0 %v2942_v15  ;;  %2618 = vmatprep.mubr.bf16.mxu1 %v2192_v21  ;;  %v1325_v21 = vshll.u32 %v3331_v0, 16  ;;  %v1331_v24 = vshll.u32 %v2245_v62, 16  ;;  %v1319_v33 = vrot.slane %v1317_v14, 5  ;;  %v681_v14 = vshll.u32 %v3271_v3, 16 }
  0x4c   : > { %2625 = vmatpush3.bf16.msra.mxu1 %v2941_v9  ;;  %v1310_v9 = vrot.slane %v1308_v5, 4  ;;  %v1327_v39 = vrot.slane %v1325_v21, 5  ;;  %v1333_v1 = vrot.slane %v1331_v24, 5  ;;  %v617_v5 = vshll.u32 %v270_v52, 16  ;;  %v2949_v24 = vld [vmem:[%s3581_s1 + $0xa8] sm:$0xff]  }
  0x4d   : > { %2721 = vmatpush3.bf16.msra.mxu0 %v2942_v15  ;;  %2626 = vmatprep.subr.bf16.mxu1 %v2943_v36  ;;  %v1306_v15 = vsel %vm3218_vm2, %v1301_v8, %v1305_v61  ;;  %v631_v61 = vshll.u32 %v272_v55, 16  ;;  %v666_v52 = vrot.slane %v664_v59, 4  ;;  %v2955_v59 = vld [vmem:[%s3581_s1 + $0xb8] sm:$0xff]  }
  0x4e   : > { %2722 = vmatprep.subr.bf16.mxu0 %v2944_v43  ;;  %v2328_v45 = vcombine.low %v1292_v29, %v1306_v15  ;;  %v1314_v46 = vor.u32 %v1313_v31, %v1310_v9  ;;  %v1328_v62 = vor.u32 %v1327_v39, %v1324_v38  ;;  %v619_v18 = vrot.slane %v617_v5, 5  ;;  %v274_v9 = vld [vmem:[%s3094_s22 + $0x14] sm:$0x1]  ;;  %v276_v31 = vld [vmem:[%s3094_s22 + $0x1c] sm:$0x1]  ;;  %v2950_v39 = vld [vmem:[%s3581_s1 + $0x1a8] sm:$0xff]  }
  0x4f   : > { %2619 = vmatmul.mubr.bf16.gmra.mrb[4].mxu1 %v2193_v63  ;;  %v678_v63 = vshrl.u32 %v3271_v3, 16  ;;  %v633_v21 = vrot.slane %v631_v61, 5  ;;  %v2354_v29 = vcombine.low %v3175_v42, %v3250_v56  ;;  %v642_v15 = vor.u32 %v3317_v49, %v3291_v20 }
  0x50   : > { %2627 = vmatpush3.bf16.msra.mxu1 %v2943_v36  ;;  %v1315_v6 = vrot.slane %v1314_v46, 4  ;;  %v2948_v36 = vld [vmem:[%s3581_s1 + $0x1a0] sm:$0xff]   ;;  %2714 = vmatprep.mubr.bf16.mxu0 %v2328_v45  ;;  %v1329_v8 = vrot.slane %v1328_v62, 4  ;;  %v656_v38 = vor.u32 %v3325_v58, %v3319_v51  ;;  %v692_v45 = vshrl.u32 %v3307_v40, 16 }
  0x51   : > { %2723 = vmatpush3.bf16.msra.mxu0 %v2944_v43  ;;  %2628 = vmatprep.subr.bf16.mxu1 %v2945_v25  ;;  %v620_v42 = vsel %vm3218_vm2, %v3280_v11, %v619_v18  ;;  %v3386_v56 = vsel %vm3218_vm2, %v3289_v19, %v633_v21  ;;  %v695_v20 = vshll.u32 %v3307_v40, 16  ;;  %v706_v49 = vshrl.u32 %v3315_v48, 16  ;;  %v2952_v11 = vld [vmem:[%s3581_s1 + $0xb0] sm:$0xff]  }
  0x52   : > { %2724 = vmatprep.subr.bf16.mxu0 %v2946_v32  ;;  %v1320_v43 = vsel %vm3218_vm2, %v1315_v6, %v1319_v33  ;;  %v1334_v33 = vsel %vm3218_vm2, %v1329_v8, %v1333_v1  ;;  %v2218_v58 = vcombine.low %v620_v42, %v3386_v56  ;;  %v659_v46 = vshll.u32 %v276_v31, 16  ;;  %v2953_v19 = vld [vmem:[%s3581_s1 + $0x1b0] sm:$0xff]  }
  0x53   : > { %v2329_v51 = vcombine.low %v1320_v43, %v1334_v33  ;;  %v657_v55 = vrot.slane %v656_v38, 4  ;;  %v669_v62 = vrot.slane %v667_v26, 5  ;;  %v683_v6 = vrot.slane %v681_v14, 5  ;;  %v2956_v26 = vld [vmem:[%s3581_s1 + $0x1b8] sm:$0xff]  }
  0x54   : > { %2629 = vmatpush3.bf16.msra.mxu1 %v2945_v25  ;;  %v645_v25 = vshll.u32 %v274_v9, 16  ;;  %2638 = vmatprep.mubr.bf16.mxu1 %v2218_v58  ;;  %v661_v5 = vrot.slane %v659_v46, 5  ;;  %v709_v8 = vshll.u32 %v3315_v48, 16  ;;  %v694_v21 = vrot.slane %v692_v45, 4  ;;  %v284_v9 = vld [vmem:[%s3094_s22 + $0x3c] sm:$0x1] }
  0x55   : > { %2725 = vmatpush3.bf16.msra.mxu0 %v2946_v32  ;;  %2630 = vmatprep.subr.bf16.mxu1 %v2947_v60  ;;  %v643_v32 = vrot.slane %v642_v15, 4  ;;  %v670_v61 = vor.u32 %v669_v62, %v666_v52  ;;  %v2957_v58 = vld [vmem:[%s3581_s1 + $0xc0] sm:$0xff]  }
  0x56   : > { %2726 = vmatprep.subr.bf16.mxu0 %v2948_v36  ;;  %2715 = vmatmul.mubr.bf16.gmra.mrb[4].mxu0 %v2329_v51  ;;  %v647_v1 = vrot.slane %v645_v25, 5  ;;  %v3418_v31 = vsel %vm3218_vm2, %v657_v55, %v661_v5  ;;  %v708_v51 = vrot.slane %v706_v49, 4  ;;  %v711_v46 = vrot.slane %v709_v8, 5  ;;  %v2959_v52 = vld [vmem:[%s3581_s1 + $0x1c0] sm:$0xff]   ;;  %v2961_v5 = vld [vmem:[%s3581_s1 + $0xc8] sm:$0xff]  }
  0x57   : > { %2734 = vmatprep.mubr.bf16.mxu0 %v2354_v29  ;;  %v282_v29 = vld [vmem:[%s3094_s22 + $0x34] sm:$0x1]  ;;  %v671_v15 = vrot.slane %v670_v61, 4  ;;  %v2355_v55 = vcombine.low %v3253_v57, %v3268_v2  ;;  %v2356_v57 = vcombine.low %v3271_v3, %v3307_v40 }
  0x58   : > { %2631 = vmatpush3.bf16.msra.mxu1 %v2947_v60  ;;  %v680_v60 = vrot.slane %v678_v63, 4  ;;  %v280_v63 = vld [vmem:[%s3094_s22 + $0x2c] sm:$0x1]  ;;  %v3412_v14 = vsel %vm3218_vm2, %v643_v32, %v647_v1  ;;  %v701_v45 = vshll.u32 %v282_v29, 16  ;;  %v715_v32 = vshll.u32 %v284_v9, 16  ;;  %v2963_v2 = vld [vmem:[%s3581_s1 + $0xd0] sm:$0xff]  }
  0x59   : > { %2727 = vmatpush3.bf16.msra.mxu0 %v2948_v36  ;;  %2632 = vmatprep.subr.bf16.mxu1 %v2949_v24  ;;  %v278_v36 = vld [vmem:[%s3094_s22 + $0x24] sm:$0x1]  ;;  %v687_v43 = vshll.u32 %v280_v63, 16  ;;  %v2964_v3 = vld [vmem:[%s3581_s1 + $0x1d0] sm:$0xff]   ;;  %v2976_v29 = vld [vmem:[%s3581_s1 + $0x1f8] sm:$0xff]  }
  0x5a   : > { %2728 = vmatprep.subr.bf16.mxu0 %v2950_v39  ;;  %v684_v18 = vor.u32 %v683_v6, %v680_v60  ;;  %v703_v1 = vrot.slane %v701_v45, 5  ;;  %v717_v60 = vrot.slane %v715_v32, 5  ;;  %v2962_v6 = vld [vmem:[%s3581_s1 + $0x1c8] sm:$0xff]   ;;  %v2979_v9 = vld [vmem:[%s3581_s1 + $0x200] sm:$0xff]  }
  0x5b   : > { %v689_v42 = vrot.slane %v687_v43, 5  ;;  %v2968_v43 = vld [vmem:[%s3581_s1 + $0x1e0] sm:$0xff]  }
  0x5c   : > { %2633 = vmatpush3.bf16.msra.mxu1 %v2949_v24  ;;  %v673_v24 = vshll.u32 %v278_v36, 16  ;;  %v685_v38 = vrot.slane %v684_v18, 4  ;;  %v3460_v36 = vld [vmem:[%s3094_s22 + $0x40] sm:$0xf]  ;;  %v2965_v18 = vld [vmem:[%s3581_s1 + $0xd8] sm:$0xff]  }
  0x5d   : > { %2729 = vmatpush3.bf16.msra.mxu0 %v2950_v39  ;;  %2634 = vmatprep.subr.bf16.mxu1 %v2952_v11  ;;  %v697_v39 = vrot.slane %v695_v20, 5  ;;  %v2219_v20 = vcombine.low %v3412_v14, %v3418_v31  ;;  %v2357_v63 = vcombine.low %v3315_v48, %v3460_v36  ;;  %v2967_v48 = vld [vmem:[%s3581_s1 + $0xe0] sm:$0xff]   ;;  %v1786_v34 = vshrl.u32 %v3460_v36, 16 }
  0x5e   : > { %2730 = vmatprep.subr.bf16.mxu0 %v2953_v19  ;;  %v675_v33 = vrot.slane %v673_v24, 5  ;;  %v2262_v24 = vcombine.low %v3189_v47, %v3196_v50  ;;  %v2969_v47 = vld [vmem:[%s3581_s1 + $0xe8] sm:$0xff]  }
  0x5f   : > { %v698_v25 = vor.u32 %v697_v39, %v694_v21  ;;  %v2966_v21 = vld [vmem:[%s3581_s1 + $0x1d8] sm:$0xff]   ;;  %v2970_v50 = vld [vmem:[%s3581_s1 + $0x1e8] sm:$0xff]   ;;  %v2985_v39 = vld [vmem:[%s3581_s1 + $0x210] sm:$0xff]   ;;  %v1788_v4 = vrot.slane %v1786_v34, 4 }
  0x60   : > { %2635 = vmatpush3.bf16.msra.mxu1 %v2952_v11  ;;  %v3430_v49 = vsel %vm3218_vm2, %v671_v15, %v675_v33  ;;  %v3434_v11 = vsel %vm3218_vm2, %v685_v38, %v689_v42  ;;  %v2980_v15 = vld [vmem:[%s3581_s1 + $0x208] sm:$0xff]  }
  0x61   : > { %2731 = vmatpush3.bf16.msra.mxu0 %v2953_v19  ;;  %2636 = vmatprep.subr.bf16.mxu1 %v2955_v59  ;;  %v712_v19 = vor.u32 %v711_v46, %v708_v51  ;;  %v699_v62 = vrot.slane %v698_v25, 4  ;;  %v2220_v8 = vcombine.low %v3430_v49, %v3434_v11  ;;  %v2161_v38 = vld [vmem:[%s3094_s22 + $0x88] sm:$0xf]  ;;  %v2411_v42 = vcombine.low %v3418_v31, %v3430_v49 }
  0x62   : > { %2732 = vmatprep.subr.bf16.mxu0 %v2956_v26  ;;  %v2385_v22 = vcombine.low %v3158_v35, %v2161_v38  ;;  %v1789_v35 = vshll.u32 %v3460_v36, 16 }
  0x63   : > { %v713_v61 = vrot.slane %v712_v19, 4 }
  0x64   : > { %2637 = vmatpush3.bf16.msra.mxu1 %v2955_v59  ;;  %v3453_v59 = vsel %vm3218_vm2, %v699_v62, %v703_v1  ;;  %v1791_v10 = vrot.slane %v1789_v35, 5 }
  0x65   : > { %2733 = vmatpush3.bf16.msra.mxu0 %v2956_v26  ;;  %2646 = vmatprep.subr.bf16.mxu1 %v2957_v58  ;;  %v3457_v26 = vsel %vm3218_vm2, %v713_v61, %v717_v60  ;;  %v2412_v28 = vcombine.low %v3434_v11, %v3453_v59  ;;  %v2422_v60 = vld [vmem:[%s3582_s2] ss:$0 sm:$0xff] }
  0x66   : > { %2742 = vmatprep.subr.bf16.mxu0 %v2959_v52  ;;  %v2221_v40 = vcombine.low %v3453_v59, %v3457_v26  ;;  %v1792_v23 = vor.u32 %v1791_v10, %v1788_v4 }
  0x67   : > { %2639 = vmatmul.mubr.bf16.vlgmr.msra.gmra.mrb[0].mxu1 %v2219_v20 }
  0x68   : > { %2647 = vmatpush3.bf16.msra.mxu1 %v2957_v58  ;;  %2735 = vmatmul.mubr.bf16.vlgmr.msra.gmra.mrb[0].mxu0 %v2355_v55  ;;  %v1793_v0 = vrot.slane %v1792_v23, 4 }
  0x69   : > { %2743 = vmatpush3.bf16.msra.mxu0 %v2959_v52  ;;  %2648 = vmatprep.subr.bf16.mxu1 %v2961_v5 }
  0x6a   : > { %2744 = vmatprep.subr.bf16.mxu0 %v2962_v6  ;;  %2642 = vmatprep.mubr.bf16.mxu1 %v2220_v8 }
  0x6b   : > { %2738 = vmatprep.mubr.bf16.mxu0 %v2356_v57 }
  0x6c   : > { %2649 = vmatpush3.bf16.msra.mxu1 %v2961_v5 }
  0x6d   : > { %2745 = vmatpush3.bf16.msra.mxu0 %v2962_v6  ;;  %2650 = vmatprep.subr.bf16.mxu1 %v2963_v2 }
  0x6e   : > { %2746 = vmatprep.subr.bf16.mxu0 %v2964_v3 }
  0x6f   : > { %2643 = vmatmul.mubr.bf16.gmra.mrb[4].mxu1 %v2221_v40 }
  0x70   : > { %2651 = vmatpush3.bf16.msra.mxu1 %v2963_v2  ;;  %2739 = vmatmul.mubr.bf16.gmra.mrb[4].mxu0 %v2357_v63  ;;  %v2423_v2 = vld [vmem:[%s3583_s3] ss:$0 sm:$0xff] }
  0x71   : > { %2747 = vmatpush3.bf16.msra.mxu0 %v2964_v3  ;;  %2652 = vmatprep.subr.bf16.mxu1 %v2965_v18 }
  0x72   : > { %2748 = vmatprep.subr.bf16.mxu0 %v2966_v21  ;;  %2662 = vmatprep.mubr.bf16.mxu1 %v2262_v24 }
  0x73   : > { %2758 = vmatprep.mubr.bf16.mxu0 %v2382_v16  ;;  %v2975_v16 = vld [vmem:[%s3581_s1 + $0xf8] sm:$0xff]  }
  0x74   : > { %2653 = vmatpush3.bf16.msra.mxu1 %v2965_v18 }
  0x75   : > { %2749 = vmatpush3.bf16.msra.mxu0 %v2966_v21  ;;  %2654 = vmatprep.subr.bf16.mxu1 %v2967_v48 }
  0x76   : > { %2750 = vmatprep.subr.bf16.mxu0 %v2968_v43 }
  0x78   : > { %2655 = vmatpush3.bf16.msra.mxu1 %v2967_v48 }
  0x79   : > { %2751 = vmatpush3.bf16.msra.mxu0 %v2968_v43  ;;  %2656 = vmatprep.subr.bf16.mxu1 %v2969_v47 }
  0x7a   : > { %2752 = vmatprep.subr.bf16.mxu0 %v2970_v50 }
  0x7c   : > { %2657 = vmatpush3.bf16.msra.mxu1 %v2969_v47 }
  0x7d   : > { %2753 = vmatpush3.bf16.msra.mxu0 %v2970_v50  ;;  %2658 = vmatprep.subr.bf16.mxu1 %v2972_v12 }
  0x7e   : > { %2754 = vmatprep.subr.bf16.mxu0 %v2974_v13 }
  0x80   : > { %2659 = vmatpush3.bf16.msra.mxu1 %v2972_v12 }
  0x81   : > { %2755 = vmatpush3.bf16.msra.mxu0 %v2974_v13  ;;  %2660 = vmatprep.subr.bf16.mxu1 %v2975_v16 }
  0x82   : > { %2756 = vmatprep.subr.bf16.mxu0 %v2976_v29 }
  0x84   : > { %2661 = vmatpush3.bf16.msra.mxu1 %v2975_v16 }
  0x85   : > { %2757 = vmatpush3.bf16.msra.mxu0 %v2976_v29  ;;  %2790 = vmatprep.subr.bf16.mxu1 %v2979_v9 }
  0x86   : > { %2766 = vmatprep.subr.bf16.mxu0 %v2979_v9 }
  0x87   : > { %2663 = vmatmul.mubr.bf16.vlgmr.msra.gmra.mrb[0].mxu1 %v2263_v44  ;;  %v286_v44 = vld [vmem:[%s3094_s22 + $0x44] sm:$0x1] }
  0x88   : > { %2759 = vmatmul.mubr.bf16.vlgmr.msra.gmra.mrb[0].mxu0 %v2383_v30  ;;  %2798 = vmatpush3.bf16.msra.mxu1 %v2979_v9  ;;  %v2410_v30 = vcombine.low %v3386_v56, %v3412_v14  ;;  %v2990_v56 = vld [vmem:[%s3581_s1 + $0x238] sm:$0xff]  }
  0x89   : > { %2767 = vmatpush3.bf16.msra.mxu0 %v2979_v9  ;;  %2791 = vmatprep.subr.bf16.mxu1 %v2980_v15 }
  0x8a   : > { %2768 = vmatprep.subr.bf16.mxu0 %v2980_v15  ;;  %2666 = vmatprep.mubr.bf16.mxu1 %v2264_v41  ;;  %v1795_v41 = vshll.u32 %v286_v44, 16 }
  0x8b   : > { %2762 = vmatprep.mubr.bf16.mxu0 %v2384_v37  ;;  %v2987_v37 = vld [vmem:[%s3581_s1 + $0x220] sm:$0xff]  }
  0x8c   : > { %2799 = vmatpush3.bf16.msra.mxu1 %v2980_v15 }
  0x8d   : > { %2769 = vmatpush3.bf16.msra.mxu0 %v2980_v15  ;;  %2792 = vmatprep.subr.bf16.mxu1 %v2985_v39 }
  0x8e   : > { %2770 = vmatprep.subr.bf16.mxu0 %v2985_v39 }
  0x8f   : > { %2667 = vmatmul.mubr.bf16.gmra.mrb[4].mxu1 %v2265_v53  ;;  %v1797_v53 = vrot.slane %v1795_v41, 5 }
  0x90   : > { %2763 = vmatmul.mubr.bf16.gmra.mrb[4].mxu0 %v2385_v22  ;;  %2800 = vmatpush3.bf16.msra.mxu1 %v2985_v39 }
  0x91   : > { %2771 = vmatpush3.bf16.msra.mxu0 %v2985_v39  ;;  %2793 = vmatprep.subr.bf16.mxu1 %v2986_v27  ;;  %v1798_v14 = vsel %vm3218_vm2, %v1793_v0, %v1797_v53 }
  0x92   : > { %2772 = vmatprep.subr.bf16.mxu0 %v2986_v27  ;;  %2782 = vmatprep.mubr.bf16.mxu0 %v2410_v30  ;;  %v2413_v33 = vcombine.low %v3457_v26, %v1798_v14 }
  0x93   : > { %2786 = vmatprep.mubr.bf16.mxu1 %v2412_v28 }
  0x94   : > { %2801 = vmatpush3.bf16.msra.mxu1 %v2986_v27 }
  0x95   : > { %2773 = vmatpush3.bf16.msra.mxu0 %v2986_v27  ;;  %2794 = vmatprep.subr.bf16.mxu1 %v2987_v37 }
  0x96   : > { %2774 = vmatprep.subr.bf16.mxu0 %v2987_v37 }
  0x98   : > { %2802 = vmatpush3.bf16.msra.mxu1 %v2987_v37 }
  0x99   : > { %2775 = vmatpush3.bf16.msra.mxu0 %v2987_v37  ;;  %2795 = vmatprep.subr.bf16.mxu1 %v2988_v17 }
  0x9a   : > { %2776 = vmatprep.subr.bf16.mxu0 %v2988_v17 }
  0x9c   : > { %2803 = vmatpush3.bf16.msra.mxu1 %v2988_v17 }
  0x9d   : > { %2777 = vmatpush3.bf16.msra.mxu0 %v2988_v17  ;;  %2796 = vmatprep.subr.bf16.mxu1 %v2989_v54 }
  0x9e   : > { %2778 = vmatprep.subr.bf16.mxu0 %v2989_v54 }
  0xa0   : > { %2804 = vmatpush3.bf16.msra.mxu1 %v2989_v54 }
  0xa1   : > { %2779 = vmatpush3.bf16.msra.mxu0 %v2989_v54  ;;  %2797 = vmatprep.subr.bf16.mxu1 %v2990_v56 }
  0xa2   : > { %2780 = vmatprep.subr.bf16.mxu0 %v2990_v56 }
  0xa4   : > { %2805 = vmatpush3.bf16.msra.mxu1 %v2990_v56 }
  0xa5   : > { %2781 = vmatpush3.bf16.msra.mxu0 %v2990_v56 }
  0xa7   : > { %2787 = vmatmul.mubr.bf16.vlgmr.msra.gmra.mrb[8].mxu1 %v2413_v33 }
  0xa8   : > { %2783 = vmatmul.mubr.bf16.vlgmr.msra.gmra.mrb[0].mxu0 %v2411_v42 }
 0x15a   : > { %v2664_v45 = vpop.f32.mrb[0].mxu1 }
 0x15b   : > { %v1013_v51 = vpop.f32.mrb[1].mxu1 }
 0x15c   : > { %v2665_v58 = vpop.f32.mrb[2].mxu1 }
 0x15d   : > { %v1016_v25 = vpop.f32.mrb[3].mxu1 }
 0x162   : > { %v2668_v7 = vpop.f32.mrb[4].mxu1 }
 0x163   : > { %v2764_v46 = vpop.f32.mrb[4].mxu0  ;;  %v1029_v32 = vpop.f32.mrb[5].mxu1 }
 0x164   : > { %v2810_v52 = vadd.f32 %v2764_v46, %v2668_v7  ;;  %v1762_v20 = vpop.f32.mrb[5].mxu0  ;;  %v2669_v11 = vpop.f32.mrb[6].mxu1 }
 0x165   : > { %v2812_v19 = vadd.f32 %v1762_v20, %v1029_v32  ;;  %v2765_v55 = vpop.f32.mrb[6].mxu0  ;;  %v1032_v62 = vpop.f32.mrb[7].mxu1 }
 0x166   : > { %v2814_v1 = vadd.f32 %v2765_v55, %v2669_v11  ;;  %v1765_v31 = vpop.f32.mrb[7].mxu0 }
 0x167   : > { %v2816_v49 = vadd.f32 %v1765_v31, %v1032_v62 }
 0x17a   : > { %v2788_v5 = vpop.f32.mrb[8].mxu1 }
 0x17b   : > { %v2784_v61 = vpop.f32.mrb[0].mxu0  ;;  %v2811_v6 = vadd.f32 %v2810_v52, %v2788_v5  ;;  %v1923_v8 = vpop.f32.mrb[9].mxu1 }
 0x17c   : > { %v2806_v57 = vadd.f32 %v2784_v61, %v2664_v45  ;;  %v1907_v59 = vpop.f32.mrb[1].mxu0  ;;  %v2813_v26 = vadd.f32 %v2812_v19, %v1923_v8  ;;  %v2789_v36 = vpop.f32.mrb[10].mxu1 }
 0x17d   : > { %v1959_v3 = vmul.f32 %v2811_v6, %v2422_v60  ;;  %v2807_v40 = vadd.f32 %v1907_v59, %v1013_v51  ;;  %v2785_v63 = vpop.f32.mrb[2].mxu0  ;;  %v2815_v18 = vadd.f32 %v2814_v1, %v2789_v36  ;;  %v1926_v21 = vpop.f32.mrb[11].mxu1 }
 0x17e   : > { %v1955_v24 = vmul.f32 %v2806_v57, %v2422_v60  ;;  %v1957_v48 = vmul.f32 %v2813_v26, %v2422_v60  ;;  %v2808_v43 = vadd.f32 %v2785_v63, %v2665_v58  ;;  %v1910_v47 = vpop.f32.mrb[3].mxu0  ;;  %v2817_v50 = vadd.f32 %v2816_v49, %v1926_v21 }
 0x17f   : > { %v1974_v12 = vadd.f32 %v2423_v2, %v1959_v3  ;;  %v1953_v13 = vmul.f32 %v2807_v40, %v2422_v60  ;;  %v1960_v16 = vmul.f32 %v2815_v18, %v2422_v60  ;;  %v2809_v29 = vadd.f32 %v1910_v47, %v1016_v25 }
 0x180   : > { %v1970_v9 = vadd.f32 %v2423_v2, %v1955_v24  ;;  %v1972_v15 = vadd.f32 %v2423_v2, %v1957_v48  ;;  %v1956_v38 = vmul.f32 %v2808_v43, %v2422_v60  ;;  %v1958_v39 = vmul.f32 %v2817_v50, %v2422_v60 }
 0x181   : > { %v1968_v22 = vadd.f32 %v2423_v2, %v1953_v13  ;;  %v1975_v27 = vadd.f32 %v2423_v2, %v1960_v16  ;;  %v1954_v30 = vmul.f32 %v2809_v29, %v2422_v60  ;;  %v1982_v35 = vmax.f32 %v1974_v12, 0.0 }
 0x182   : > { %v1971_v28 = vadd.f32 %v2423_v2, %v1956_v38  ;;  %v1973_v34 = vadd.f32 %v2423_v2, %v1958_v39  ;;  %v1978_v10 = vmax.f32 %v1970_v9, 0.0  ;;  %v1980_v44 = vmax.f32 %v1972_v15, 0.0 }
 0x183   : > { %v1983_v37 = vmax.f32 %v1975_v27, 0.0  ;;  %v1969_v4 = vadd.f32 %v2423_v2, %v1954_v30  ;;  %v1976_v41 = vmax.f32 %v1968_v22, 0.0 }
 0x184   : > { %v1979_v17 = vmax.f32 %v1971_v28, 0.0  ;;  %v1981_v23 = vmax.f32 %v1973_v34, 0.0 }
 0x185   : > { %v2461_v54 = vpack.c.bf16 %v1983_v37, %v1982_v35  ;;  %v1977_v0 = vmax.f32 %v1969_v4, 0.0 }
 0x186   : > { %v2451_v53 = vpack.c.bf16 %v1979_v17, %v1978_v10  ;;  %v2456_v56 = vpack.c.bf16 %v1981_v23, %v1980_v44 }
 0x187   : > { %2465 = vst [vmem:[%s267_s26 + $0x18] sm:$0xff] %v2461_v54   ;;  %v2446_v14 = vpack.c.bf16 %v1977_v0, %v1976_v41 }
 0x188   : > { %2463 = vst [vmem:[%s267_s26 + $0x8] sm:$0xff] %v2451_v53   ;;  %2464 = vst [vmem:[%s267_s26 + $0x10] sm:$0xff] %v2456_v56  }
 0x189   : > { %2447 = vst [vmem:[%s267_s26] sm:$0xff] %v2446_v14  }
 0x18a PF: > { %s14_s17 = sadd.s32 1, %s3013_s17   ;;  %s3587_s15 = smov %s3009_s16 }
 0x18b   : > { %p11_p6 = scmp.ge.s32.totalorder %s14_s17, 4   ;;  %s3588_s16 = smov %s3590_s18 }
 0x18d   :  { %13 = sbr.rel (!%p11_p6) target bundleno = 2 (0x2), region = 86 }

// kernel: _lambda_.11
= control target key start
LH: loop header
LB: loop body
LE: loop exit
PB: predicated region body
PF: predicated region fallthrough
CT: control target
= control target key end

     0   :  { %s992_s1 = inlined_call_operand.vmem [shape: bf16[256,128], index: 1, kind: input, shape index: {}]   ;;  %s993_s0 = inlined_call_operand.vmem [shape: bf16[128,256], index: 0, kind: input, shape index: {}]   ;;  %s994_s2 = inlined_call_operand.vmem [shape: f32[1,128], index: 2, kind: input, shape index: {}]   ;;  %s995_s3 = inlined_call_operand.vmem [shape: f32[1,128], index: 3, kind: input, shape index: {}]   ;;  %s996_s4 = inlined_call_operand.vmem [shape: bf16[128,128], index: 4, kind: output, shape index: {}]  }
   0x1   :  { %v765_v0 = vld [vmem:[%s992_s1 + $0x40] sm:$0xff]   ;;  %v767_v2 = vld [vmem:[%s992_s1 + $0x48] sm:$0xff]   ;;  %v769_v4 = vld [vmem:[%s992_s1 + $0x50] sm:$0xff]  }
   0x2   :  { %v766_v1 = vld [vmem:[%s992_s1] sm:$0xff]   ;;  %685 = vmatprep.subr.bf16.mxu0 %v765_v0  ;;  %749 = vmatprep.subr.bf16.mxu1 %v765_v0  ;;  %v768_v3 = vld [vmem:[%s992_s1 + $0x8] sm:$0xff]   ;;  %v770_v5 = vld [vmem:[%s992_s1 + $0x10] sm:$0xff]  }
   0x3   :  { %686 = vmatpush3.bf16.msra.mxu0 %v766_v1  ;;  %757 = vmatpush3.bf16.msra.mxu1 %v766_v1  ;;  %v771_v6 = vld [vmem:[%s992_s1 + $0x58] sm:$0xff]   ;;  %v773_v8 = vld [vmem:[%s992_s1 + $0x60] sm:$0xff]   ;;  %v775_v10 = vld [vmem:[%s992_s1 + $0x68] sm:$0xff]  }
   0x4   :  { %687 = vmatprep.subr.bf16.mxu0 %v767_v2  ;;  %750 = vmatprep.subr.bf16.mxu1 %v767_v2  ;;  %v772_v7 = vld [vmem:[%s992_s1 + $0x18] sm:$0xff]   ;;  %v774_v9 = vld [vmem:[%s992_s1 + $0x20] sm:$0xff]   ;;  %v776_v13 = vld [vmem:[%s992_s1 + $0x28] sm:$0xff]  }
   0x5   :  { %v783_v11 = vld [vmem:[%s993_s0 + $0x4] ss:$8 sps:$4 sm:$0xff]   ;;  %v777_v14 = vld [vmem:[%s992_s1 + $0x70] sm:$0xff]   ;;  %v779_v16 = vld [vmem:[%s992_s1 + $0x78] sm:$0xff]  }
   0x6   :  { %v786_v12 = vld [vmem:[%s993_s0 + $0x44] ss:$8 sps:$4 sm:$0xff]   ;;  %310 = vmatprep.mubr.bf16.mxu0 %v783_v11  ;;  %v778_v15 = vld [vmem:[%s992_s1 + $0x30] sm:$0xff]   ;;  %v780_v17 = vld [vmem:[%s992_s1 + $0x38] sm:$0xff]  }
   0x7   :  { %688 = vmatpush3.bf16.msra.mxu0 %v768_v3  ;;  %758 = vmatpush3.bf16.msra.mxu1 %v768_v3  ;;  %v781_v18 = vld [vmem:[%s993_s0] ss:$8 sps:$4 sm:$0xff]   ;;  %v787_v20 = vld [vmem:[%s993_s0 + $0x14] ss:$8 sps:$4 sm:$0xff]   ;;  %v791_v22 = vld [vmem:[%s993_s0 + $0x10] ss:$8 sps:$4 sm:$0xff]  }
   0x8   :  { %689 = vmatprep.subr.bf16.mxu0 %v769_v4  ;;  %751 = vmatprep.subr.bf16.mxu1 %v769_v4  ;;  %v784_v19 = vld [vmem:[%s993_s0 + $0x40] ss:$8 sps:$4 sm:$0xff]   ;;  %v789_v21 = vld [vmem:[%s993_s0 + $0x54] ss:$8 sps:$4 sm:$0xff]   ;;  %v792_v23 = vld [vmem:[%s993_s0 + $0x50] ss:$8 sps:$4 sm:$0xff]  }
   0x9   :  { %342 = vmatprep.mubr.bf16.mxu1 %v786_v12  ;;  %v793_v24 = vld [vmem:[%s993_s0 + $0x24] ss:$8 sps:$4 sm:$0xff]   ;;  %v797_v26 = vld [vmem:[%s993_s0 + $0x20] ss:$8 sps:$4 sm:$0xff]   ;;  %v799_v28 = vld [vmem:[%s993_s0 + $0x34] ss:$8 sps:$4 sm:$0xff]  }
   0xa   :  { %v795_v25 = vld [vmem:[%s993_s0 + $0x64] ss:$8 sps:$4 sm:$0xff]   ;;  %v798_v27 = vld [vmem:[%s993_s0 + $0x60] ss:$8 sps:$4 sm:$0xff]   ;;  %v801_v29 = vld [vmem:[%s993_s0 + $0x74] ss:$8 sps:$4 sm:$0xff]  }
   0xb   :  { %690 = vmatpush3.bf16.msra.mxu0 %v770_v5  ;;  %759 = vmatpush3.bf16.msra.mxu1 %v770_v5  ;;  %v803_v30 = vld [vmem:[%s993_s0 + $0x30] ss:$8 sps:$4 sm:$0xff]   ;;  %v929_v35 = vld [vmem:[%s994_s2] ss:$0 sm:$0xff] }
   0xc   :  { %691 = vmatprep.subr.bf16.mxu0 %v771_v6  ;;  %752 = vmatprep.subr.bf16.mxu1 %v771_v6  ;;  %v804_v31 = vld [vmem:[%s993_s0 + $0x70] ss:$8 sps:$4 sm:$0xff]   ;;  %v934_v41 = vld [vmem:[%s995_s3] ss:$0 sm:$0xff] }
   0xf   :  { %692 = vmatpush3.bf16.msra.mxu0 %v772_v7  ;;  %760 = vmatpush3.bf16.msra.mxu1 %v772_v7 }
  0x10   :  { %693 = vmatprep.subr.bf16.mxu0 %v773_v8  ;;  %753 = vmatprep.subr.bf16.mxu1 %v773_v8 }
  0x13   :  { %694 = vmatpush3.bf16.msra.mxu0 %v774_v9  ;;  %761 = vmatpush3.bf16.msra.mxu1 %v774_v9 }
  0x14   :  { %695 = vmatprep.subr.bf16.mxu0 %v775_v10  ;;  %754 = vmatprep.subr.bf16.mxu1 %v775_v10 }
  0x17   :  { %696 = vmatpush3.bf16.msra.mxu0 %v776_v13  ;;  %762 = vmatpush3.bf16.msra.mxu1 %v776_v13 }
  0x18   :  { %697 = vmatprep.subr.bf16.mxu0 %v777_v14  ;;  %755 = vmatprep.subr.bf16.mxu1 %v777_v14 }
  0x1b   :  { %698 = vmatpush3.bf16.msra.mxu0 %v778_v15  ;;  %763 = vmatpush3.bf16.msra.mxu1 %v778_v15 }
  0x1c   :  { %699 = vmatprep.subr.bf16.mxu0 %v779_v16  ;;  %756 = vmatprep.subr.bf16.mxu1 %v779_v16 }
  0x1f   :  { %700 = vmatpush3.bf16.msra.mxu0 %v780_v17  ;;  %764 = vmatpush3.bf16.msra.mxu1 %v780_v17 }
  0x22   :  { %311 = vmatmul.mubr.bf16.vlgmr.msra.gmra.mrb[0].mxu0 %v781_v18  ;;  %343 = vmatmul.mubr.bf16.vlgmr.msra.gmra.mrb[0].mxu1 %v784_v19 }
  0x23   :  { %318 = vmatprep.mubr.bf16.mxu0 %v787_v20  ;;  %350 = vmatprep.mubr.bf16.mxu1 %v789_v21 }
  0x2a   :  { %319 = vmatmul.mubr.bf16.gmra.mrb[4].mxu0 %v791_v22  ;;  %351 = vmatmul.mubr.bf16.gmra.mrb[4].mxu1 %v792_v23 }
  0x2b   :  { %326 = vmatprep.mubr.bf16.mxu0 %v793_v24  ;;  %358 = vmatprep.mubr.bf16.mxu1 %v795_v25 }
  0x32   :  { %327 = vmatmul.mubr.bf16.gmra.mrb[8].mxu0 %v797_v26  ;;  %359 = vmatmul.mubr.bf16.gmra.mrb[8].mxu1 %v798_v27 }
  0x33   :  { %334 = vmatprep.mubr.bf16.mxu0 %v799_v28  ;;  %366 = vmatprep.mubr.bf16.mxu1 %v801_v29 }
  0x3a   :  { %335 = vmatmul.mubr.bf16.gmra.mrb[12].mxu0 %v803_v30  ;;  %367 = vmatmul.mubr.bf16.gmra.mrb[12].mxu1 %v804_v31 }
  0xf5   :  { %v701_v32 = vpop.f32.mrb[0].mxu0  ;;  %v725_v33 = vpop.f32.mrb[0].mxu1 }
  0xf6   :  { %v702_v34 = vpop.f32.mrb[1].mxu0  ;;  %v726_v36 = vpop.f32.mrb[1].mxu1 }
  0xf7   :  { %v703_v37 = vadd.f32 %v702_v34, %v701_v32  ;;  %v727_v38 = vadd.f32 %v726_v36, %v725_v33  ;;  %v704_v39 = vpop.f32.mrb[2].mxu0  ;;  %v728_v40 = vpop.f32.mrb[2].mxu1 }
  0xf8   :  { %v705_v42 = vpop.f32.mrb[3].mxu0  ;;  %v729_v43 = vpop.f32.mrb[3].mxu1 }
  0xf9   :  { %v433_v44 = vmul.f32 %v703_v37, %v929_v35  ;;  %v441_v45 = vmul.f32 %v727_v38, %v929_v35  ;;  %v706_v46 = vadd.f32 %v705_v42, %v704_v39  ;;  %v730_v47 = vadd.f32 %v729_v43, %v728_v40 }
  0xfb   :  { %v456_v48 = vadd.f32 %v934_v41, %v433_v44  ;;  %v464_v49 = vadd.f32 %v934_v41, %v441_v45  ;;  %v434_v50 = vmul.f32 %v706_v46, %v929_v35  ;;  %v442_v51 = vmul.f32 %v730_v47, %v929_v35 }
  0xfd   :  { %v457_v52 = vadd.f32 %v934_v41, %v434_v50  ;;  %v465_v53 = vadd.f32 %v934_v41, %v442_v51  ;;  %v707_v54 = vpop.f32.mrb[4].mxu0  ;;  %v731_v55 = vpop.f32.mrb[4].mxu1  ;;  %v472_v56 = vmax.f32 %v456_v48, 0.0  ;;  %v480_v57 = vmax.f32 %v464_v49, 0.0 }
  0xfe   :  { %v708_v58 = vpop.f32.mrb[5].mxu0  ;;  %v732_v59 = vpop.f32.mrb[5].mxu1 }
  0xff   :  { %v473_v60 = vmax.f32 %v457_v52, 0.0  ;;  %v481_v61 = vmax.f32 %v465_v53, 0.0  ;;  %v709_v62 = vadd.f32 %v708_v58, %v707_v54  ;;  %v733_v63 = vadd.f32 %v732_v59, %v731_v55  ;;  %v710_v0 = vpop.f32.mrb[6].mxu0  ;;  %v734_v1 = vpop.f32.mrb[6].mxu1 }
 0x100   :  { %v711_v2 = vpop.f32.mrb[7].mxu0  ;;  %v735_v3 = vpop.f32.mrb[7].mxu1 }
 0x101   :  { %v641_v4 = vpack.c.bf16 %v473_v60, %v472_v56  ;;  %v661_v5 = vpack.c.bf16 %v481_v61, %v480_v57  ;;  %v435_v6 = vmul.f32 %v709_v62, %v929_v35  ;;  %v443_v7 = vmul.f32 %v733_v63, %v929_v35 }
 0x102   :  { %v712_v8 = vadd.f32 %v711_v2, %v710_v0  ;;  %v736_v9 = vadd.f32 %v735_v3, %v734_v1 }
 0x103   :  { %642 = vst [vmem:[%s996_s4] sm:$0xff] %v641_v4   ;;  %681 = vst [vmem:[%s996_s4 + $0x20] sm:$0xff] %v661_v5   ;;  %v458_v10 = vadd.f32 %v934_v41, %v435_v6  ;;  %v466_v11 = vadd.f32 %v934_v41, %v443_v7 }
 0x104   :  { %v436_v12 = vmul.f32 %v712_v8, %v929_v35  ;;  %v444_v13 = vmul.f32 %v736_v9, %v929_v35 }
 0x105   :  { %v713_v14 = vpop.f32.mrb[8].mxu0  ;;  %v737_v15 = vpop.f32.mrb[8].mxu1  ;;  %v474_v24 = vmax.f32 %v458_v10, 0.0  ;;  %v482_v25 = vmax.f32 %v466_v11, 0.0 }
 0x106   :  { %v459_v16 = vadd.f32 %v934_v41, %v436_v12  ;;  %v467_v17 = vadd.f32 %v934_v41, %v444_v13  ;;  %v714_v18 = vpop.f32.mrb[9].mxu0  ;;  %v738_v19 = vpop.f32.mrb[9].mxu1 }
 0x107   :  { %v715_v20 = vadd.f32 %v714_v18, %v713_v14  ;;  %v739_v21 = vadd.f32 %v738_v19, %v737_v15  ;;  %v716_v22 = vpop.f32.mrb[10].mxu0  ;;  %v740_v23 = vpop.f32.mrb[10].mxu1 }
 0x108   :  { %v475_v26 = vmax.f32 %v459_v16, 0.0  ;;  %v483_v27 = vmax.f32 %v467_v17, 0.0  ;;  %v717_v28 = vpop.f32.mrb[11].mxu0  ;;  %v741_v29 = vpop.f32.mrb[11].mxu1 }
 0x109   :  { %v437_v30 = vmul.f32 %v715_v20, %v929_v35  ;;  %v445_v31 = vmul.f32 %v739_v21, %v929_v35  ;;  %v718_v32 = vadd.f32 %v717_v28, %v716_v22  ;;  %v742_v33 = vadd.f32 %v741_v29, %v740_v23 }
 0x10a   :  { %v646_v34 = vpack.c.bf16 %v475_v26, %v474_v24  ;;  %v666_v36 = vpack.c.bf16 %v483_v27, %v482_v25 }
 0x10b   :  { %v460_v37 = vadd.f32 %v934_v41, %v437_v30  ;;  %v468_v38 = vadd.f32 %v934_v41, %v445_v31  ;;  %v438_v39 = vmul.f32 %v718_v32, %v929_v35  ;;  %v446_v40 = vmul.f32 %v742_v33, %v929_v35 }
 0x10c   :  { %678 = vst [vmem:[%s996_s4 + $0x8] sm:$0xff] %v646_v34   ;;  %682 = vst [vmem:[%s996_s4 + $0x28] sm:$0xff] %v666_v36  }
 0x10d   :  { %v461_v42 = vadd.f32 %v934_v41, %v438_v39  ;;  %v469_v43 = vadd.f32 %v934_v41, %v446_v40  ;;  %v719_v44 = vpop.f32.mrb[12].mxu0  ;;  %v743_v45 = vpop.f32.mrb[12].mxu1  ;;  %v476_v46 = vmax.f32 %v460_v37, 0.0  ;;  %v484_v47 = vmax.f32 %v468_v38, 0.0 }
 0x10e   :  { %v720_v48 = vpop.f32.mrb[13].mxu0  ;;  %v744_v49 = vpop.f32.mrb[13].mxu1 }
 0x10f   :  { %v477_v50 = vmax.f32 %v461_v42, 0.0  ;;  %v485_v51 = vmax.f32 %v469_v43, 0.0  ;;  %v721_v52 = vadd.f32 %v720_v48, %v719_v44  ;;  %v745_v53 = vadd.f32 %v744_v49, %v743_v45  ;;  %v722_v54 = vpop.f32.mrb[14].mxu0  ;;  %v746_v55 = vpop.f32.mrb[14].mxu1 }
 0x110   :  { %v723_v56 = vpop.f32.mrb[15].mxu0  ;;  %v747_v57 = vpop.f32.mrb[15].mxu1 }
 0x111   :  { %v651_v58 = vpack.c.bf16 %v477_v50, %v476_v46  ;;  %v671_v59 = vpack.c.bf16 %v485_v51, %v484_v47  ;;  %v439_v60 = vmul.f32 %v721_v52, %v929_v35  ;;  %v447_v61 = vmul.f32 %v745_v53, %v929_v35 }
 0x112   :  { %v724_v62 = vadd.f32 %v723_v56, %v722_v54  ;;  %v748_v63 = vadd.f32 %v747_v57, %v746_v55 }
 0x113   :  { %679 = vst [vmem:[%s996_s4 + $0x10] sm:$0xff] %v651_v58   ;;  %683 = vst [vmem:[%s996_s4 + $0x30] sm:$0xff] %v671_v59   ;;  %v462_v0 = vadd.f32 %v934_v41, %v439_v60  ;;  %v470_v1 = vadd.f32 %v934_v41, %v447_v61 }
 0x114   :  { %v440_v2 = vmul.f32 %v724_v62, %v929_v35  ;;  %v448_v3 = vmul.f32 %v748_v63, %v929_v35 }
 0x115   :  { %v478_v6 = vmax.f32 %v462_v0, 0.0  ;;  %v486_v7 = vmax.f32 %v470_v1, 0.0 }
 0x116   :  { %v463_v4 = vadd.f32 %v934_v41, %v440_v2  ;;  %v471_v5 = vadd.f32 %v934_v41, %v448_v3 }
 0x118   :  { %v479_v8 = vmax.f32 %v463_v4, 0.0  ;;  %v487_v9 = vmax.f32 %v471_v5, 0.0 }
 0x11a   :  { %v656_v10 = vpack.c.bf16 %v479_v8, %v478_v6  ;;  %v676_v11 = vpack.c.bf16 %v487_v9, %v486_v7 }
 0x11c   :  { %680 = vst [vmem:[%s996_s4 + $0x18] sm:$0xff] %v656_v10   ;;  %684 = vst [vmem:[%s996_s4 + $0x38] sm:$0xff] %v676_v11  }

// kernel: _lambda_.13
= control target key start
LH: loop header
LB: loop body
LE: loop exit
PB: predicated region body
PF: predicated region fallthrough
CT: control target
= control target key end

     0   :  { %v810_v2 = vmov 0   ;;  %s1186_s0 = inlined_call_operand.vmem [shape: bf16[128,128], index: 0, kind: input, shape index: {}]   ;;  %s1187_s1 = inlined_call_operand.vmem [shape: bf16[128,256], index: 1, kind: input, shape index: {}]   ;;  %s1188_s2 = inlined_call_operand.vmem [shape: f32[1,256], index: 2, kind: input, shape index: {}]   ;;  %s1189_s3 = inlined_call_operand.vmem [shape: f32[1,256], index: 3, kind: input, shape index: {}]   ;;  %s1190_s4 = inlined_call_operand.vmem [shape: bf16[128,256], index: 4, kind: input, shape index: {}]   ;;  %s1191_s5 = inlined_call_operand.hbm [shape: f32[128,256], index: 5, kind: output, shape index: {}]  }
   0x1   :  { %v754_v0 = vld [vmem:[%s1187_s1 + $0x4] ss:$8 sps:$4 sm:$0xff]   ;;  %v756_v1 = vld [vmem:[%s1187_s1] ss:$8 sps:$4 sm:$0xff]   ;;  %282 = vmatprep.mubr.bf16.mxu0 %v810_v2  ;;  %322 = vmatprep.mubr.bf16.mxu1 %v810_v2  ;;  %v757_v3 = vld [vmem:[%s1187_s1 + $0x14] ss:$8 sps:$4 sm:$0xff]  }
   0x2   :  { %250 = vmatprep.subr.bf16.mxu0 %v754_v0  ;;  %734 = vmatprep.subr.bf16.mxu1 %v754_v0  ;;  %v759_v4 = vld [vmem:[%s1187_s1 + $0x10] ss:$8 sps:$4 sm:$0xff]   ;;  %v760_v5 = vld [vmem:[%s1187_s1 + $0x24] ss:$8 sps:$4 sm:$0xff]   ;;  %v762_v6 = vld [vmem:[%s1187_s1 + $0x20] ss:$8 sps:$4 sm:$0xff]  }
   0x3   :  { %251 = vmatpush1.bf16.msra.mxu0 %v756_v1  ;;  %742 = vmatpush1.bf16.msra.mxu1 %v756_v1  ;;  %v763_v7 = vld [vmem:[%s1187_s1 + $0x34] ss:$8 sps:$4 sm:$0xff]   ;;  %v765_v8 = vld [vmem:[%s1187_s1 + $0x30] ss:$8 sps:$4 sm:$0xff]   ;;  %v766_v9 = vld [vmem:[%s1187_s1 + $0x44] ss:$8 sps:$4 sm:$0xff]  }
   0x4   :  { %252 = vmatprep.subr.bf16.mxu0 %v757_v3  ;;  %735 = vmatprep.subr.bf16.mxu1 %v757_v3  ;;  %v768_v10 = vld [vmem:[%s1187_s1 + $0x40] ss:$8 sps:$4 sm:$0xff]   ;;  %v769_v11 = vld [vmem:[%s1187_s1 + $0x54] ss:$8 sps:$4 sm:$0xff]  }
   0x7   :  { %253 = vmatpush1.bf16.msra.mxu0 %v759_v4  ;;  %743 = vmatpush1.bf16.msra.mxu1 %v759_v4 }
   0x8   :  { %254 = vmatprep.subr.bf16.mxu0 %v760_v5  ;;  %736 = vmatprep.subr.bf16.mxu1 %v760_v5 }
   0xb   :  { %255 = vmatpush1.bf16.msra.mxu0 %v762_v6  ;;  %744 = vmatpush1.bf16.msra.mxu1 %v762_v6 }
   0xc   :  { %256 = vmatprep.subr.bf16.mxu0 %v763_v7  ;;  %737 = vmatprep.subr.bf16.mxu1 %v763_v7 }
   0xf   :  { %257 = vmatpush1.bf16.msra.mxu0 %v765_v8  ;;  %745 = vmatpush1.bf16.msra.mxu1 %v765_v8 }
  0x10   :  { %258 = vmatprep.subr.bf16.mxu0 %v766_v9  ;;  %738 = vmatprep.subr.bf16.mxu1 %v766_v9 }
  0x11   :  { %10 = vsyncpa [#allocation4], 0  ;;  %v771_v12 = vld [vmem:[%s1187_s1 + $0x50] ss:$8 sps:$4 sm:$0xff]   ;;  %v772_v13 = vld [vmem:[%s1187_s1 + $0x64] ss:$8 sps:$4 sm:$0xff]   ;;  %v464_v25 = vlaneseq }
  0x12   :  { %v774_v14 = vld [vmem:[%s1187_s1 + $0x60] ss:$8 sps:$4 sm:$0xff]   ;;  %v775_v15 = vld [vmem:[%s1187_s1 + $0x74] ss:$8 sps:$4 sm:$0xff]   ;;  %v777_v16 = vld [vmem:[%s1187_s1 + $0x70] ss:$8 sps:$4 sm:$0xff]  }
  0x13   :  { %259 = vmatpush1.bf16.msra.mxu0 %v768_v10  ;;  %746 = vmatpush1.bf16.msra.mxu1 %v768_v10  ;;  %v778_v17 = vld [vmem:[%s1186_s0] sm:$0xff]   ;;  %v780_v19 = vld [vmem:[%s1186_s0 + $0x8] sm:$0xff]   ;;  %v782_v21 = vld [vmem:[%s1186_s0 + $0x10] sm:$0xff]   ;;  %v465_v26 = vshrl.u32 %v464_v25, 7 }
  0x14   :  { %260 = vmatprep.subr.bf16.mxu0 %v769_v11  ;;  %739 = vmatprep.subr.bf16.mxu1 %v769_v11  ;;  %v779_v18 = vld [vmem:[%s1186_s0 + $0x20] sm:$0xff]   ;;  %v781_v20 = vld [vmem:[%s1186_s0 + $0x28] sm:$0xff]   ;;  %v783_v22 = vld [vmem:[%s1186_s0 + $0x30] sm:$0xff]  }
  0x15   :  { %v784_v23 = vld [vmem:[%s1186_s0 + $0x18] sm:$0xff]   ;;  %v466_v27 = vsub.s32 0, %v465_v26  ;;  %v470_v28 = vsub.s32 1, %v465_v26  ;;  %v462_v29 = vld [vmem:[%s1188_s2] sm:$0x3]  ;;  %v943_v33 = vld [vmem:[%s1190_s4 + $0x8] sm:$0xff] }
  0x16   :  { %v785_v24 = vld [vmem:[%s1186_s0 + $0x38] sm:$0xff]   ;;  %v506_v30 = vld [vmem:[%s1189_s3] sm:$0x3]  ;;  %v948_v34 = vld [vmem:[%s1190_s4 + $0x48] sm:$0xff]  ;;  %v568_v47 = vunpack.c.l.bf16 %v943_v33  ;;  %v569_v49 = vunpack.c.h.bf16 %v943_v33 }
  0x17   :  { %261 = vmatpush1.bf16.msra.mxu0 %v771_v12  ;;  %747 = vmatpush1.bf16.msra.mxu1 %v771_v12  ;;  %v933_v31 = vld [vmem:[%s1190_s4] sm:$0xff]  ;;  %v950_v35 = vrot.slane %v462_v29, %v466_v27  ;;  %v952_v36 = vrot.slane %v506_v30, %v466_v27  ;;  %v954_v37 = vrot.slane %v462_v29, %v470_v28  ;;  %v961_v39 = vld [vmem:[%s1190_s4 + $0x10] sm:$0xff]  ;;  %v975_v45 = vld [vmem:[%s1190_s4 + $0x18] sm:$0xff]  ;;  %v584_v48 = vunpack.c.l.bf16 %v948_v34 }
  0x18   :  { %262 = vmatprep.subr.bf16.mxu0 %v772_v13  ;;  %740 = vmatprep.subr.bf16.mxu1 %v772_v13  ;;  %v938_v32 = vld [vmem:[%s1190_s4 + $0x40] sm:$0xff]  ;;  %v956_v38 = vrot.slane %v506_v30, %v470_v28  ;;  %v966_v40 = vld [vmem:[%s1190_s4 + $0x50] sm:$0xff]  ;;  %v566_v41 = vunpack.c.l.bf16 %v933_v31  ;;  %v567_v43 = vunpack.c.h.bf16 %v933_v31  ;;  %v980_v46 = vld [vmem:[%s1190_s4 + $0x58] sm:$0xff]  ;;  %v585_v50 = vunpack.c.h.bf16 %v948_v34 }
  0x19   :  { %v582_v42 = vunpack.c.l.bf16 %v938_v32  ;;  %v583_v44 = vunpack.c.h.bf16 %v938_v32  ;;  %v989_v51 = vld [vmem:[%s1190_s4 + $0x20] sm:$0xff]  ;;  %v570_v53 = vunpack.c.l.bf16 %v961_v39  ;;  %v586_v54 = vunpack.c.l.bf16 %v966_v40  ;;  %v1003_v57 = vld [vmem:[%s1190_s4 + $0x28] sm:$0xff]  ;;  %v1017_v63 = vld [vmem:[%s1190_s4 + $0x30] sm:$0xff] }
  0x1a   :  { %v994_v52 = vld [vmem:[%s1190_s4 + $0x60] sm:$0xff]  ;;  %v571_v55 = vunpack.c.h.bf16 %v961_v39  ;;  %v587_v56 = vunpack.c.h.bf16 %v966_v40  ;;  %v1008_v58 = vld [vmem:[%s1190_s4 + $0x68] sm:$0xff]  ;;  %v572_v59 = vunpack.c.l.bf16 %v975_v45  ;;  %v588_v60 = vunpack.c.l.bf16 %v980_v46  ;;  %v1022_v0 = vld [vmem:[%s1190_s4 + $0x70] sm:$0xff] }
  0x1b   :  { %263 = vmatpush1.bf16.msra.mxu0 %v774_v14  ;;  %748 = vmatpush1.bf16.msra.mxu1 %v774_v14  ;;  %v573_v61 = vunpack.c.h.bf16 %v975_v45  ;;  %v589_v62 = vunpack.c.h.bf16 %v980_v46  ;;  %v574_v1 = vunpack.c.l.bf16 %v989_v51  ;;  %v575_v3 = vunpack.c.h.bf16 %v989_v51  ;;  %v1031_v5 = vld [vmem:[%s1190_s4 + $0x38] sm:$0xff] }
  0x1c   :  { %264 = vmatprep.subr.bf16.mxu0 %v775_v15  ;;  %741 = vmatprep.subr.bf16.mxu1 %v775_v15  ;;  %v591_v4 = vunpack.c.h.bf16 %v994_v52  ;;  %v1036_v6 = vld [vmem:[%s1190_s4 + $0x78] sm:$0xff]  ;;  %v576_v7 = vunpack.c.l.bf16 %v1003_v57  ;;  %v592_v8 = vunpack.c.l.bf16 %v1008_v58  ;;  %v577_v9 = vunpack.c.h.bf16 %v1003_v57  ;;  %s811_s4 = smov [#allocation3]  }
  0x1d   :  { %v593_v10 = vunpack.c.h.bf16 %v1008_v58  ;;  %v578_v13 = vunpack.c.l.bf16 %v1017_v63  ;;  %s699_s21 = sshll.u32 %s811_s4, 4  ;;  %s700_s21 = int_to_ptr.vmem [resolvable:$true] %s699_s21 }
  0x1e   :  { %s786_s22 = scalar_lea.vmem %s700_s21, 4096  ;;  %p791_p1 = scmp.lt.s32.totalorder %s700_s21, %s700_s21 }
  0x1f   :  { %265 = vmatpush1.bf16.msra.mxu0 %v777_v16  ;;  %749 = vmatpush1.bf16.msra.mxu1 %v777_v16  ;;  %p787_p0 = scmp.ne.s32.totalorder %s700_s21, %s786_s22  ;;  %p792_p2 = scmp.lt.s32.totalorder %s786_s22, %s786_s22 }
  0x21   :  { %p793_p3 = por %p792_p2, %p791_p1 }
  0x22   :  { %283 = vmatmul.mubr.bf16.vlgmr.msra.gmra.mrb[0].mxu0 %v778_v17  ;;  %323 = vmatmul.mubr.bf16.vlgmr.msra.gmra.mrb[0].mxu1 %v779_v18 }
  0x23   :  { %292 = vmatprep.mubr.bf16.mxu0 %v810_v2  ;;  %332 = vmatprep.mubr.bf16.mxu1 %v810_v2  ;;  %p794_p4 = pnand %p793_p3, %p787_p0 }
  0x2a   :  { %293 = vmatmul.mubr.bf16.gmra.mrb[4].mxu0 %v780_v19  ;;  %333 = vmatmul.mubr.bf16.gmra.mrb[4].mxu1 %v781_v20 }
  0x2b   :  { %302 = vmatprep.mubr.bf16.mxu0 %v810_v2  ;;  %342 = vmatprep.mubr.bf16.mxu1 %v810_v2 }
  0x32   :  { %303 = vmatmul.mubr.bf16.gmra.mrb[8].mxu0 %v782_v21  ;;  %343 = vmatmul.mubr.bf16.gmra.mrb[8].mxu1 %v783_v22 }
  0x33   :  { %312 = vmatprep.mubr.bf16.mxu0 %v810_v2  ;;  %352 = vmatprep.mubr.bf16.mxu1 %v810_v2  ;;  %v590_v2 = vunpack.c.l.bf16 %v994_v52 }
  0x3a   :  { %313 = vmatmul.mubr.bf16.gmra.mrb[12].mxu0 %v784_v23  ;;  %353 = vmatmul.mubr.bf16.gmra.mrb[12].mxu1 %v785_v24 }
  0xf5   :  { %v284_v11 = vpop.f32.mrb[0].mxu0  ;;  %v324_v12 = vpop.f32.mrb[0].mxu1 }
  0xf6   :  { %v474_v17 = vmul.f32 %v950_v35, %v284_v11  ;;  %v490_v18 = vmul.f32 %v950_v35, %v324_v12  ;;  %v286_v19 = vpop.f32.mrb[1].mxu0  ;;  %v326_v20 = vpop.f32.mrb[1].mxu1 }
  0xf7   :  { %v475_v23 = vmul.f32 %v954_v37, %v286_v19  ;;  %v491_v24 = vmul.f32 %v954_v37, %v326_v20  ;;  %v288_v25 = vpop.f32.mrb[2].mxu0  ;;  %v328_v26 = vpop.f32.mrb[2].mxu1 }
  0xf8   :  { %v518_v29 = vadd.f32 %v952_v36, %v474_v17  ;;  %v534_v30 = vadd.f32 %v952_v36, %v490_v18  ;;  %v476_v11 = vmul.f32 %v950_v35, %v288_v25  ;;  %v492_v12 = vmul.f32 %v950_v35, %v328_v26  ;;  %v290_v21 = vpop.f32.mrb[3].mxu0  ;;  %v330_v22 = vpop.f32.mrb[3].mxu1 }
  0xf9   :  { %v519_v19 = vadd.f32 %v956_v38, %v475_v23  ;;  %v535_v20 = vadd.f32 %v956_v38, %v491_v24  ;;  %v477_v16 = vmul.f32 %v954_v37, %v290_v21  ;;  %v493_v27 = vmul.f32 %v954_v37, %v330_v22 }
  0xfa   :  { %v598_v15 = vadd.f32 %v566_v41, %v518_v29  ;;  %v614_v28 = vadd.f32 %v582_v42, %v534_v30  ;;  %v520_v17 = vadd.f32 %v952_v36, %v476_v11  ;;  %v536_v18 = vadd.f32 %v952_v36, %v492_v12 }
  0xfb   :  { %v599_v25 = vadd.f32 %v567_v43, %v519_v19  ;;  %v615_v26 = vadd.f32 %v583_v44, %v535_v20  ;;  %v521_v23 = vadd.f32 %v956_v38, %v477_v16  ;;  %v537_v24 = vadd.f32 %v956_v38, %v493_v27 }
  0xfc   :  { %v630_v14 = vmax.f32 %v598_v15, 0.0  ;;  %v646_v21 = vmax.f32 %v614_v28, 0.0  ;;  %v600_v41 = vadd.f32 %v568_v47, %v520_v17  ;;  %v616_v42 = vadd.f32 %v584_v48, %v536_v18 }
  0xfd   :  { %v631_v22 = vmax.f32 %v599_v25, 0.0  ;;  %v647_v29 = vmax.f32 %v615_v26, 0.0  ;;  %v601_v31 = vadd.f32 %v569_v49, %v521_v23  ;;  %v617_v32 = vadd.f32 %v585_v50, %v537_v24  ;;  %v294_v43 = vpop.f32.mrb[4].mxu0  ;;  %v334_v44 = vpop.f32.mrb[4].mxu1 }
  0xfe   :  { %662 = vst [vmem:[#allocation3] sm:$0xff] %v630_v14  ;;  %678 = vst [vmem:[#allocation3 + $0x80] sm:$0xff] %v646_v21  ;;  %v632_v15 = vmax.f32 %v600_v41, 0.0  ;;  %v648_v16 = vmax.f32 %v616_v42, 0.0  ;;  %v478_v27 = vmul.f32 %v950_v35, %v294_v43  ;;  %v494_v47 = vmul.f32 %v950_v35, %v334_v44  ;;  %v296_v28 = vpop.f32.mrb[5].mxu0  ;;  %v336_v48 = vpop.f32.mrb[5].mxu1 }
  0xff   :  { %663 = vst [vmem:[#allocation3 + $0x8] sm:$0xff] %v631_v22  ;;  %679 = vst [vmem:[#allocation3 + $0x88] sm:$0xff] %v647_v29  ;;  %v633_v30 = vmax.f32 %v601_v31, 0.0  ;;  %v649_v33 = vmax.f32 %v617_v32, 0.0  ;;  %v479_v49 = vmul.f32 %v954_v37, %v296_v28  ;;  %v495_v34 = vmul.f32 %v954_v37, %v336_v48  ;;  %v298_v50 = vpop.f32.mrb[6].mxu0  ;;  %v338_v11 = vpop.f32.mrb[6].mxu1 }
 0x100   :  { %664 = vst [vmem:[#allocation3 + $0x10] sm:$0xff] %v632_v15  ;;  %680 = vst [vmem:[#allocation3 + $0x90] sm:$0xff] %v648_v16  ;;  %v522_v14 = vadd.f32 %v952_v36, %v478_v27  ;;  %v538_v12 = vadd.f32 %v952_v36, %v494_v47  ;;  %v480_v19 = vmul.f32 %v950_v35, %v298_v50  ;;  %v300_v17 = vpop.f32.mrb[7].mxu0  ;;  %v340_v18 = vpop.f32.mrb[7].mxu1 }
 0x101   :  { %v496_v20 = vmul.f32 %v950_v35, %v338_v11  ;;  %665 = vst [vmem:[#allocation3 + $0x18] sm:$0xff] %v633_v30  ;;  %681 = vst [vmem:[#allocation3 + $0x98] sm:$0xff] %v649_v33  ;;  %v523_v25 = vadd.f32 %v956_v38, %v479_v49  ;;  %v539_v26 = vadd.f32 %v956_v38, %v495_v34 }
 0x102   :  { %v481_v23 = vmul.f32 %v954_v37, %v300_v17  ;;  %v497_v24 = vmul.f32 %v954_v37, %v340_v18  ;;  %v602_v21 = vadd.f32 %v570_v53, %v522_v14  ;;  %v618_v41 = vadd.f32 %v586_v54, %v538_v12 }
 0x103   :  { %v524_v42 = vadd.f32 %v952_v36, %v480_v19  ;;  %v540_v22 = vadd.f32 %v952_v36, %v496_v20  ;;  %v603_v29 = vadd.f32 %v571_v55, %v523_v25  ;;  %v619_v31 = vadd.f32 %v587_v56, %v539_v26 }
 0x104   :  { %v525_v32 = vadd.f32 %v956_v38, %v481_v23  ;;  %v541_v43 = vadd.f32 %v956_v38, %v497_v24  ;;  %v634_v44 = vmax.f32 %v602_v21, 0.0  ;;  %v650_v15 = vmax.f32 %v618_v41, 0.0 }
 0x105   :  { %v604_v53 = vadd.f32 %v572_v59, %v524_v42  ;;  %v620_v54 = vadd.f32 %v588_v60, %v540_v22  ;;  %v635_v16 = vmax.f32 %v603_v29, 0.0  ;;  %v651_v27 = vmax.f32 %v619_v31, 0.0  ;;  %v304_v55 = vpop.f32.mrb[8].mxu0  ;;  %v344_v56 = vpop.f32.mrb[8].mxu1 }
 0x106   :  { %v605_v39 = vadd.f32 %v573_v61, %v525_v32  ;;  %v621_v40 = vadd.f32 %v589_v62, %v541_v43  ;;  %666 = vst [vmem:[#allocation3 + $0x20] sm:$0xff] %v634_v44  ;;  %682 = vst [vmem:[#allocation3 + $0xa0] sm:$0xff] %v650_v15  ;;  %v482_v48 = vmul.f32 %v950_v35, %v304_v55  ;;  %v306_v30 = vpop.f32.mrb[9].mxu0  ;;  %v346_v60 = vpop.f32.mrb[9].mxu1 }
 0x107   :  { %v636_v47 = vmax.f32 %v604_v53, 0.0  ;;  %v652_v28 = vmax.f32 %v620_v54, 0.0  ;;  %v498_v59 = vmul.f32 %v950_v35, %v344_v56  ;;  %667 = vst [vmem:[#allocation3 + $0x28] sm:$0xff] %v635_v16  ;;  %683 = vst [vmem:[#allocation3 + $0xa8] sm:$0xff] %v651_v27  ;;  %v483_v61 = vmul.f32 %v954_v37, %v306_v30  ;;  %v308_v62 = vpop.f32.mrb[10].mxu0  ;;  %v348_v49 = vpop.f32.mrb[10].mxu1 }
 0x108   :  { %v637_v33 = vmax.f32 %v605_v39, 0.0  ;;  %v653_v45 = vmax.f32 %v621_v40, 0.0  ;;  %v499_v46 = vmul.f32 %v954_v37, %v346_v60  ;;  %v526_v34 = vadd.f32 %v952_v36, %v482_v48  ;;  %v310_v12 = vpop.f32.mrb[11].mxu0  ;;  %v350_v19 = vpop.f32.mrb[11].mxu1 }
 0x109   :  { %668 = vst [vmem:[#allocation3 + $0x30] sm:$0xff] %v636_v47  ;;  %684 = vst [vmem:[#allocation3 + $0xb0] sm:$0xff] %v652_v28  ;;  %v542_v50 = vadd.f32 %v952_v36, %v498_v59  ;;  %v484_v11 = vmul.f32 %v950_v35, %v308_v62  ;;  %v500_v14 = vmul.f32 %v950_v35, %v348_v49  ;;  %v1193_v49 = vunpack.c.h.bf16 %v1017_v63 }
 0x10a   :  { %669 = vst [vmem:[#allocation3 + $0x38] sm:$0xff] %v637_v33  ;;  %685 = vst [vmem:[#allocation3 + $0xb8] sm:$0xff] %v653_v45  ;;  %v527_v20 = vadd.f32 %v956_v38, %v483_v61  ;;  %v543_v17 = vadd.f32 %v956_v38, %v499_v46  ;;  %v485_v18 = vmul.f32 %v954_v37, %v310_v12  ;;  %v1192_v61 = vunpack.c.l.bf16 %v1022_v0 }
 0x10b   :  { %v501_v25 = vmul.f32 %v954_v37, %v350_v19  ;;  %v606_v26 = vadd.f32 %v574_v1, %v526_v34  ;;  %v622_v23 = vadd.f32 %v590_v2, %v542_v50  ;;  %v528_v24 = vadd.f32 %v952_v36, %v484_v11 }
 0x10c   :  { %v544_v21 = vadd.f32 %v952_v36, %v500_v14  ;;  %v607_v41 = vadd.f32 %v575_v3, %v527_v20  ;;  %v623_v42 = vadd.f32 %v591_v4, %v543_v17  ;;  %v529_v22 = vadd.f32 %v956_v38, %v485_v18 }
 0x10d   :  { %v545_v29 = vadd.f32 %v956_v38, %v501_v25  ;;  %v638_v31 = vmax.f32 %v606_v26, 0.0  ;;  %v654_v32 = vmax.f32 %v622_v23, 0.0  ;;  %v608_v1 = vadd.f32 %v576_v7, %v528_v24  ;;  %v314_v3 = vpop.f32.mrb[12].mxu0  ;;  %v354_v4 = vpop.f32.mrb[12].mxu1 }
 0x10e   :  { %v624_v2 = vadd.f32 %v592_v8, %v544_v21  ;;  %v639_v43 = vmax.f32 %v607_v41, 0.0  ;;  %v655_v44 = vmax.f32 %v623_v42, 0.0  ;;  %v609_v51 = vadd.f32 %v577_v9, %v529_v22  ;;  %v316_v16 = vpop.f32.mrb[13].mxu0  ;;  %v356_v8 = vpop.f32.mrb[13].mxu1 }
 0x10f   :  { %v625_v52 = vadd.f32 %v593_v10, %v545_v29  ;;  %670 = vst [vmem:[#allocation3 + $0x40] sm:$0xff] %v638_v31  ;;  %686 = vst [vmem:[#allocation3 + $0xc0] sm:$0xff] %v654_v32  ;;  %v640_v15 = vmax.f32 %v608_v1, 0.0  ;;  %v486_v54 = vmul.f32 %v950_v35, %v314_v3  ;;  %v502_v7 = vmul.f32 %v950_v35, %v354_v4  ;;  %v318_v10 = vpop.f32.mrb[14].mxu0  ;;  %v358_v39 = vpop.f32.mrb[14].mxu1 }
 0x110   :  { %v656_v53 = vmax.f32 %v624_v2, 0.0  ;;  %671 = vst [vmem:[#allocation3 + $0x48] sm:$0xff] %v639_v43  ;;  %687 = vst [vmem:[#allocation3 + $0xc8] sm:$0xff] %v655_v44  ;;  %v641_v27 = vmax.f32 %v609_v51, 0.0  ;;  %v487_v9 = vmul.f32 %v954_v37, %v316_v16  ;;  %v503_v58 = vmul.f32 %v954_v37, %v356_v8  ;;  %v320_v28 = vpop.f32.mrb[15].mxu0  ;;  %v360_v48 = vpop.f32.mrb[15].mxu1 }
 0x111   :  { %v657_v57 = vmax.f32 %v625_v52, 0.0  ;;  %672 = vst [vmem:[#allocation3 + $0x50] sm:$0xff] %v640_v15  ;;  %v530_v40 = vadd.f32 %v952_v36, %v486_v54  ;;  %v546_v55 = vadd.f32 %v952_v36, %v502_v7  ;;  %v488_v56 = vmul.f32 %v950_v35, %v318_v10 }
 0x112   :  { %688 = vst [vmem:[#allocation3 + $0xd0] sm:$0xff] %v656_v53  ;;  %v504_v47 = vmul.f32 %v950_v35, %v358_v39  ;;  %673 = vst [vmem:[#allocation3 + $0x58] sm:$0xff] %v641_v27  ;;  %v531_v59 = vadd.f32 %v956_v38, %v487_v9  ;;  %v547_v30 = vadd.f32 %v956_v38, %v503_v58  ;;  %v1194_v50 = vunpack.c.h.bf16 %v1022_v0 }
 0x113   :  { %689 = vst [vmem:[#allocation3 + $0xd8] sm:$0xff] %v657_v57  ;;  %v489_v60 = vmul.f32 %v954_v37, %v320_v28  ;;  %v505_v33 = vmul.f32 %v954_v37, %v360_v48  ;;  %v610_v45 = vadd.f32 %v578_v13, %v530_v40  ;;  %v626_v46 = vadd.f32 %v1192_v61, %v546_v55 }
 0x114   :  { %v532_v35 = vadd.f32 %v952_v36, %v488_v56  ;;  %v548_v62 = vadd.f32 %v952_v36, %v504_v47  ;;  %v611_v34 = vadd.f32 %v1193_v49, %v531_v59  ;;  %v627_v11 = vadd.f32 %v1194_v50, %v547_v30 }
 0x115   :  { %v533_v14 = vadd.f32 %v956_v38, %v489_v60  ;;  %v549_v37 = vadd.f32 %v956_v38, %v505_v33  ;;  %v642_v13 = vmax.f32 %v610_v45, 0.0  ;;  %v658_v12 = vmax.f32 %v626_v46, 0.0 }
 0x116   :  { %v1195_v19 = vunpack.c.l.bf16 %v1031_v5  ;;  %v1196_v17 = vunpack.c.l.bf16 %v1036_v6  ;;  %v643_v18 = vmax.f32 %v611_v34, 0.0  ;;  %v659_v63 = vmax.f32 %v627_v11, 0.0 }
 0x117   :  { %v1197_v25 = vunpack.c.h.bf16 %v1031_v5  ;;  %v1198_v26 = vunpack.c.h.bf16 %v1036_v6  ;;  %674 = vst [vmem:[#allocation3 + $0x60] sm:$0xff] %v642_v13  ;;  %690 = vst [vmem:[#allocation3 + $0xe0] sm:$0xff] %v658_v12 }
 0x118   :  { %v612_v20 = vadd.f32 %v1195_v19, %v532_v35  ;;  %v628_v36 = vadd.f32 %v1196_v17, %v548_v62  ;;  %675 = vst [vmem:[#allocation3 + $0x68] sm:$0xff] %v643_v18  ;;  %691 = vst [vmem:[#allocation3 + $0xe8] sm:$0xff] %v659_v63 }
 0x119   :  { %v613_v0 = vadd.f32 %v1197_v25, %v533_v14  ;;  %v629_v23 = vadd.f32 %v1198_v26, %v549_v37 }
 0x11a   :  { %v644_v38 = vmax.f32 %v612_v20, 0.0  ;;  %v660_v24 = vmax.f32 %v628_v36, 0.0 }
 0x11b   :  { %v645_v21 = vmax.f32 %v613_v0, 0.0  ;;  %v661_v41 = vmax.f32 %v629_v23, 0.0 }
 0x11c   :  { %676 = vst [vmem:[#allocation3 + $0x70] sm:$0xff] %v644_v38  ;;  %692 = vst [vmem:[#allocation3 + $0xf0] sm:$0xff] %v660_v24 }
 0x11d   :  { %677 = vst [vmem:[#allocation3 + $0x78] sm:$0xff] %v645_v21  ;;  %693 = vst [vmem:[#allocation3 + $0xf8] sm:$0xff] %v661_v41 }
 0x11e   :  { %797 = shalt.err (!%p794_p4)
}
 0x11f   :  { %s798_s24 = scalar_lea.hbm %s1191_s5, 4096 }
 0x120   :  { %p799_p5 = scmp.ne.s32.totalorder %s1191_s5, %s798_s24  ;;  %p802_p6 = scmp.lt.u32.totalorder %s798_s24, %s1191_s5 }
 0x122   :  { %p804_p7 = pnand %p802_p6, %p799_p5 }
 0x124   :  { %807 = shalt.err (!%p804_p7)
}
 0x125   :  { %s812_s28 = smov 256   ;;  %s813_s29 = smov 16  }
 0x126   :  { %705 = dma.vmem_to_hbm [thread:$0]  %s700_s21, 4096, %s1191_s5, [#allocation4], %s812_s28, %s812_s28, %s813_s29  }
 0x127   :  { %808 = dma.done.wait [#allocation4], 4096  }
 0x128   :  { %809 = vsyncadd [#allocation4], 4294963200 }
 0x129   :  { %709 = vsyncpa [#allocation4], 1 }

// kernel: _lambda_.12
= control target key start
LH: loop header
LB: loop body
LE: loop exit
PB: predicated region body
PF: predicated region fallthrough
CT: control target
= control target key end

     0   :  { %s2845_s15 = smov 0   ;;  %s2847_s16 = smov 0   ;;  %s3377_s0 = inlined_call_operand.vmem [shape: bf16[2,10,10,128], index: 0, kind: input, shape index: {}]   ;;  %s3378_s1 = inlined_call_operand.vmem [shape: bf16[3,3,128,128], index: 1, kind: input, shape index: {}]   ;;  %s3379_s2 = inlined_call_operand.vmem [shape: f32[1,128], index: 2, kind: input, shape index: {}]   ;;  %s3380_s3 = inlined_call_operand.vmem [shape: f32[1,128], index: 3, kind: input, shape index: {}]   ;;  %s3381_s4 = inlined_call_operand.vmem [shape: bf16[2,64,128], index: 4, kind: output, shape index: {}]  }
   0x1   :  { %s2849_s17 = smov 0  }
   0x2 LB: > { %s26_s18 = sadd.s32 1, %s2814_s16  ;;  %p2001_p0 = scmp.ge.s32.totalorder %s2818_s17, 1  ;;  %s2818_s17 = sphi %s2849_s17, %s14_s17   ;;  %s2814_s16 = sphi %s2847_s16, %s3387_s16   ;;  %s2810_s15 = sphi %s2845_s15, %s3386_s15  }
   0x3   : > { %p28_p1 = scmp.ge.s32.totalorder %s26_s18, 2  ;;  %p201_p2 = scmp.lt.s32.totalorder %s2818_s17, 3 }
   0x5   : > { %s3389_s18 = smov (%p28_p1, %s26_s18), 0  ;;  %p202_p3 = pnand %p2001_p0, %p201_p2 }
   0x6   : > { %v2715_v0 = vld [vmem:[%s3378_s1 + $0x40] sm:$0xff] (!%p202_p3)   ;;  %p240_p4 = scmp.lt.s32.totalorder (!%p202_p3), %s2810_s15, 1  ;;  %v2717_v2 = vld [vmem:[%s3378_s1 + $0x48] sm:$0xff] (!%p202_p3)   ;;  %v2719_v4 = vld [vmem:[%s3378_s1 + $0x50] sm:$0xff] (!%p202_p3)   ;;  %vm300_vm0 = vsmask.f32 (!%p202_p3), 3328 }
   0x7   : > { %205 = sbr.rel (%p202_p3) target bundleno = 395 (0x18b), region = 36  ;;  %v2716_v1 = vld [vmem:[%s3378_s1 + $0x100] sm:$0xff] (!%p202_p3)   ;;  %2394 = vmatprep.subr.bf16.mxu1 (!%p202_p3), %v2715_v0  ;;  %v2718_v3 = vld [vmem:[%s3378_s1 + $0x108] sm:$0xff] (!%p202_p3)   ;;  %v2720_v5 = vld [vmem:[%s3378_s1 + $0x110] sm:$0xff] (!%p202_p3)   ;;  %vm301_vm1 = vsmask.f32 (!%p202_p3), 7440 }
   0x8   : > { %2490 = vmatprep.subr.bf16.mxu0 (!%p202_p3), %v2716_v1  ;;  %2395 = vmatpush3.bf16.msra.mxu1 (!%p202_p3), %v2715_v0  ;;  %v2721_v6 = vld [vmem:[%s3378_s1 + $0x58] sm:$0xff] (!%p202_p3)   ;;  %v2723_v8 = vld [vmem:[%s3378_s1 + $0x60] sm:$0xff] (!%p202_p3)   ;;  %v2725_v10 = vld [vmem:[%s3378_s1 + $0x68] sm:$0xff] (!%p202_p3)   ;;  %vm706_vm3 = vcmask (!%p202_p3), 1042432   ;;  %vm707_vm4 = vcmask (!%p202_p3), 1046532  }
   0x9   : > { %2491 = vmatpush3.bf16.msra.mxu0 (!%p202_p3), %v2716_v1  ;;  %2396 = vmatprep.subr.bf16.mxu1 (!%p202_p3), %v2717_v2  ;;  %v2722_v7 = vld [vmem:[%s3378_s1 + $0x118] sm:$0xff] (!%p202_p3)   ;;  %v2724_v9 = vld [vmem:[%s3378_s1 + $0x120] sm:$0xff] (!%p202_p3)   ;;  %v2726_v14 = vld [vmem:[%s3378_s1 + $0x128] sm:$0xff] (!%p202_p3)  }
   0xa   : > { %2492 = vmatprep.subr.bf16.mxu0 (!%p202_p3), %v2718_v3  ;;  %v2727_v22 = vld [vmem:[%s3378_s1 + $0x70] sm:$0xff] (!%p202_p3)   ;;  %v2729_v38 = vld [vmem:[%s3378_s1 + $0x78] sm:$0xff] (!%p202_p3)   ;;  %vm2952_vm2 = vmor (!%p202_p3), %vm300_vm0, %vm301_vm1 }
   0xb   : > { %v2728_v23 = vld [vmem:[%s3378_s1 + $0x130] sm:$0xff] (!%p202_p3)   ;;  %v2730_v48 = vld [vmem:[%s3378_s1 + $0x138] sm:$0xff] (!%p202_p3)   ;;  %v2731_v62 = vld [vmem:[%s3378_s1] sm:$0xff] (!%p202_p3)  }
   0xc   : > { %2397 = vmatpush3.bf16.msra.mxu1 (!%p202_p3), %v2717_v2  ;;  %vm3065_vm5 = vmor (!%p202_p3), %vm706_vm3, %vm707_vm4  ;;  %v2759_v39 = vld [vmem:[%s3378_s1 + $0xa8] sm:$0xff] (!%p202_p3)  }
   0xd   : > { %2493 = vmatpush3.bf16.msra.mxu0 (!%p202_p3), %v2718_v3  ;;  %2398 = vmatprep.subr.bf16.mxu1 (!%p202_p3), %v2719_v4  ;;  %v2732_v3 = vld [vmem:[%s3378_s1 + $0x140] sm:$0xff] (!%p202_p3)  }
   0xe   : > { %s3391_s15 = smov (!%p240_p4, %s2810_s15), 1  ;;  %2494 = vmatprep.subr.bf16.mxu0 %v2720_v5 }
   0xf   : > { %s2690_s9 = smul.u32 80, %s3391_s15  ;;  %s2254_s14 = sshll.u32 %s3391_s15, 5 }
  0x10   : > { %2399 = vmatpush3.bf16.msra.mxu1 %v2719_v4  ;;  %s262_s22 = scalar_lea.vmem %s3381_s4, %s2254_s14 }
  0x11   : > { %2495 = vmatpush3.bf16.msra.mxu0 %v2720_v5  ;;  %2400 = vmatprep.subr.bf16.mxu1 %v2721_v6  ;;  %s2899_s20 = scalar_lea.vmem %s3377_s0, %s2690_s9 }
  0x12   : > { %2496 = vmatprep.subr.bf16.mxu0 %v2722_v7  ;;  %v2905_v11 = vld [vmem:[%s2899_s20] sm:$0xf]  ;;  %v2908_v12 = vld [vmem:[%s2899_s20 + $0x4] sm:$0x1]  ;;  %v2911_v13 = vld [vmem:[%s2899_s20 + $0x8] sm:$0xf] }
  0x13   : > { %v2917_v15 = vld [vmem:[%s2899_s20 + $0xc] sm:$0x1]  ;;  %v304_v16 = vshrl.u32 %v2905_v11, 16  ;;  %v307_v17 = vshll.u32 %v2905_v11, 16  ;;  %v313_v18 = vshll.u32 %v2908_v12, 16  ;;  %v318_v19 = vshrl.u32 %v2911_v13, 16 }
  0x14   : > { %2401 = vmatpush3.bf16.msra.mxu1 %v2721_v6  ;;  %v321_v20 = vshll.u32 %v2911_v13, 16  ;;  %v327_v21 = vshll.u32 %v2917_v15, 16  ;;  %v2932_v30 = vld [vmem:[%s2899_s20 + $0x10] sm:$0xf]  ;;  %v2935_v31 = vld [vmem:[%s2899_s20 + $0x14] sm:$0x1] }
  0x15   : > { %2497 = vmatpush3.bf16.msra.mxu0 %v2722_v7  ;;  %2402 = vmatprep.subr.bf16.mxu1 %v2723_v8  ;;  %v306_v24 = vrot.slane %v304_v16, 4  ;;  %v309_v25 = vrot.slane %v307_v17, 5  ;;  %v315_v26 = vrot.slane %v313_v18, 5  ;;  %v320_v27 = vrot.slane %v318_v19, 4  ;;  %v2938_v33 = vld [vmem:[%s2899_s20 + $0x18] sm:$0xf] }
  0x16   : > { %2498 = vmatprep.subr.bf16.mxu0 %v2724_v9  ;;  %v323_v28 = vrot.slane %v321_v20, 5  ;;  %v329_v29 = vrot.slane %v327_v21, 5  ;;  %v2941_v34 = vld [vmem:[%s2899_s20 + $0x1c] sm:$0x1]  ;;  %v332_v35 = vshrl.u32 %v2932_v30, 16  ;;  %v335_v36 = vshll.u32 %v2932_v30, 16 }
  0x17   : > { %v310_v32 = vor.u32 %v309_v25, %v306_v24  ;;  %v2097_v37 = vcombine.low %v2911_v13, %v2932_v30  ;;  %v341_v41 = vshll.u32 %v2935_v31, 16  ;;  %v346_v42 = vshrl.u32 %v2938_v33, 16  ;;  %v2964_v52 = vld [vmem:[%s2899_s20 + $0x20] sm:$0xf]  ;;  %v2969_v56 = vld [vmem:[%s2899_s20 + $0x24] sm:$0x1] }
  0x18   : > { %2403 = vmatpush3.bf16.msra.mxu1 %v2723_v8  ;;  %v324_v40 = vor.u32 %v323_v28, %v320_v27  ;;  %v349_v43 = vshll.u32 %v2938_v33, 16  ;;  %v334_v45 = vrot.slane %v332_v35, 4  ;;  %v337_v46 = vrot.slane %v335_v36, 5  ;;  %v2733_v17 = vld [vmem:[%s3378_s1 + $0x8] sm:$0xff]   ;;  %v2737_v35 = vld [vmem:[%s3378_s1 + $0x18] sm:$0xff]  }
  0x19   : > { %2499 = vmatpush3.bf16.msra.mxu0 %v2724_v9  ;;  %2404 = vmatprep.subr.bf16.mxu1 %v2725_v10  ;;  %v311_v44 = vrot.slane %v310_v32, 4  ;;  %v355_v47 = vshll.u32 %v2941_v34, 16  ;;  %v348_v50 = vrot.slane %v346_v42, 4  ;;  %v343_v55 = vrot.slane %v341_v41, 5  ;;  %v2734_v24 = vld [vmem:[%s3378_s1 + $0x148] sm:$0xff]   ;;  %v2736_v32 = vld [vmem:[%s3378_s1 + $0x150] sm:$0xff]  }
  0x1a   : > { %2500 = vmatprep.subr.bf16.mxu0 %v2726_v14  ;;  %v325_v49 = vrot.slane %v324_v40, 4  ;;  %v351_v51 = vrot.slane %v349_v43, 5  ;;  %v338_v54 = vor.u32 %v337_v46, %v334_v45  ;;  %v360_v60 = vshrl.u32 %v2964_v52, 16  ;;  %v3005_v25 = vld [vmem:[%s2899_s20 + $0x28] sm:$0xf] }
  0x1b   : > { %v316_v53 = vsel %vm2952_vm2, %v311_v44, %v315_v26  ;;  %v357_v59 = vrot.slane %v355_v47, 5  ;;  %v363_v0 = vshll.u32 %v2964_v52, 16  ;;  %v369_v1 = vshll.u32 %v2969_v56, 16  ;;  %v3009_v27 = vld [vmem:[%s2899_s20 + $0x2c] sm:$0x1] }
  0x1c   : > { %2405 = vmatpush3.bf16.msra.mxu1 %v2725_v10  ;;  %v330_v57 = vsel %vm2952_vm2, %v325_v49, %v329_v29  ;;  %v352_v58 = vor.u32 %v351_v51, %v348_v50  ;;  %v339_v63 = vrot.slane %v338_v54, 4  ;;  %v362_v4 = vrot.slane %v360_v60, 4  ;;  %v3024_v42 = vld [vmem:[%s2899_s20 + $0x34] sm:$0x1]  ;;  %v2738_v54 = vld [vmem:[%s3378_s1 + $0x158] sm:$0xff]  }
  0x1d   : > { %2501 = vmatpush3.bf16.msra.mxu0 %v2726_v14  ;;  %2406 = vmatprep.subr.bf16.mxu1 %v2727_v22  ;;  %v2021_v61 = vcombine.low %v316_v53, %v330_v57  ;;  %v365_v6 = vrot.slane %v363_v0, 5  ;;  %v2098_v7 = vcombine.low %v2938_v33, %v2964_v52  ;;  %v371_v16 = vrot.slane %v369_v1, 5  ;;  %v3033_v53 = vld [vmem:[%s2899_s20 + $0x38] sm:$0xf]  ;;  %v3048_v0 = vld [vmem:[%s2899_s20 + $0x40] sm:$0xf] }
  0x1e   : > { %2502 = vmatprep.subr.bf16.mxu0 %v2728_v23  ;;  %v353_v2 = vrot.slane %v352_v58, 4  ;;  %v344_v5 = vsel %vm2952_vm2, %v339_v63, %v343_v55  ;;  %v715_v19 = vrot.slane %v2917_v15, 5  ;;  %v719_v20 = vrot.slane %v2935_v31, 5  ;;  %v2739_v55 = vld [vmem:[%s3378_s1 + $0x20] sm:$0xff]   ;;  %v3042_v58 = vld [vmem:[%s2899_s20 + $0x3c] sm:$0x1] }
  0x1f   : > { %2410 = vmatprep.mubr.bf16.mxu1 %v2021_v61  ;;  %v2125_v9 = vcombine.low %v330_v57, %v344_v5  ;;  %v366_v14 = vor.u32 %v365_v6, %v362_v4  ;;  %v2046_v26 = vrot.slane %v2911_v13, 9  ;;  %v374_v28 = vshrl.u32 %v3005_v25, 16  ;;  %v3051_v1 = vld [vmem:[%s2899_s20 + $0x44] sm:$0x1]  ;;  %v2742_v15 = vld [vmem:[%s3378_s1 + $0x168] sm:$0xff]  }
  0x20   : > { %2407 = vmatpush3.bf16.msra.mxu1 %v2727_v22  ;;  %v358_v8 = vsel %vm2952_vm2, %v353_v2, %v357_v59  ;;  %v2735_v22 = vld [vmem:[%s3378_s1 + $0x10] sm:$0xff]   ;;  %v377_v29 = vshll.u32 %v3005_v25, 16  ;;  %v383_v36 = vshll.u32 %v3009_v27, 16  ;;  %v397_v45 = vshll.u32 %v3024_v42, 16 }
  0x21   : > { %2503 = vmatpush3.bf16.msra.mxu0 %v2728_v23  ;;  %2408 = vmatprep.subr.bf16.mxu1 %v2729_v38  ;;  %v2988_v10 = vcombine.low %v344_v5, %v358_v8  ;;  %v367_v18 = vrot.slane %v366_v14, 4  ;;  %v376_v40 = vrot.slane %v374_v28, 4  ;;  %v2047_v46 = vrot.slane %v2932_v30, 9  ;;  %v2741_v28 = vld [vmem:[%s3378_s1 + $0x28] sm:$0xff]  }
  0x22   : > { %2504 = vmatprep.subr.bf16.mxu0 %v2730_v48  ;;  %2506 = vmatprep.mubr.bf16.mxu0 %v2125_v9  ;;  %v379_v41 = vrot.slane %v377_v29, 5  ;;  %v385_v49 = vrot.slane %v383_v36, 5  ;;  %v399_v57 = vrot.slane %v397_v45, 5  ;;  %v402_v59 = vshrl.u32 %v3033_v53, 16 }
  0x23   : > { %v372_v21 = vsel %vm2952_vm2, %v367_v18, %v371_v16  ;;  %v405_v60 = vshll.u32 %v3033_v53, 16  ;;  %v411_v63 = vshll.u32 %v3042_v58, 16  ;;  %v1044_v4 = vshrl.u32 %v3048_v0, 16  ;;  %v2740_v16 = vld [vmem:[%s3378_s1 + $0x160] sm:$0xff]  }
  0x24   : > { %2409 = vmatpush3.bf16.msra.mxu1 %v2729_v38  ;;  %v2126_v23 = vcombine.low %v358_v8, %v372_v21  ;;  %v3021_v38 = vld [vmem:[%s2899_s20 + $0x30] sm:$0xf]  ;;  %v404_v2 = vrot.slane %v402_v59, 4  ;;  %v1047_v5 = vshll.u32 %v3048_v0, 16  ;;  %v1053_v14 = vshll.u32 %v3051_v1, 16  ;;  %v2748_v59 = vld [vmem:[%s3378_s1 + $0x80] sm:$0xff]  }
  0x25   : > { %2505 = vmatpush3.bf16.msra.mxu0 %v2730_v48  ;;  %2418 = vmatprep.subr.bf16.mxu1 %v2731_v62  ;;  %v388_v43 = vshrl.u32 %v3021_v38, 16  ;;  %v391_v44 = vshll.u32 %v3021_v38, 16  ;;  %v2099_v47 = vcombine.low %v3005_v25, %v3021_v38  ;;  %v380_v48 = vor.u32 %v379_v41, %v376_v40 }
  0x26   : > { %2514 = vmatprep.subr.bf16.mxu0 %v2732_v3  ;;  %v413_v9 = vrot.slane %v411_v63, 5  ;;  %v1055_v41 = vrot.slane %v1053_v14, 5  ;;  %v3087_v45 = vsel %vm3065_vm5, %v2046_v26, %v715_v19  ;;  %v711_v26 = vrot.slane %v2908_v12, 5  ;;  %v3133_v63 = vld [vmem:[%s2899_s20 + $0x48] sm:$0xf]  ;;  %v2749_v14 = vld [vmem:[%s3378_s1 + $0x180] sm:$0xff]  }
  0x27   : > { %2411 = vmatmul.mubr.bf16.vlgmr.msra.gmra.mrb[0].mxu1 %v2988_v10  ;;  %v390_v50 = vrot.slane %v388_v43, 4  ;;  %v393_v51 = vrot.slane %v391_v44, 5  ;;  %v381_v61 = vrot.slane %v380_v48, 4  ;;  %v3093_v48 = vsel %vm3065_vm5, %v2047_v46, %v719_v20 }
  0x28   : > { %2419 = vmatpush3.bf16.msra.mxu1 %v2731_v62  ;;  %2507 = vmatmul.mubr.bf16.vlgmr.msra.gmra.mrb[0].mxu0 %v2126_v23  ;;  %v1049_v23 = vrot.slane %v1047_v5, 5  ;;  %v2154_v20 = vcombine.low %v3087_v45, %v3093_v48  ;;  %v723_v46 = vrot.slane %v2941_v34, 5  ;;  %v2048_v12 = vrot.slane %v2938_v33, 9  ;;  %v283_v5 = vld [vmem:[%s2899_s20 + $0x4c] sm:$0x1] }
  0x29   : > { %2420 = vmatprep.subr.bf16.mxu1 %v2733_v17  ;;  %2515 = vmatpush3.bf16.msra.mxu0 %v2732_v3  ;;  %v394_v62 = vor.u32 %v393_v51, %v390_v50  ;;  %v407_v3 = vrot.slane %v405_v60, 5  ;;  %v386_v6 = vsel %vm2952_vm2, %v381_v61, %v385_v49  ;;  %v2743_v49 = vld [vmem:[%s3378_s1 + $0x30] sm:$0xff]   ;;  %v727_v51 = vrot.slane %v2969_v56, 5 }
  0x2a   : > { %2516 = vmatprep.subr.bf16.mxu0 %v2734_v24  ;;  %v2049_v34 = vrot.slane %v2964_v52, 9  ;;  %v2045_v56 = vrot.slane %v2905_v11, 9  ;;  %v2050_v60 = vrot.slane %v3005_v25, 9  ;;  %v731_v61 = vrot.slane %v3009_v27, 5  ;;  %v2751_v27 = vld [vmem:[%s3378_s1 + $0x88] sm:$0xff]  }
  0x2b   : > { %v395_v8 = vrot.slane %v394_v62, 4  ;;  %v408_v18 = vor.u32 %v407_v3, %v404_v2  ;;  %v2051_v62 = vrot.slane %v3021_v38, 9  ;;  %v1207_v2 = vrot.slane %v3051_v1, 5 }
  0x2c   : > { %2421 = vmatpush3.bf16.msra.mxu1 %v2733_v17  ;;  %v3061_v17 = vcombine.low %v372_v21, %v386_v6  ;;  %v2100_v21 = vcombine.low %v3033_v53, %v3048_v0  ;;  %v3139_v3 = vcombine.low %v2932_v30, %v2938_v33  ;;  %v3153_v1 = vsel %vm3065_vm5, %v2048_v12, %v723_v46  ;;  %v2776_v30 = vld [vmem:[%s3378_s1 + $0x1e0] sm:$0xff]   ;;  %v2791_v33 = vld [vmem:[%s3378_s1 + $0x218] sm:$0xff]  }
  0x2d   : > { %2422 = vmatprep.subr.bf16.mxu1 %v2735_v22  ;;  %2517 = vmatpush3.bf16.msra.mxu0 %v2734_v24  ;;  %v400_v29 = vsel %vm2952_vm2, %v395_v8, %v399_v57  ;;  %v409_v36 = vrot.slane %v408_v18, 4  ;;  %v2746_v57 = vld [vmem:[%s3378_s1 + $0x178] sm:$0xff]   ;;  %v3149_v8 = vcombine.low %v2964_v52, %v3005_v25  ;;  %v3200_v46 = vcombine.low %v3021_v38, %v3033_v53  ;;  %v2757_v24 = vld [vmem:[%s3378_s1 + $0xa0] sm:$0xff]   ;;  %v2794_v25 = vld [vmem:[%s3378_s1 + $0x230] sm:$0xff]  }
  0x2e   : > { %2518 = vmatprep.subr.bf16.mxu0 %v2736_v32  ;;  %2414 = vmatprep.mubr.bf16.mxu1 %v3061_v17  ;;  %v2792_v52 = vld [vmem:[%s3378_s1 + $0x220] sm:$0xff]   ;;  %v2795_v38 = vld [vmem:[%s3378_s1 + $0x238] sm:$0xff]  }
  0x2f   : > { %v414_v43 = vsel %vm2952_vm2, %v409_v36, %v413_v9  ;;  %v1656_v9 = vrot.slane %v283_v5, 5  ;;  %v1502_v36 = vshll.u32 %v3133_v63, 16 }
  0x30   : > { %2423 = vmatpush3.bf16.msra.mxu1 %v2735_v22  ;;  %v1046_v22 = vrot.slane %v1044_v4, 4  ;;  %v3098_v50 = vcombine.low %v400_v29, %v414_v43  ;;  %v735_v4 = vrot.slane %v3024_v42, 5  ;;  %v3157_v42 = vsel %vm3065_vm5, %v2049_v34, %v727_v51  ;;  %v2754_v34 = vld [vmem:[%s3378_s1 + $0x190] sm:$0xff]  }
  0x31   : > { %2424 = vmatprep.subr.bf16.mxu1 %v2737_v35  ;;  %2519 = vmatpush3.bf16.msra.mxu0 %v2736_v32  ;;  %v2033_v32 = vcombine.low %v2905_v11, %v2911_v13  ;;  %v2137_v11 = vrot.slane %v3048_v0, 9  ;;  %v2777_v13 = vld [vmem:[%s3378_s1 + $0xe8] sm:$0xff]  }
  0x32   : > { %2520 = vmatprep.subr.bf16.mxu0 %v2738_v54  ;;  %v1050_v40 = vor.u32 %v1049_v23, %v1046_v22  ;;  %2415 = vmatmul.mubr.bf16.gmra.mrb[4].mxu1 %v3098_v50  ;;  %v1499_v22 = vshrl.u32 %v3133_v63, 16  ;;  %v2753_v23 = vld [vmem:[%s3378_s1 + $0x90] sm:$0xff]  }
  0x33   : > { %2434 = vmatprep.mubr.bf16.mxu1 %v2033_v32 }
  0x34   : > { %2425 = vmatpush3.bf16.msra.mxu1 %v2737_v35  ;;  %v2127_v35 = vcombine.low %v386_v6, %v400_v29  ;;  %v1051_v44 = vrot.slane %v1050_v40, 4  ;;  %v2216_v6 = vrot.slane %v3133_v63, 9  ;;  %v3181_v29 = vsel %vm3065_vm5, %v2051_v62, %v735_v4  ;;  %v2765_v62 = vld [vmem:[%s3378_s1 + $0xb8] sm:$0xff]  }
  0x35   : > { %2426 = vmatprep.subr.bf16.mxu1 %v2739_v55  ;;  %2521 = vmatpush3.bf16.msra.mxu0 %v2738_v54  ;;  %v2745_v54 = vld [vmem:[%s3378_s1 + $0x38] sm:$0xff]   ;;  %v2155_v40 = vcombine.low %v3153_v1, %v3157_v42  ;;  %v1501_v32 = vrot.slane %v1499_v22, 4  ;;  %v3251_v4 = vcombine.low %v3093_v48, %v3153_v1  ;;  %v2771_v48 = vld [vmem:[%s3378_s1 + $0xd0] sm:$0xff]   ;;  %v2775_v22 = vld [vmem:[%s3378_s1 + $0xe0] sm:$0xff]  }
  0x36   : > { %2510 = vmatprep.mubr.bf16.mxu0 %v2127_v35  ;;  %2522 = vmatprep.subr.bf16.mxu0 %v2740_v16  ;;  %v3105_v31 = vsel %vm2952_vm2, %v1051_v44, %v1055_v41  ;;  %v3168_v18 = vsel %vm3065_vm5, %v2216_v6, %v1656_v9  ;;  %v2052_v41 = vrot.slane %v3033_v53, 9  ;;  %v712_v44 = vsel %vm3065_vm5, %v2045_v56, %v711_v26  ;;  %v2769_v6 = vld [vmem:[%s3378_s1 + $0xc8] sm:$0xff]  }
  0x37   : > { %v2128_v19 = vcombine.low %v414_v43, %v3105_v31  ;;  %v739_v43 = vrot.slane %v3042_v58, 5  ;;  %v2069_v58 = vcombine.low %v712_v44, %v3087_v45  ;;  %v2770_v9 = vld [vmem:[%s3378_s1 + $0x1c8] sm:$0xff]  }
  0x38   : > { %2427 = vmatpush3.bf16.msra.mxu1 %v2739_v55  ;;  %v2744_v55 = vld [vmem:[%s3378_s1 + $0x170] sm:$0xff]  }
  0x39   : > { %2428 = vmatprep.subr.bf16.mxu1 %v2741_v28  ;;  %2523 = vmatpush3.bf16.msra.mxu0 %v2740_v16  ;;  %v3164_v16 = vsel %vm3065_vm5, %v2137_v11, %v1207_v2  ;;  %v2763_v11 = vld [vmem:[%s3378_s1 + $0x1b0] sm:$0xff]   ;;  %v2767_v2 = vld [vmem:[%s3378_s1 + $0xc0] sm:$0xff]  }
  0x3a   : > { %2524 = vmatprep.subr.bf16.mxu0 %v2742_v15  ;;  %2511 = vmatmul.mubr.bf16.gmra.mrb[4].mxu0 %v2128_v19  ;;  %v2233_v35 = vcombine.low %v3164_v16, %v3168_v18  ;;  %v2242_v18 = vld [vmem:[%s3379_s2] ss:$0 sm:$0xff] }
  0x3b   : > { %2530 = vmatprep.mubr.bf16.mxu0 %v2154_v20  ;;  %v1508_v20 = vshll.u32 %v283_v5, 16 }
  0x3c   : > { %2429 = vmatpush3.bf16.msra.mxu1 %v2741_v28  ;;  %v3177_v28 = vsel %vm3065_vm5, %v2050_v60, %v731_v61  ;;  %v2762_v60 = vld [vmem:[%s3378_s1 + $0xb0] sm:$0xff]   ;;  %v2760_v61 = vld [vmem:[%s3378_s1 + $0x1a8] sm:$0xff]  }
  0x3d   : > { %2430 = vmatprep.subr.bf16.mxu1 %v2743_v49  ;;  %2525 = vmatpush3.bf16.msra.mxu0 %v2742_v15  ;;  %v2752_v15 = vld [vmem:[%s3378_s1 + $0x188] sm:$0xff]   ;;  %v2156_v19 = vcombine.low %v3177_v28, %v3181_v29  ;;  %v1510_v26 = vrot.slane %v1508_v20, 5  ;;  %v3255_v5 = vcombine.low %v3157_v42, %v3177_v28  ;;  %v2773_v42 = vld [vmem:[%s3378_s1 + $0xd8] sm:$0xff]  }
  0x3e   : > { %2526 = vmatprep.subr.bf16.mxu0 %v2744_v55  ;;  %v2782_v28 = vld [vmem:[%s3378_s1 + $0xf8] sm:$0xff]  }
  0x40   : > { %2431 = vmatpush3.bf16.msra.mxu1 %v2743_v49  ;;  %v1504_v49 = vrot.slane %v1502_v36, 5  ;;  %v2783_v36 = vld [vmem:[%s3378_s1 + $0x1f8] sm:$0xff]  }
  0x41   : > { %2432 = vmatprep.subr.bf16.mxu1 %v2745_v54  ;;  %2527 = vmatpush3.bf16.msra.mxu0 %v2744_v55  ;;  %v740_v55 = vsel %vm3065_vm5, %v2052_v41, %v739_v43  ;;  %v2790_v41 = vld [vmem:[%s3378_s1 + $0x210] sm:$0xff]  }
  0x42   : > { %2528 = vmatprep.subr.bf16.mxu0 %v2746_v57  ;;  %v1505_v51 = vor.u32 %v1504_v49, %v1501_v32  ;;  %v2157_v56 = vcombine.low %v740_v55, %v3164_v16  ;;  %v3272_v1 = vcombine.low %v3181_v29, %v740_v55  ;;  %v2786_v29 = vld [vmem:[%s3378_s1 + $0x200] sm:$0xff]  }
  0x44   : > { %2433 = vmatpush3.bf16.msra.mxu1 %v2745_v54  ;;  %v2755_v54 = vld [vmem:[%s3378_s1 + $0x98] sm:$0xff]   ;;  %v1506_v12 = vrot.slane %v1505_v51, 4 }
  0x45   : > { %2442 = vmatprep.subr.bf16.mxu1 %v2748_v59  ;;  %2529 = vmatpush3.bf16.msra.mxu0 %v2746_v57 }
  0x46   : > { %2538 = vmatprep.subr.bf16.mxu0 %v2749_v14  ;;  %v1511_v45 = vsel %vm2952_vm2, %v1506_v12, %v1510_v26 }
  0x47   : > { %2435 = vmatmul.mubr.bf16.vlgmr.msra.gmra.mrb[0].mxu1 %v3139_v3  ;;  %v3216_v57 = vcombine.low %v3105_v31, %v1511_v45  ;;  %v2758_v31 = vld [vmem:[%s3378_s1 + $0x1a0] sm:$0xff]  }
  0x48   : > { %2443 = vmatpush3.bf16.msra.mxu1 %v2748_v59  ;;  %2438 = vmatprep.mubr.bf16.mxu1 %v3149_v8  ;;  %v2756_v59 = vld [vmem:[%s3378_s1 + $0x198] sm:$0xff]  }
  0x49   : > { %2444 = vmatprep.subr.bf16.mxu1 %v2751_v27  ;;  %2531 = vmatmul.mubr.bf16.vlgmr.msra.gmra.mrb[0].mxu0 %v2155_v40  ;;  %v2787_v40 = vld [vmem:[%s3378_s1 + $0x208] sm:$0xff]  }
  0x4a   : > { %2539 = vmatpush3.bf16.msra.mxu0 %v2749_v14  ;;  %2534 = vmatprep.mubr.bf16.mxu0 %v2156_v19  ;;  %v2772_v14 = vld [vmem:[%s3378_s1 + $0x1d0] sm:$0xff]  }
  0x4b   : > { %2540 = vmatprep.subr.bf16.mxu0 %v2752_v15 }
  0x4c   : > { %2445 = vmatpush3.bf16.msra.mxu1 %v2751_v27  ;;  %v2768_v27 = vld [vmem:[%s3378_s1 + $0x1c0] sm:$0xff]  }
  0x4d   : > { %2446 = vmatprep.subr.bf16.mxu1 %v2753_v23 }
  0x4e   : > { %2541 = vmatpush3.bf16.msra.mxu0 %v2752_v15 }
  0x4f   : > { %2439 = vmatmul.mubr.bf16.gmra.mrb[4].mxu1 %v3200_v46  ;;  %2542 = vmatprep.subr.bf16.mxu0 %v2754_v34 }
  0x50   : > { %2447 = vmatpush3.bf16.msra.mxu1 %v2753_v23  ;;  %2458 = vmatprep.mubr.bf16.mxu1 %v2069_v58  ;;  %v2774_v23 = vld [vmem:[%s3378_s1 + $0x1d8] sm:$0xff]  }
  0x51   : > { %2448 = vmatprep.subr.bf16.mxu1 %v2755_v54  ;;  %2535 = vmatmul.mubr.bf16.gmra.mrb[4].mxu0 %v2157_v56 }
  0x52   : > { %2543 = vmatpush3.bf16.msra.mxu0 %v2754_v34  ;;  %2554 = vmatprep.mubr.bf16.mxu0 %v3139_v3  ;;  %v2766_v3 = vld [vmem:[%s3378_s1 + $0x1b8] sm:$0xff]  }
  0x53   : > { %2544 = vmatprep.subr.bf16.mxu0 %v2756_v59 }
  0x54   : > { %2449 = vmatpush3.bf16.msra.mxu1 %v2755_v54  ;;  %v2243_v54 = vld [vmem:[%s3380_s3] ss:$0 sm:$0xff] }
  0x55   : > { %2450 = vmatprep.subr.bf16.mxu1 %v2757_v24 }
  0x56   : > { %2545 = vmatpush3.bf16.msra.mxu0 %v2756_v59 }
  0x57   : > { %2546 = vmatprep.subr.bf16.mxu0 %v2758_v31 }
  0x58   : > { %2451 = vmatpush3.bf16.msra.mxu1 %v2757_v24 }
  0x59   : > { %2452 = vmatprep.subr.bf16.mxu1 %v2759_v39 }
  0x5a   : > { %2547 = vmatpush3.bf16.msra.mxu0 %v2758_v31 }
  0x5b   : > { %2548 = vmatprep.subr.bf16.mxu0 %v2760_v61 }
  0x5c   : > { %2453 = vmatpush3.bf16.msra.mxu1 %v2759_v39 }
  0x5d   : > { %2454 = vmatprep.subr.bf16.mxu1 %v2762_v60 }
  0x5e   : > { %2549 = vmatpush3.bf16.msra.mxu0 %v2760_v61 }
  0x5f   : > { %2550 = vmatprep.subr.bf16.mxu0 %v2763_v11 }
  0x60   : > { %2455 = vmatpush3.bf16.msra.mxu1 %v2762_v60 }
  0x61   : > { %2456 = vmatprep.subr.bf16.mxu1 %v2765_v62 }
  0x62   : > { %2551 = vmatpush3.bf16.msra.mxu0 %v2763_v11 }
  0x63   : > { %2552 = vmatprep.subr.bf16.mxu0 %v2766_v3 }
  0x64   : > { %2457 = vmatpush3.bf16.msra.mxu1 %v2765_v62 }
  0x65   : > { %2466 = vmatprep.subr.bf16.mxu1 %v2767_v2 }
  0x66   : > { %2553 = vmatpush3.bf16.msra.mxu0 %v2766_v3 }
  0x67   : > { %2459 = vmatmul.mubr.bf16.vlgmr.msra.gmra.mrb[0].mxu1 %v3251_v4  ;;  %2562 = vmatprep.subr.bf16.mxu0 %v2768_v27 }
  0x68   : > { %2467 = vmatpush3.bf16.msra.mxu1 %v2767_v2  ;;  %2462 = vmatprep.mubr.bf16.mxu1 %v3255_v5 }
  0x69   : > { %2468 = vmatprep.subr.bf16.mxu1 %v2769_v6  ;;  %2555 = vmatmul.mubr.bf16.vlgmr.msra.gmra.mrb[0].mxu0 %v3149_v8  ;;  %v2182_v8 = vcombine.low %v3048_v0, %v3133_v63  ;;  %v2778_v63 = vld [vmem:[%s3378_s1 + $0x1e8] sm:$0xff]  }
  0x6a   : > { %2563 = vmatpush3.bf16.msra.mxu0 %v2768_v27  ;;  %2558 = vmatprep.mubr.bf16.mxu0 %v3200_v46 }
  0x6b   : > { %2564 = vmatprep.subr.bf16.mxu0 %v2770_v9 }
  0x6c   : > { %2469 = vmatpush3.bf16.msra.mxu1 %v2769_v6 }
  0x6d   : > { %2470 = vmatprep.subr.bf16.mxu1 %v2771_v48 }
  0x6e   : > { %2565 = vmatpush3.bf16.msra.mxu0 %v2770_v9 }
  0x6f   : > { %2463 = vmatmul.mubr.bf16.gmra.mrb[4].mxu1 %v3272_v1  ;;  %2566 = vmatprep.subr.bf16.mxu0 %v2772_v14 }
  0x70   : > { %2471 = vmatpush3.bf16.msra.mxu1 %v2771_v48  ;;  %2482 = vmatprep.mubr.bf16.mxu1 %v2097_v37  ;;  %v2779_v37 = vld [vmem:[%s3378_s1 + $0xf0] sm:$0xff]  }
  0x71   : > { %2472 = vmatprep.subr.bf16.mxu1 %v2773_v42  ;;  %2559 = vmatmul.mubr.bf16.gmra.mrb[4].mxu0 %v2182_v8 }
  0x72   : > { %2567 = vmatpush3.bf16.msra.mxu0 %v2772_v14  ;;  %2578 = vmatprep.mubr.bf16.mxu0 %v2988_v10  ;;  %v2781_v10 = vld [vmem:[%s3378_s1 + $0x1f0] sm:$0xff]  }
  0x73   : > { %2568 = vmatprep.subr.bf16.mxu0 %v2774_v23 }
  0x74   : > { %2473 = vmatpush3.bf16.msra.mxu1 %v2773_v42 }
  0x75   : > { %2474 = vmatprep.subr.bf16.mxu1 %v2775_v22 }
  0x76   : > { %2569 = vmatpush3.bf16.msra.mxu0 %v2774_v23 }
  0x77   : > { %2570 = vmatprep.subr.bf16.mxu0 %v2776_v30 }
  0x78   : > { %2475 = vmatpush3.bf16.msra.mxu1 %v2775_v22 }
  0x79   : > { %2476 = vmatprep.subr.bf16.mxu1 %v2777_v13 }
  0x7a   : > { %2571 = vmatpush3.bf16.msra.mxu0 %v2776_v30 }
  0x7b   : > { %2572 = vmatprep.subr.bf16.mxu0 %v2778_v63 }
  0x7c   : > { %2477 = vmatpush3.bf16.msra.mxu1 %v2777_v13 }
  0x7d   : > { %2478 = vmatprep.subr.bf16.mxu1 %v2779_v37 }
  0x7e   : > { %2573 = vmatpush3.bf16.msra.mxu0 %v2778_v63 }
  0x7f   : > { %2574 = vmatprep.subr.bf16.mxu0 %v2781_v10 }
  0x80   : > { %2479 = vmatpush3.bf16.msra.mxu1 %v2779_v37 }
  0x81   : > { %2480 = vmatprep.subr.bf16.mxu1 %v2782_v28 }
  0x82   : > { %2575 = vmatpush3.bf16.msra.mxu0 %v2781_v10 }
  0x83   : > { %2576 = vmatprep.subr.bf16.mxu0 %v2783_v36 }
  0x84   : > { %2481 = vmatpush3.bf16.msra.mxu1 %v2782_v28 }
  0x85   : > { %2610 = vmatprep.subr.bf16.mxu1 %v2786_v29 }
  0x86   : > { %2577 = vmatpush3.bf16.msra.mxu0 %v2783_v36 }
  0x87   : > { %2483 = vmatmul.mubr.bf16.vlgmr.msra.gmra.mrb[0].mxu1 %v2098_v7  ;;  %2586 = vmatprep.subr.bf16.mxu0 %v2786_v29  ;;  %v2793_v7 = vld [vmem:[%s3378_s1 + $0x228] sm:$0xff]  }
  0x88   : > { %2618 = vmatpush3.bf16.msra.mxu1 %v2786_v29  ;;  %2486 = vmatprep.mubr.bf16.mxu1 %v2099_v47 }
  0x89   : > { %2611 = vmatprep.subr.bf16.mxu1 %v2787_v40  ;;  %2579 = vmatmul.mubr.bf16.vlgmr.msra.gmra.mrb[0].mxu0 %v3061_v17 }
  0x8a   : > { %2587 = vmatpush3.bf16.msra.mxu0 %v2786_v29  ;;  %2582 = vmatprep.mubr.bf16.mxu0 %v3098_v50 }
  0x8b   : > { %2588 = vmatprep.subr.bf16.mxu0 %v2787_v40 }
  0x8c   : > { %2619 = vmatpush3.bf16.msra.mxu1 %v2787_v40 }
  0x8d   : > { %2612 = vmatprep.subr.bf16.mxu1 %v2790_v41 }
  0x8e   : > { %2589 = vmatpush3.bf16.msra.mxu0 %v2787_v40 }
  0x8f   : > { %2487 = vmatmul.mubr.bf16.gmra.mrb[4].mxu1 %v2100_v21  ;;  %2590 = vmatprep.subr.bf16.mxu0 %v2790_v41 }
  0x90   : > { %2620 = vmatpush3.bf16.msra.mxu1 %v2790_v41  ;;  %2606 = vmatprep.mubr.bf16.mxu1 %v3272_v1 }
  0x91   : > { %2613 = vmatprep.subr.bf16.mxu1 %v2791_v33  ;;  %2583 = vmatmul.mubr.bf16.gmra.mrb[4].mxu0 %v3216_v57 }
  0x92   : > { %2591 = vmatpush3.bf16.msra.mxu0 %v2790_v41  ;;  %2602 = vmatprep.mubr.bf16.mxu0 %v3251_v4 }
  0x93   : > { %2592 = vmatprep.subr.bf16.mxu0 %v2791_v33 }
  0x94   : > { %2621 = vmatpush3.bf16.msra.mxu1 %v2791_v33 }
  0x95   : > { %2614 = vmatprep.subr.bf16.mxu1 %v2792_v52 }
  0x96   : > { %2593 = vmatpush3.bf16.msra.mxu0 %v2791_v33 }
  0x97   : > { %2594 = vmatprep.subr.bf16.mxu0 %v2792_v52 }
  0x98   : > { %2622 = vmatpush3.bf16.msra.mxu1 %v2792_v52 }
  0x99   : > { %2615 = vmatprep.subr.bf16.mxu1 %v2793_v7 }
  0x9a   : > { %2595 = vmatpush3.bf16.msra.mxu0 %v2792_v52 }
  0x9b   : > { %2596 = vmatprep.subr.bf16.mxu0 %v2793_v7 }
  0x9c   : > { %2623 = vmatpush3.bf16.msra.mxu1 %v2793_v7 }
  0x9d   : > { %2616 = vmatprep.subr.bf16.mxu1 %v2794_v25 }
  0x9e   : > { %2597 = vmatpush3.bf16.msra.mxu0 %v2793_v7 }
  0x9f   : > { %2598 = vmatprep.subr.bf16.mxu0 %v2794_v25 }
  0xa0   : > { %2624 = vmatpush3.bf16.msra.mxu1 %v2794_v25 }
  0xa1   : > { %2617 = vmatprep.subr.bf16.mxu1 %v2795_v38 }
  0xa2   : > { %2599 = vmatpush3.bf16.msra.mxu0 %v2794_v25 }
  0xa3   : > { %2600 = vmatprep.subr.bf16.mxu0 %v2795_v38 }
  0xa4   : > { %2625 = vmatpush3.bf16.msra.mxu1 %v2795_v38 }
  0xa6   : > { %2601 = vmatpush3.bf16.msra.mxu0 %v2795_v38 }
  0xa7   : > { %2607 = vmatmul.mubr.bf16.vlgmr.msra.gmra.mrb[8].mxu1 %v2233_v35 }
  0xa9   : > { %2603 = vmatmul.mubr.bf16.vlgmr.msra.gmra.mrb[0].mxu0 %v3255_v5 }
 0x15a   : > { %v2484_v47 = vpop.f32.mrb[0].mxu1 }
 0x15b   : > { %v1004_v53 = vpop.f32.mrb[1].mxu1 }
 0x15c   : > { %v2485_v0 = vpop.f32.mrb[2].mxu1 }
 0x15d   : > { %v1007_v17 = vpop.f32.mrb[3].mxu1 }
 0x162   : > { %v2488_v21 = vpop.f32.mrb[4].mxu1 }
 0x163   : > { %v1020_v50 = vpop.f32.mrb[5].mxu1 }
 0x164   : > { %v2489_v32 = vpop.f32.mrb[6].mxu1  ;;  %v2584_v44 = vpop.f32.mrb[4].mxu0 }
 0x165   : > { %v1023_v43 = vpop.f32.mrb[7].mxu1  ;;  %v2630_v49 = vadd.f32 %v2584_v44, %v2488_v21  ;;  %v1630_v15 = vpop.f32.mrb[5].mxu0 }
 0x166   : > { %v2632_v19 = vadd.f32 %v1630_v15, %v1020_v50  ;;  %v2585_v20 = vpop.f32.mrb[6].mxu0 }
 0x167   : > { %v2634_v46 = vadd.f32 %v2585_v20, %v2489_v32  ;;  %v1633_v51 = vpop.f32.mrb[7].mxu0 }
 0x168   : > { %v2636_v16 = vadd.f32 %v1633_v51, %v1023_v43 }
 0x17a   : > { %v2608_v35 = vpop.f32.mrb[8].mxu1 }
 0x17b   : > { %v2631_v58 = vadd.f32 %v2630_v49, %v2608_v35  ;;  %v1776_v26 = vpop.f32.mrb[9].mxu1 }
 0x17c   : > { %v2633_v55 = vadd.f32 %v2632_v19, %v1776_v26  ;;  %v2609_v12 = vpop.f32.mrb[10].mxu1  ;;  %v2604_v59 = vpop.f32.mrb[0].mxu0 }
 0x17d   : > { %v1812_v34 = vmul.f32 %v2631_v58, %v2242_v18  ;;  %v2635_v45 = vadd.f32 %v2634_v46, %v2609_v12  ;;  %v1779_v56 = vpop.f32.mrb[11].mxu1  ;;  %v2626_v60 = vadd.f32 %v2604_v59, %v2484_v47  ;;  %v1760_v61 = vpop.f32.mrb[1].mxu0 }
 0x17e   : > { %v1810_v57 = vmul.f32 %v2633_v55, %v2242_v18  ;;  %v2637_v24 = vadd.f32 %v2636_v16, %v1779_v56  ;;  %v2627_v2 = vadd.f32 %v1760_v61, %v1004_v53  ;;  %v2605_v3 = vpop.f32.mrb[2].mxu0 }
 0x17f   : > { %v1827_v39 = vadd.f32 %v2243_v54, %v1812_v34  ;;  %v1813_v31 = vmul.f32 %v2635_v45, %v2242_v18  ;;  %v1808_v5 = vmul.f32 %v2626_v60, %v2242_v18  ;;  %v2628_v6 = vadd.f32 %v2605_v3, %v2485_v0  ;;  %v1763_v27 = vpop.f32.mrb[3].mxu0 }
 0x180   : > { %v1825_v62 = vadd.f32 %v2243_v54, %v1810_v57  ;;  %v1811_v11 = vmul.f32 %v2637_v24, %v2242_v18  ;;  %v1806_v1 = vmul.f32 %v2627_v2, %v2242_v18  ;;  %v2629_v14 = vadd.f32 %v1763_v27, %v1007_v17 }
 0x181   : > { %v1828_v4 = vadd.f32 %v2243_v54, %v1813_v31  ;;  %v1835_v9 = vmax.f32 %v1827_v39, 0.0  ;;  %v1823_v8 = vadd.f32 %v2243_v54, %v1808_v5  ;;  %v1809_v23 = vmul.f32 %v2628_v6, %v2242_v18 }
 0x182   : > { %v1826_v48 = vadd.f32 %v2243_v54, %v1811_v11  ;;  %v1833_v22 = vmax.f32 %v1825_v62, 0.0  ;;  %v1821_v30 = vadd.f32 %v2243_v54, %v1806_v1  ;;  %v1807_v63 = vmul.f32 %v2629_v14, %v2242_v18 }
 0x183   : > { %v1836_v42 = vmax.f32 %v1828_v4, 0.0  ;;  %v1824_v28 = vadd.f32 %v2243_v54, %v1809_v23  ;;  %v1831_v36 = vmax.f32 %v1823_v8, 0.0 }
 0x184   : > { %v1834_v13 = vmax.f32 %v1826_v48, 0.0  ;;  %v1822_v29 = vadd.f32 %v2243_v54, %v1807_v63  ;;  %v1829_v41 = vmax.f32 %v1821_v30, 0.0 }
 0x185   : > { %v2281_v37 = vpack.c.bf16 %v1836_v42, %v1835_v9  ;;  %v1832_v40 = vmax.f32 %v1824_v28, 0.0 }
 0x186   : > { %v2276_v10 = vpack.c.bf16 %v1834_v13, %v1833_v22  ;;  %v1830_v33 = vmax.f32 %v1822_v29, 0.0 }
 0x187   : > { %2285 = vst [vmem:[%s262_s22 + $0x18] sm:$0xff] %v2281_v37   ;;  %v2271_v52 = vpack.c.bf16 %v1832_v40, %v1831_v36 }
 0x188   : > { %2284 = vst [vmem:[%s262_s22 + $0x10] sm:$0xff] %v2276_v10   ;;  %v2266_v7 = vpack.c.bf16 %v1830_v33, %v1829_v41 }
 0x189   : > { %2283 = vst [vmem:[%s262_s22 + $0x8] sm:$0xff] %v2271_v52  }
 0x18a   : > { %2267 = vst [vmem:[%s262_s22] sm:$0xff] %v2266_v7  }
 0x18b PF: > { %s14_s17 = sadd.s32 1, %s2818_s17   ;;  %s3386_s15 = smov %s2814_s16 }
 0x18c   : > { %p11_p5 = scmp.ge.s32.totalorder %s14_s17, 4   ;;  %s3387_s16 = smov %s3389_s18 }
 0x18e   :  { %13 = sbr.rel (!%p11_p5) target bundleno = 2 (0x2), region = 83 }

</bundles_post_ra>
